<compile_context>
chip_gen: v7x
topology: tpu7x:2x2x1
jax: 0.10.0
libtpu: 0.0.40
codegen_flags: <defaults>
</compile_context>

<pallas_src>
import functools
import inspect

import jax
import jax.numpy as jnp
from jax.experimental import pallas as pl
from jax.experimental.pallas import tpu as pltpu


try:
    _HAS_PIPELINE_MODE = (
        hasattr(pl, "Buffered")
        and "pipeline_mode" in inspect.signature(pl.BlockSpec).parameters
    )
except Exception:  # pragma: no cover - defensive
    _HAS_PIPELINE_MODE = False


def decoder_kernel(emb_ref, encT_ref, src_ref,
                   waff_ref, baff_ref, wconv_ref, bconv_ref,
                   wmap_ref, bmap_ref, wfc_ref, bfc_ref,
                   out_ref,
                   ypad_ref, outs_ref, m_ref, l_ref, lse_ref,
                   *, hidden, ksize):
    f32 = jnp.float32
    bf16 = jnp.bfloat16
    bt, seq, emb_dim = emb_ref.shape
    half = hidden // 2
    pad = (ksize - 1) // 2
    rows = bt * seq

    p = pl.program_id(1)       # 0: logsumexp pass, 1: write pass
    vj = pl.program_id(2)      # vocab tile index
    nv = pl.num_programs(2)

    # ------- pre-fc trunk: run once per batch tile (p == 0, vj == 0) -------
    @pl.when(jnp.logical_and(p == 0, vj == 0))
    def _trunk():
        # affine(embedding): (rows, E) @ (E, H); bf16 operands, f32 accumulate.
        x = emb_ref[...].reshape(rows, emb_dim)
        h = jnp.dot(x, waff_ref[...], preferred_element_type=f32) + baff_ref[...]

        # Conv1d via zero-padded scratch + im2col: ONE (k*H, 2H) MXU matmul.
        # Invariant: the interior write never touches the halo rows.
        if pad > 0:
            zhalo = jnp.zeros((bt, pad, hidden), f32)
            ypad_ref[:, :pad, :] = zhalo
            ypad_ref[:, pad + seq:, :] = zhalo
        ypad_ref[:, pad:pad + seq, :] = h.reshape(bt, seq, hidden)
        # TODO(synk): on v5e, if the vld/vst slot saturates, switch to k
        # accumulate matmuls with per-tap (H, 2H) weights instead of lane-concat.
        taps = [ypad_ref[:, j:j + seq, :].reshape(rows, hidden)
                for j in range(ksize)]
        x_cat = jnp.concatenate(taps, axis=-1).astype(bf16)             # (rows, k*H)
        conv = jnp.dot(x_cat, wconv_ref[...],
                       preferred_element_type=f32) + bconv_ref[...]     # (rows, 2H)

        # GLU over channels, then A/B split of the GLU output (f32 math).
        glu = conv[:, :hidden] * jax.nn.sigmoid(conv[:, hidden:])       # (rows, H)
        A = glu[:, :half]
        Bh = glu[:, half:]

        # dec_attn = A * softmax(B) over the H/2 axis.
        mb = jnp.max(Bh, axis=-1, keepdims=True)
        eb = jnp.exp(Bh - mb)
        sm = eb * pl.reciprocal(jnp.sum(eb, axis=-1, keepdims=True), approx=True)
        dec_attn = A * sm                                               # (rows, H/2)

        # mapping: (rows, H/2) @ (H/2, H)
        dec_attn2 = jnp.dot(dec_attn.astype(bf16), wmap_ref[...],
                            preferred_element_type=f32) + bmap_ref[...]

        # Encoder attention; enc is pre-transposed in the wrapper to
        # (bt, H/2, S_src) so both bmms contract without in-kernel transposes.
        dec3 = dec_attn.reshape(bt, seq, half).astype(bf16)
        scores = jnp.einsum('bqd,bdk->bqk', dec3, encT_ref[...],
                            preferred_element_type=f32)                 # (bt, S, S_src)
        ms = jnp.max(scores, axis=-1, keepdims=True)
        es = jnp.exp(scores - ms)
        ps = (es / jnp.sum(es, axis=-1, keepdims=True)).astype(bf16)    # exact divide
        attns = jnp.einsum('bqk,bkd->bqd', ps, src_ref[...],
                           preferred_element_type=f32)                  # (bt, S, H)

        outs_ref[...] = (dec_attn2 + attns.reshape(rows, hidden)).astype(bf16)

    # ------- fc tile: bf16 operands, f32 accumulation (every grid step) -------
    logits = jnp.dot(outs_ref[...], wfc_ref[...],
                     preferred_element_type=f32) + bfc_ref[...]         # (rows, Vt)

    # Pass 0: online logsumexp over vocab tiles.
    @pl.when(p == 0)
    def _lse_pass():
        @pl.when(vj == 0)
        def _init():
            m_ref[...] = jnp.full(m_ref.shape, -jnp.inf, f32)
            l_ref[...] = jnp.zeros(l_ref.shape, f32)

        m_prev = m_ref[...]
        m_new = jnp.maximum(m_prev, jnp.max(logits, axis=-1, keepdims=True))
        l_ref[...] = (l_ref[...] * jnp.exp(m_prev - m_new)
                      + jnp.sum(jnp.exp(logits - m_new), axis=-1, keepdims=True))
        m_ref[...] = m_new

        @pl.when(vj == nv - 1)
        def _finalize():
            lse_ref[...] = m_ref[...] + jnp.log(l_ref[...])

    # Pass 1: write log-softmax (logits - lse) for this vocab tile.
    @pl.when(p == 1)
    def _write_pass():
        out_ref[...] = (logits - lse_ref[...]).reshape(bt, seq, logits.shape[-1])


def _vmem_budget_bytes():
    """Per-generation VMEM budget (v7x has 64 MiB physical, v5e/v6e 128 MiB)."""
    kind = ""
    try:
        kind = jax.devices()[0].device_kind.lower()
    except Exception:
        pass
    if "v7" in kind:
        return 48 << 20
    return 100 << 20


def _pick_batch_tile(batch, seq, target_rows=512):
    """Divisor of `batch` giving ~target rows, preferring MXU-aligned row
    counts (multiples of 256 / 128) and >= 4 grid steps (2 per v7x core)."""
    divisors = [d for d in range(1, batch + 1) if batch % d == 0]
    fits = [d for d in divisors if d * seq <= max(seq, target_rows)]
    if not fits:
        return 1

    def score(d):
        rows = d * seq
        steps = batch // d
        step_tier = 2 if steps >= 4 else (1 if steps >= 2 else 0)
        align_tier = 2 if rows % 256 == 0 else (1 if rows % 128 == 0 else 0)
        return (step_tier, align_tier, rows)

    return max(fits, key=score)


def _estimate_vmem_bytes(bt, vt, *, S, S_src, E, H, K, pad, weight_bufs):
    """Rough per-step VMEM estimate (bf16 weights/inputs, f32 output/scratch)."""
    rows = bt * S
    half = H // 2
    const = weight_bufs * (E * H * 2 + K * H * 2 * H * 2 + half * H * 2
                           + (H + 2 * H + H) * 4)
    streamed = 2 * (H * vt * 2 + vt * 4)                       # fc weight/bias tiles
    inputs = 2 * (rows * E + bt * half * S_src + bt * S_src * H) * 2
    out = 2 * rows * vt * 4
    scratch = (bt * (S + 2 * pad) * H * 4 + rows * H * 2 + 3 * rows * 128 * 4)
    return const + streamed + inputs + out + scratch


def _pick_vocab_tile(V, est_fn, budget, cap=4096):
    """Largest lane-aligned (multiple of 128) divisor of V, <= cap, fitting VMEM."""
    cands = [v for v in range(128, min(V, cap) + 1, 128) if V % v == 0]
    if not cands:
        return V
    best = cands[0]
    for v in cands:
        if est_fn(v) <= 0.75 * budget:
            best = v
    return best


def decoder_forward(target, enc_attn, source_seq_out, params, *, ksize):
    emb_table = params["emb_table"]                       # (V, E)
    W_aff, b_aff = params["W_aff"], params["b_aff"]       # (H, E), (H,)
    W_conv, b_conv = params["W_conv"], params["b_conv"]   # (2H, H, k), (2H,)
    W_map, b_map = params["W_map"], params["b_map"]       # (H, H//2), (H,)
    W_fc, b_fc = params["W_fc"], params["b_fc"]           # (V, H), (V,)

    B, S = target.shape
    E = emb_table.shape[1]
    H = W_aff.shape[0]
    half = H // 2
    V = W_fc.shape[0]
    pad = (ksize - 1) // 2
    assert ksize % 2 == 1, "odd kernel_size assumed (length-preserving conv)"

    # Glue (plain JAX): embedding gather, weight re-layouts, dtype casts.
    emb = emb_table[target].astype(jnp.bfloat16)                        # (B, S, E)
    enc3 = enc_attn.reshape(B, -1, half)
    S_src = enc3.shape[1]
    encT = jnp.transpose(enc3, (0, 2, 1)).astype(jnp.bfloat16)          # (B, H/2, S_src)
    src3 = source_seq_out.reshape(B, S_src, H).astype(jnp.bfloat16)     # (B, S_src, H)

    waff = W_aff.T.astype(jnp.bfloat16)                                 # (E, H)
    baff = b_aff.reshape(1, H).astype(jnp.float32)
    # im2col conv weight: w[j*H + i, o] = W_conv[o, i, j]
    wconv = jnp.transpose(W_conv, (2, 1, 0)).reshape(ksize * H, 2 * H).astype(jnp.bfloat16)
    bconv = b_conv.reshape(1, 2 * H).astype(jnp.float32)
    wmap = W_map.T.astype(jnp.bfloat16)                                 # (H/2, H)
    bmap = b_map.reshape(1, H).astype(jnp.float32)
    wfc = W_fc.T.astype(jnp.bfloat16)                                   # (H, V) bf16 MXU operand
    bfc = b_fc.reshape(1, V).astype(jnp.float32)

    budget = _vmem_budget_bytes()
    weight_bufs = 1 if _HAS_PIPELINE_MODE else 2
    bt = _pick_batch_tile(B, S)
    est = functools.partial(_estimate_vmem_bytes, S=S, S_src=S_src, E=E, H=H,
                            K=ksize, pad=pad, weight_bufs=weight_bufs)
    vt = _pick_vocab_tile(V, lambda v: est(bt, v), budget)
    while est(bt, vt) > 0.85 * budget and bt > 1:
        bt = max(d for d in range(1, bt) if B % d == 0)

    grid = (B // bt, 2, V // vt)   # (batch tiles, [lse pass, write pass], vocab tiles)
    rows = bt * S

    kernel = functools.partial(decoder_kernel, hidden=H, ksize=ksize)

    def build_const_spec(shape, single_buffer):
        ndim = len(shape)
        index_map = lambda b, p, vj: (0,) * ndim
        if single_buffer:
            # Loop-invariant operand: no need for a second VMEM buffer.
            return pl.BlockSpec(shape, index_map, pipeline_mode=pl.Buffered(1))
        return pl.BlockSpec(shape, index_map)

    def run(single_buffer_weights):
        in_specs = [
            pl.BlockSpec((bt, S, E), lambda b, p, vj: (b, 0, 0)),          # embeddings
            pl.BlockSpec((bt, half, S_src), lambda b, p, vj: (b, 0, 0)),   # enc (pre-transposed)
            pl.BlockSpec((bt, S_src, H), lambda b, p, vj: (b, 0, 0)),      # source_seq_out
            build_const_spec((E, H), single_buffer_weights),               # affine W
            build_const_spec((1, H), single_buffer_weights),               # affine b
            build_const_spec((ksize * H, 2 * H), single_buffer_weights),   # conv W (im2col)
            build_const_spec((1, 2 * H), single_buffer_weights),           # conv b
            build_const_spec((half, H), single_buffer_weights),            # mapping W
            build_const_spec((1, H), single_buffer_weights),               # mapping b
            pl.BlockSpec((H, vt), lambda b, p, vj: (0, vj)),               # fc W tile
            pl.BlockSpec((1, vt), lambda b, p, vj: (0, vj)),               # fc b tile
        ]
        return pl.pallas_call(
            kernel,
            out_shape=jax.ShapeDtypeStruct((B, S, V), jnp.float32),
            grid_spec=pltpu.PrefetchScalarGridSpec(
                num_scalar_prefetch=0,
                grid=grid,
                in_specs=in_specs,
                # During the lse pass (p == 0) the output index is pinned to
                # vocab tile 0, so no partially-written block is ever flushed.
                out_specs=pl.BlockSpec((bt, S, vt),
                                       lambda b, p, vj: (b, 0, p * vj)),
                scratch_shapes=[
                    pltpu.VMEM((bt, S + 2 * pad, H), jnp.float32),   # padded conv input
                    pltpu.VMEM((rows, H), jnp.bfloat16),             # pre-fc activations
                    pltpu.VMEM((rows, 1), jnp.float32),              # running max
                    pltpu.VMEM((rows, 1), jnp.float32),              # running sum-exp
                    pltpu.VMEM((rows, 1), jnp.float32),              # logsumexp
                ],
            ),
            compiler_params=pltpu.CompilerParams(
                dimension_semantics=("parallel", "arbitrary", "arbitrary"),
                vmem_limit_bytes=int(budget)),
        )(emb, encT, src3, waff, baff, wconv, bconv, wmap, bmap, wfc, bfc)

    use_single = bool(_HAS_PIPELINE_MODE)
    try:
        return run(use_single)
    except Exception:
        if not use_single:
            raise
        # pipeline_mode / Buffered(1) not accepted by this Pallas lowering:
        # fall back to default double-buffered weight blocks.
        return run(False)


def reference_forward(target, enc_attn, source_seq_out, params, *, ksize):
    """Pure-JAX (f32) reference matching the PyTorch Decoder.forward semantics."""
    H = params["W_aff"].shape[0]
    half = H // 2
    pad = (ksize - 1) // 2
    B, S = target.shape

    x = params["emb_table"][target].astype(jnp.float32)
    h = x @ params["W_aff"].T + params["b_aff"]                    # (B, S, H)
    y = jnp.transpose(h, (0, 2, 1))                                # (B, H, S)
    conv = jax.lax.conv_general_dilated(
        y, params["W_conv"], window_strides=(1,), padding=[(pad, pad)],
        dimension_numbers=("NCH", "OIH", "NCH"))
    conv = conv + params["b_conv"][None, :, None]
    glu = conv[:, :H, :] * jax.nn.sigmoid(conv[:, H:, :])          # (B, H, S)
    glu = jnp.transpose(glu, (0, 2, 1))                            # (B, S, H)
    A2 = glu[..., :half].reshape(-1, half)
    B2 = glu[..., half:].reshape(-1, half)
    dec_attn = A2 * jax.nn.softmax(B2, axis=1)                     # (B*S, H/2)
    dec_attn2 = (dec_attn @ params["W_map"].T + params["b_map"]).reshape(B, S, H)
    dec3 = dec_attn.reshape(B, S, half)
    enc3 = enc_attn.reshape(B, -1, half)
    scores = jnp.einsum('bqd,bkd->bqk', dec3, enc3)
    probs = jax.nn.softmax(scores, axis=-1)
    attns = jnp.einsum('bqk,bkd->bqd', probs, source_seq_out)
    outputs = dec_attn2 + attns
    logits = outputs @ params["W_fc"].T + params["b_fc"]
    return jax.nn.log_softmax(logits, axis=-1)


if __name__ == "__main__":
    B, S, S_SRC = 2, 8, 8          # batch, target seq, source seq
    V, E, H, K = 256, 32, 128, 3   # vocab, embedding, hidden, kernel_size

    key = jax.random.PRNGKey(0)
    ks = jax.random.split(key, 12)
    params = {
        "emb_table": 0.1 * jax.random.normal(ks[0], (V, E), jnp.float32),
        "W_aff":     0.1 * jax.random.normal(ks[1], (H, E), jnp.float32),
        "b_aff":     0.1 * jax.random.normal(ks[2], (H,), jnp.float32),
        "W_conv":    0.1 * jax.random.normal(ks[3], (2 * H, H, K), jnp.float32),
        "b_conv":    0.1 * jax.random.normal(ks[4], (2 * H,), jnp.float32),
        "W_map":     0.1 * jax.random.normal(ks[5], (H, H // 2), jnp.float32),
        "b_map":     0.1 * jax.random.normal(ks[6], (H,), jnp.float32),
        "W_fc":      0.1 * jax.random.normal(ks[7], (V, H), jnp.float32),
        "b_fc":      0.1 * jax.random.normal(ks[8], (V,), jnp.float32),
    }
    target = jax.random.randint(ks[9], (B, S), 0, V, dtype=jnp.int32)
    enc_attn = 0.5 * jax.random.normal(ks[10], (B * S_SRC, H // 2), jnp.float32)
    source_seq_out = jax.random.normal(ks[11], (B, S_SRC, H), jnp.float32)

    out = decoder_forward(target, enc_attn, source_seq_out, params, ksize=K)
    jax.block_until_ready(out)

    out_ref = reference_forward(target, enc_attn, source_seq_out, params, ksize=K)
    assert out.shape == (B, S, V)
    assert jnp.allclose(out, out_ref, atol=5e-2, rtol=5e-2), \
        float(jnp.max(jnp.abs(out - out_ref)))

    print("KERNEL_OK")
</pallas_src>

<mosaic_0001>
module attributes {stable_mosaic.version = 11 : i64} {
  func.func @decoder_kernel(%arg0: i32, %arg1: i32, %arg2: i32, %arg3: memref<1x8x32xbf16, #tpu.memory_space<vmem>>, %arg4: memref<1x64x8xbf16, #tpu.memory_space<vmem>>, %arg5: memref<1x8x128xbf16, #tpu.memory_space<vmem>>, %arg6: memref<32x128xbf16, #tpu.memory_space<vmem>>, %arg7: memref<1x128xf32, #tpu.memory_space<vmem>>, %arg8: memref<384x256xbf16, #tpu.memory_space<vmem>>, %arg9: memref<1x256xf32, #tpu.memory_space<vmem>>, %arg10: memref<64x128xbf16, #tpu.memory_space<vmem>>, %arg11: memref<1x128xf32, #tpu.memory_space<vmem>>, %arg12: memref<128x256xbf16, #tpu.memory_space<vmem>>, %arg13: memref<1x256xf32, #tpu.memory_space<vmem>>, %arg14: memref<1x8x256xf32, #tpu.memory_space<vmem>>, %arg15: memref<1x10x128xf32, #tpu.memory_space<vmem>>, %arg16: memref<8x128xbf16, #tpu.memory_space<vmem>>, %arg17: memref<8x1xf32, #tpu.memory_space<vmem>>, %arg18: memref<8x1xf32, #tpu.memory_space<vmem>>, %arg19: memref<8x1xf32, #tpu.memory_space<vmem>>) attributes {dimension_semantics = [#tpu.dimension_semantics<parallel>, #tpu.dimension_semantics<arbitrary>, #tpu.dimension_semantics<arbitrary>], iteration_bounds = array<i64: 2, 2, 1>, scalar_prefetch = 0 : i64, scratch_operands = 5 : i64, tpu.core_type = #tpu.core_type<tc>, window_params = [{transform_indices = @transform_0, window_bounds = array<i64: 1, 8, 32>}, {transform_indices = @transform_1, window_bounds = array<i64: 1, 64, 8>}, {transform_indices = @transform_2, window_bounds = array<i64: 1, 8, 128>}, {pipeline_mode = #tpu.pipeline_mode<synchronous>, transform_indices = @transform_3, window_bounds = array<i64: 32, 128>}, {pipeline_mode = #tpu.pipeline_mode<synchronous>, transform_indices = @transform_4, window_bounds = array<i64: 1, 128>}, {pipeline_mode = #tpu.pipeline_mode<synchronous>, transform_indices = @transform_5, window_bounds = array<i64: 384, 256>}, {pipeline_mode = #tpu.pipeline_mode<synchronous>, transform_indices = @transform_6, window_bounds = array<i64: 1, 256>}, {pipeline_mode = #tpu.pipeline_mode<synchronous>, transform_indices = @transform_7, window_bounds = array<i64: 64, 128>}, {pipeline_mode = #tpu.pipeline_mode<synchronous>, transform_indices = @transform_8, window_bounds = array<i64: 1, 128>}, {transform_indices = @transform_9, window_bounds = array<i64: 128, 256>}, {transform_indices = @transform_10, window_bounds = array<i64: 1, 256>}, {transform_indices = @transform_11, window_bounds = array<i64: 1, 8, 256>}]} {
    %c0_i32 = arith.constant 0 : i32
    %0 = arith.cmpi eq, %arg1, %c0_i32 : i32
    %c0_i32_0 = arith.constant 0 : i32
    %1 = arith.cmpi eq, %arg2, %c0_i32_0 : i32
    %2 = arith.andi %0, %1 : i1
    %3 = arith.extui %2 : i1 to i32
    %c0_i32_1 = arith.constant 0 : i32
    %4 = arith.cmpi ne, %3, %c0_i32_1 : i32
    scf.if %4 {
      %c0_10 = arith.constant 0 : index
      %c0_11 = arith.constant 0 : index
      %c0_12 = arith.constant 0 : index
      %17 = vector.load %arg3[%c0_10, %c0_11, %c0_12] : memref<1x8x32xbf16, #tpu.memory_space<vmem>>, vector<1x8x32xbf16>
      %18 = vector.shape_cast %17 : vector<1x8x32xbf16> to vector<8x32xbf16>
      %c0_13 = arith.constant 0 : index
      %c0_14 = arith.constant 0 : index
      %19 = vector.load %arg6[%c0_13, %c0_14] : memref<32x128xbf16, #tpu.memory_space<vmem>>, vector<32x128xbf16>
      %cst_15 = arith.constant dense<0.000000e+00> : vector<8x128xf32>
      %20 = tpu.matmul %18, %19, %cst_15 {dimension_numbers = #tpu.dot_dimension_numbers<[1], [0], [0], [1], [0, 0, 1, 1], [], []>} : vector<8x32xbf16>, vector<32x128xbf16>, vector<8x128xf32> -> vector<8x128xf32>
      %c0_16 = arith.constant 0 : index
      %c0_17 = arith.constant 0 : index
      %21 = vector.load %arg7[%c0_16, %c0_17] : memref<1x128xf32, #tpu.memory_space<vmem>>, vector<1x128xf32>
      %22 = vector.broadcast %21 : vector<1x128xf32> to vector<8x128xf32>
      %23 = arith.addf %20, %22 : vector<8x128xf32>
      %cst_18 = arith.constant 0.000000e+00 : f32
      %24 = vector.broadcast %cst_18 : f32 to vector<1x1x128xf32>
      %c0_19 = arith.constant 0 : index
      %c0_20 = arith.constant 0 : index
      %c0_21 = arith.constant 0 : index
      %25 = vector.load %arg15[%c0_19, %c0_20, %c0_21] : memref<1x10x128xf32, #tpu.memory_space<vmem>>, vector<1x1x128xf32>
      tpu.vector_store %arg15[%c0_19, %c0_20, %c0_21], %24 {strides = array<i32>} : memref<1x10x128xf32, #tpu.memory_space<vmem>>, vector<1x1x128xf32>,
      %c0_22 = arith.constant 0 : index
      %c9 = arith.constant 9 : index
      %c0_23 = arith.constant 0 : index
      %26 = vector.load %arg15[%c0_22, %c9, %c0_23] : memref<1x10x128xf32, #tpu.memory_space<vmem>>, vector<1x1x128xf32>
      tpu.vector_store %arg15[%c0_22, %c9, %c0_23], %24 {strides = array<i32>} : memref<1x10x128xf32, #tpu.memory_space<vmem>>, vector<1x1x128xf32>,
      %27 = vector.shape_cast %23 : vector<8x128xf32> to vector<1x8x128xf32>
      %c0_24 = arith.constant 0 : index
      %c1 = arith.constant 1 : index
      %c0_25 = arith.constant 0 : index
      %28 = vector.load %arg15[%c0_24, %c1, %c0_25] : memref<1x10x128xf32, #tpu.memory_space<vmem>>, vector<1x8x128xf32>
      tpu.vector_store %arg15[%c0_24, %c1, %c0_25], %27 {strides = array<i32>} : memref<1x10x128xf32, #tpu.memory_space<vmem>>, vector<1x8x128xf32>,
      %c0_26 = arith.constant 0 : index
      %c0_27 = arith.constant 0 : index
      %c0_28 = arith.constant 0 : index
      %29 = vector.load %arg15[%c0_26, %c0_27, %c0_28] : memref<1x10x128xf32, #tpu.memory_space<vmem>>, vector<1x8x128xf32>
      %30 = vector.shape_cast %29 : vector<1x8x128xf32> to vector<8x128xf32>
      %c0_29 = arith.constant 0 : index
      %c1_30 = arith.constant 1 : index
      %c0_31 = arith.constant 0 : index
      %31 = vector.load %arg15[%c0_29, %c1_30, %c0_31] : memref<1x10x128xf32, #tpu.memory_space<vmem>>, vector<1x8x128xf32>
      %32 = vector.shape_cast %31 : vector<1x8x128xf32> to vector<8x128xf32>
      %c0_32 = arith.constant 0 : index
      %c2 = arith.constant 2 : index
      %c0_33 = arith.constant 0 : index
      %33 = vector.load %arg15[%c0_32, %c2, %c0_33] : memref<1x10x128xf32, #tpu.memory_space<vmem>>, vector<1x8x128xf32>
      %34 = vector.shape_cast %33 : vector<1x8x128xf32> to vector<8x128xf32>
      %35 = tpu.concatenate %30, %32, %34 in 1 : vector<8x128xf32>, vector<8x128xf32>, vector<8x128xf32> -> vector<8x384xf32>
      %36 = arith.truncf %35 : vector<8x384xf32> to vector<8x384xbf16>
      %c0_34 = arith.constant 0 : index
      %c0_35 = arith.constant 0 : index
      %37 = vector.load %arg8[%c0_34, %c0_35] : memref<384x256xbf16, #tpu.memory_space<vmem>>, vector<384x256xbf16>
      %cst_36 = arith.constant dense<0.000000e+00> : vector<8x256xf32>
      %38 = tpu.matmul %36, %37, %cst_36 {dimension_numbers = #tpu.dot_dimension_numbers<[1], [0], [0], [1], [0, 0, 1, 1], [], []>} : vector<8x384xbf16>, vector<384x256xbf16>, vector<8x256xf32> -> vector<8x256xf32>
      %c0_37 = arith.constant 0 : index
      %c0_38 = arith.constant 0 : index
      %39 = vector.load %arg9[%c0_37, %c0_38] : memref<1x256xf32, #tpu.memory_space<vmem>>, vector<1x256xf32>
      %40 = vector.broadcast %39 : vector<1x256xf32> to vector<8x256xf32>
      %41 = arith.addf %38, %40 : vector<8x256xf32>
      %42 = vector.extract_strided_slice %41 {offsets = [0, 0], sizes = [8, 128], strides = [1, 1]} : vector<8x256xf32> to vector<8x128xf32>
      %43 = vector.extract_strided_slice %41 {offsets = [0, 128], sizes = [8, 128], strides = [1, 1]} : vector<8x256xf32> to vector<8x128xf32>
      %44 = arith.negf %43 : vector<8x128xf32>
      %45 = math.exp %44 : vector<8x128xf32>
      %cst_39 = arith.constant 1.000000e+00 : f32
      %46 = vector.broadcast %cst_39 : f32 to vector<8x128xf32>
      %47 = arith.addf %46, %45 : vector<8x128xf32>
      %48 = arith.divf %46, %47 : vector<8x128xf32>
      %49 = arith.mulf %42, %48 : vector<8x128xf32>
      %50 = vector.extract_strided_slice %49 {offsets = [0, 0], sizes = [8, 64], strides = [1, 1]} : vector<8x128xf32> to vector<8x64xf32>
      %51 = vector.extract_strided_slice %49 {offsets = [0, 64], sizes = [8, 64], strides = [1, 1]} : vector<8x128xf32> to vector<8x64xf32>
      %cst_40 = arith.constant dense<0xFF800000> : vector<8xf32>
      %52 = vector.multi_reduction <maximumf>, %51, %cst_40 [1] : vector<8x64xf32> to vector<8xf32>
      %53 = vector.shape_cast %52 : vector<8xf32> to vector<8x1xf32>
      %54 = vector.broadcast %53 : vector<8x1xf32> to vector<8x64xf32>
      %55 = arith.subf %51, %54 : vector<8x64xf32>
      %56 = math.exp %55 : vector<8x64xf32>
      %cst_41 = arith.constant dense<0.000000e+00> : vector<8xf32>
      %57 = vector.multi_reduction <add>, %56, %cst_41 [1] : vector<8x64xf32> to vector<8xf32>
      %58 = vector.shape_cast %57 : vector<8xf32> to vector<8x1xf32>
      %59 = tpu.reciprocal %58 {approx = true} : vector<8x1xf32> -> vector<8x1xf32>
      %60 = vector.broadcast %59 : vector<8x1xf32> to vector<8x64xf32>
      %61 = arith.mulf %56, %60 : vector<8x64xf32>
      %62 = arith.mulf %50, %61 : vector<8x64xf32>
      %63 = arith.truncf %62 : vector<8x64xf32> to vector<8x64xbf16>
      %c0_42 = arith.constant 0 : index
      %c0_43 = arith.constant 0 : index
      %64 = vector.load %arg10[%c0_42, %c0_43] : memref<64x128xbf16, #tpu.memory_space<vmem>>, vector<64x128xbf16>
      %cst_44 = arith.constant dense<0.000000e+00> : vector<8x128xf32>
      %65 = tpu.matmul %63, %64, %cst_44 {dimension_numbers = #tpu.dot_dimension_numbers<[1], [0], [0], [1], [0, 0, 1, 1], [], []>} : vector<8x64xbf16>, vector<64x128xbf16>, vector<8x128xf32> -> vector<8x128xf32>
      %c0_45 = arith.constant 0 : index
      %c0_46 = arith.constant 0 : index
      %66 = vector.load %arg11[%c0_45, %c0_46] : memref<1x128xf32, #tpu.memory_space<vmem>>, vector<1x128xf32>
      %67 = vector.broadcast %66 : vector<1x128xf32> to vector<8x128xf32>
      %68 = arith.addf %65, %67 : vector<8x128xf32>
      %69 = vector.shape_cast %62 : vector<8x64xf32> to vector<1x8x64xf32>
      %70 = arith.truncf %69 : vector<1x8x64xf32> to vector<1x8x64xbf16>
      %c0_47 = arith.constant 0 : index
      %c0_48 = arith.constant 0 : index
      %c0_49 = arith.constant 0 : index
      %71 = vector.load %arg4[%c0_47, %c0_48, %c0_49] : memref<1x64x8xbf16, #tpu.memory_space<vmem>>, vector<1x64x8xbf16>
      "tpu.trace_start"() <{level = 10 : i32, message = "bqd,bdk->bqk"}> : () -> ()
      %cst_50 = arith.constant dense<0.000000e+00> : vector<1x8x8xf32>
      %72 = tpu.matmul %70, %71, %cst_50 {dimension_numbers = #tpu.dot_dimension_numbers<[2], [1], [1], [2], [0, 0, 0, 1, 1, 2], [0], [0]>} : vector<1x8x64xbf16>, vector<1x64x8xbf16>, vector<1x8x8xf32> -> vector<1x8x8xf32>
      "tpu.trace_stop"() : () -> ()
      %cst_51 = arith.constant dense<0xFF800000> : vector<1x8xf32>
      %73 = vector.multi_reduction <maximumf>, %72, %cst_51 [2] : vector<1x8x8xf32> to vector<1x8xf32>
      %74 = vector.shape_cast %73 : vector<1x8xf32> to vector<1x8x1xf32>
      %75 = vector.broadcast %74 : vector<1x8x1xf32> to vector<1x8x8xf32>
      %76 = arith.subf %72, %75 : vector<1x8x8xf32>
      %77 = math.exp %76 : vector<1x8x8xf32>
      %cst_52 = arith.constant dense<0.000000e+00> : vector<1x8xf32>
      %78 = vector.multi_reduction <add>, %77, %cst_52 [2] : vector<1x8x8xf32> to vector<1x8xf32>
      %79 = vector.shape_cast %78 : vector<1x8xf32> to vector<1x8x1xf32>
      %80 = vector.broadcast %79 : vector<1x8x1xf32> to vector<1x8x8xf32>
      %81 = arith.divf %77, %80 : vector<1x8x8xf32>
      %82 = arith.truncf %81 : vector<1x8x8xf32> to vector<1x8x8xbf16>
      %c0_53 = arith.constant 0 : index
      %c0_54 = arith.constant 0 : index
      %c0_55 = arith.constant 0 : index
      %83 = vector.load %arg5[%c0_53, %c0_54, %c0_55] : memref<1x8x128xbf16, #tpu.memory_space<vmem>>, vector<1x8x128xbf16>
      "tpu.trace_start"() <{level = 10 : i32, message = "bqk,bkd->bqd"}> : () -> ()
      %cst_56 = arith.constant dense<0.000000e+00> : vector<1x8x128xf32>
      %84 = tpu.matmul %82, %83, %cst_56 {dimension_numbers = #tpu.dot_dimension_numbers<[2], [1], [1], [2], [0, 0, 0, 1, 1, 2], [0], [0]>} : vector<1x8x8xbf16>, vector<1x8x128xbf16>, vector<1x8x128xf32> -> vector<1x8x128xf32>
      "tpu.trace_stop"() : () -> ()
      %85 = vector.shape_cast %84 : vector<1x8x128xf32> to vector<8x128xf32>
      %86 = arith.addf %68, %85 : vector<8x128xf32>
      %87 = arith.truncf %86 : vector<8x128xf32> to vector<8x128xbf16>
      %c0_57 = arith.constant 0 : index
      %c0_58 = arith.constant 0 : index
      %88 = vector.load %arg16[%c0_57, %c0_58] : memref<8x128xbf16, #tpu.memory_space<vmem>>, vector<8x128xbf16>
      tpu.vector_store %arg16[%c0_57, %c0_58], %87 {strides = array<i32>} : memref<8x128xbf16, #tpu.memory_space<vmem>>, vector<8x128xbf16>,
    } else {
    }
    %c0 = arith.constant 0 : index
    %c0_2 = arith.constant 0 : index
    %5 = vector.load %arg16[%c0, %c0_2] : memref<8x128xbf16, #tpu.memory_space<vmem>>, vector<8x128xbf16>
    %c0_3 = arith.constant 0 : index
    %c0_4 = arith.constant 0 : index
    %6 = vector.load %arg12[%c0_3, %c0_4] : memref<128x256xbf16, #tpu.memory_space<vmem>>, vector<128x256xbf16>
    %cst = arith.constant dense<0.000000e+00> : vector<8x256xf32>
    %7 = tpu.matmul %5, %6, %cst {dimension_numbers = #tpu.dot_dimension_numbers<[1], [0], [0], [1], [0, 0, 1, 1], [], []>} : vector<8x128xbf16>, vector<128x256xbf16>, vector<8x256xf32> -> vector<8x256xf32>
    %c0_5 = arith.constant 0 : index
    %c0_6 = arith.constant 0 : index
    %8 = vector.load %arg13[%c0_5, %c0_6] : memref<1x256xf32, #tpu.memory_space<vmem>>, vector<1x256xf32>
    %9 = vector.broadcast %8 : vector<1x256xf32> to vector<8x256xf32>
    %10 = arith.addf %7, %9 : vector<8x256xf32>
    %c0_i32_7 = arith.constant 0 : i32
    %11 = arith.cmpi eq, %arg1, %c0_i32_7 : i32
    %12 = arith.extui %11 : i1 to i32
    %c0_i32_8 = arith.constant 0 : i32
    %13 = arith.cmpi ne, %12, %c0_i32_8 : i32
    scf.if %13 {
      %c0_i32_10 = arith.constant 0 : i32
      %17 = arith.cmpi eq, %arg2, %c0_i32_10 : i32
      %18 = arith.extui %17 : i1 to i32
      %c0_i32_11 = arith.constant 0 : i32
      %19 = arith.cmpi ne, %18, %c0_i32_11 : i32
      scf.if %19 {
        %cst_24 = arith.constant 0xFF800000 : f32
        %39 = vector.broadcast %cst_24 : f32 to vector<8x1xf32>
        %c0_25 = arith.constant 0 : index
        %c0_26 = arith.constant 0 : index
        %40 = vector.load %arg17[%c0_25, %c0_26] : memref<8x1xf32, #tpu.memory_space<vmem>>, vector<8x1xf32>
        tpu.vector_store %arg17[%c0_25, %c0_26], %39 {strides = array<i32>} : memref<8x1xf32, #tpu.memory_space<vmem>>, vector<8x1xf32>,
        %cst_27 = arith.constant 0.000000e+00 : f32
        %41 = vector.broadcast %cst_27 : f32 to vector<8x1xf32>
        %c0_28 = arith.constant 0 : index
        %c0_29 = arith.constant 0 : index
        %42 = vector.load %arg18[%c0_28, %c0_29] : memref<8x1xf32, #tpu.memory_space<vmem>>, vector<8x1xf32>
        tpu.vector_store %arg18[%c0_28, %c0_29], %41 {strides = array<i32>} : memref<8x1xf32, #tpu.memory_space<vmem>>, vector<8x1xf32>,
      } else {
      }
      %c0_12 = arith.constant 0 : index
      %c0_13 = arith.constant 0 : index
      %20 = vector.load %arg17[%c0_12, %c0_13] : memref<8x1xf32, #tpu.memory_space<vmem>>, vector<8x1xf32>
      %cst_14 = arith.constant dense<0xFF800000> : vector<8xf32>
      %21 = vector.multi_reduction <maximumf>, %10, %cst_14 [1] : vector<8x256xf32> to vector<8xf32>
      %22 = vector.shape_cast %21 : vector<8xf32> to vector<8x1xf32>
      %23 = arith.maximumf %20, %22 : vector<8x1xf32>
      %c0_15 = arith.constant 0 : index
      %c0_16 = arith.constant 0 : index
      %24 = vector.load %arg18[%c0_15, %c0_16] : memref<8x1xf32, #tpu.memory_space<vmem>>, vector<8x1xf32>
      %25 = arith.subf %20, %23 : vector<8x1xf32>
      %26 = math.exp %25 : vector<8x1xf32>
      %27 = arith.mulf %24, %26 : vector<8x1xf32>
      %28 = vector.broadcast %23 : vector<8x1xf32> to vector<8x256xf32>
      %29 = arith.subf %10, %28 : vector<8x256xf32>
      %30 = math.exp %29 : vector<8x256xf32>
      %cst_17 = arith.constant dense<0.000000e+00> : vector<8xf32>
      %31 = vector.multi_reduction <add>, %30, %cst_17 [1] : vector<8x256xf32> to vector<8xf32>
      %32 = vector.shape_cast %31 : vector<8xf32> to vector<8x1xf32>
      %33 = arith.addf %27, %32 : vector<8x1xf32>
      %c0_18 = arith.constant 0 : index
      %c0_19 = arith.constant 0 : index
      %34 = vector.load %arg18[%c0_18, %c0_19] : memref<8x1xf32, #tpu.memory_space<vmem>>, vector<8x1xf32>
      tpu.vector_store %arg18[%c0_18, %c0_19], %33 {strides = array<i32>} : memref<8x1xf32, #tpu.memory_space<vmem>>, vector<8x1xf32>,
      %c0_20 = arith.constant 0 : index
      %c0_21 = arith.constant 0 : index
      %35 = vector.load %arg17[%c0_20, %c0_21] : memref<8x1xf32, #tpu.memory_space<vmem>>, vector<8x1xf32>
      tpu.vector_store %arg17[%c0_20, %c0_21], %23 {strides = array<i32>} : memref<8x1xf32, #tpu.memory_space<vmem>>, vector<8x1xf32>,
      %c0_i32_22 = arith.constant 0 : i32
      %36 = arith.cmpi eq, %arg2, %c0_i32_22 : i32
      %37 = arith.extui %36 : i1 to i32
      %c0_i32_23 = arith.constant 0 : i32
      %38 = arith.cmpi ne, %37, %c0_i32_23 : i32
      scf.if %38 {
        %c0_24 = arith.constant 0 : index
        %c0_25 = arith.constant 0 : index
        %39 = vector.load %arg17[%c0_24, %c0_25] : memref<8x1xf32, #tpu.memory_space<vmem>>, vector<8x1xf32>
        %c0_26 = arith.constant 0 : index
        %c0_27 = arith.constant 0 : index
        %40 = vector.load %arg18[%c0_26, %c0_27] : memref<8x1xf32, #tpu.memory_space<vmem>>, vector<8x1xf32>
        %41 = math.log %40 : vector<8x1xf32>
        %42 = arith.addf %39, %41 : vector<8x1xf32>
        %c0_28 = arith.constant 0 : index
        %c0_29 = arith.constant 0 : index
        %43 = vector.load %arg19[%c0_28, %c0_29] : memref<8x1xf32, #tpu.memory_space<vmem>>, vector<8x1xf32>
        tpu.vector_store %arg19[%c0_28, %c0_29], %42 {strides = array<i32>} : memref<8x1xf32, #tpu.memory_space<vmem>>, vector<8x1xf32>,
      } else {
      }
    } else {
    }
    %c1_i32 = arith.constant 1 : i32
    %14 = arith.cmpi eq, %arg1, %c1_i32 : i32
    %15 = arith.extui %14 : i1 to i32
    %c0_i32_9 = arith.constant 0 : i32
    %16 = arith.cmpi ne, %15, %c0_i32_9 : i32
    scf.if %16 {
      %c0_10 = arith.constant 0 : index
      %c0_11 = arith.constant 0 : index
      %17 = vector.load %arg19[%c0_10, %c0_11] : memref<8x1xf32, #tpu.memory_space<vmem>>, vector<8x1xf32>
      %18 = vector.broadcast %17 : vector<8x1xf32> to vector<8x256xf32>
      %19 = arith.subf %10, %18 : vector<8x256xf32>
      %20 = vector.shape_cast %19 : vector<8x256xf32> to vector<1x8x256xf32>
      %c0_12 = arith.constant 0 : index
      %c0_13 = arith.constant 0 : index
      %c0_14 = arith.constant 0 : index
      %21 = vector.load %arg14[%c0_12, %c0_13, %c0_14] : memref<1x8x256xf32, #tpu.memory_space<vmem>>, vector<1x8x256xf32>
      tpu.vector_store %arg14[%c0_12, %c0_13, %c0_14], %20 {strides = array<i32>} : memref<1x8x256xf32, #tpu.memory_space<vmem>>, vector<1x8x256xf32>,
    } else {
    }
    return
  }
  func.func @transform_0(%arg0: i32, %arg1: i32, %arg2: i32) -> (i32, i32, i32) {
    %c0_i32 = arith.constant 0 : i32
    %c0_i32_0 = arith.constant 0 : i32
    %c0_i32_1 = arith.constant 0 : i32
    return %arg0, %c0_i32, %c0_i32_0 : i32, i32, i32
  }
  func.func @transform_1(%arg0: i32, %arg1: i32, %arg2: i32) -> (i32, i32, i32) {
    %c0_i32 = arith.constant 0 : i32
    %c0_i32_0 = arith.constant 0 : i32
    %c0_i32_1 = arith.constant 0 : i32
    return %arg0, %c0_i32, %c0_i32_0 : i32, i32, i32
  }
  func.func @transform_2(%arg0: i32, %arg1: i32, %arg2: i32) -> (i32, i32, i32) {
    %c0_i32 = arith.constant 0 : i32
    %c0_i32_0 = arith.constant 0 : i32
    %c0_i32_1 = arith.constant 0 : i32
    return %arg0, %c0_i32, %c0_i32_0 : i32, i32, i32
  }
  func.func @transform_3(%arg0: i32, %arg1: i32, %arg2: i32) -> (i32, i32) {
    %c0_i32 = arith.constant 0 : i32
    %c0_i32_0 = arith.constant 0 : i32
    %c0_i32_1 = arith.constant 0 : i32
    return %c0_i32, %c0_i32_0 : i32, i32
  }
  func.func @transform_4(%arg0: i32, %arg1: i32, %arg2: i32) -> (i32, i32) {
    %c0_i32 = arith.constant 0 : i32
    %c0_i32_0 = arith.constant 0 : i32
    %c0_i32_1 = arith.constant 0 : i32
    return %c0_i32, %c0_i32_0 : i32, i32
  }
  func.func @transform_5(%arg0: i32, %arg1: i32, %arg2: i32) -> (i32, i32) {
    %c0_i32 = arith.constant 0 : i32
    %c0_i32_0 = arith.constant 0 : i32
    %c0_i32_1 = arith.constant 0 : i32
    return %c0_i32, %c0_i32_0 : i32, i32
  }
  func.func @transform_6(%arg0: i32, %arg1: i32, %arg2: i32) -> (i32, i32) {
    %c0_i32 = arith.constant 0 : i32
    %c0_i32_0 = arith.constant 0 : i32
    %c0_i32_1 = arith.constant 0 : i32
    return %c0_i32, %c0_i32_0 : i32, i32
  }
  func.func @transform_7(%arg0: i32, %arg1: i32, %arg2: i32) -> (i32, i32) {
    %c0_i32 = arith.constant 0 : i32
    %c0_i32_0 = arith.constant 0 : i32
    %c0_i32_1 = arith.constant 0 : i32
    return %c0_i32, %c0_i32_0 : i32, i32
  }
  func.func @transform_8(%arg0: i32, %arg1: i32, %arg2: i32) -> (i32, i32) {
    %c0_i32 = arith.constant 0 : i32
    %c0_i32_0 = arith.constant 0 : i32
    %c0_i32_1 = arith.constant 0 : i32
    return %c0_i32, %c0_i32_0 : i32, i32
  }
  func.func @transform_9(%arg0: i32, %arg1: i32, %arg2: i32) -> (i32, i32) {
    %c0_i32 = arith.constant 0 : i32
    %c0_i32_0 = arith.constant 0 : i32
    return %c0_i32, %arg2 : i32, i32
  }
  func.func @transform_10(%arg0: i32, %arg1: i32, %arg2: i32) -> (i32, i32) {
    %c0_i32 = arith.constant 0 : i32
    %c0_i32_0 = arith.constant 0 : i32
    return %c0_i32, %arg2 : i32, i32
  }
  func.func @transform_11(%arg0: i32, %arg1: i32, %arg2: i32) -> (i32, i32, i32) {
    %0 = arith.muli %arg1, %arg2 : i32
    %c0_i32 = arith.constant 0 : i32
    %c0_i32_0 = arith.constant 0 : i32
    return %arg0, %c0_i32, %0 : i32, i32, i32
  }
}

module attributes {stable_mosaic.version = 11 : i64} {
  func.func @decoder_kernel(%arg0: i32, %arg1: i32, %arg2: i32, %arg3: memref<1x8x32xbf16, #tpu.memory_space<vmem>>, %arg4: memref<1x64x8xbf16, #tpu.memory_space<vmem>>, %arg5: memref<1x8x128xbf16, #tpu.memory_space<vmem>>, %arg6: memref<32x128xbf16, #tpu.memory_space<vmem>>, %arg7: memref<1x128xf32, #tpu.memory_space<vmem>>, %arg8: memref<384x256xbf16, #tpu.memory_space<vmem>>, %arg9: memref<1x256xf32, #tpu.memory_space<vmem>>, %arg10: memref<64x128xbf16, #tpu.memory_space<vmem>>, %arg11: memref<1x128xf32, #tpu.memory_space<vmem>>, %arg12: memref<128x256xbf16, #tpu.memory_space<vmem>>, %arg13: memref<1x256xf32, #tpu.memory_space<vmem>>, %arg14: memref<1x8x256xf32, #tpu.memory_space<vmem>>, %arg15: memref<1x10x128xf32, #tpu.memory_space<vmem>>, %arg16: memref<8x128xbf16, #tpu.memory_space<vmem>>, %arg17: memref<8x1xf32, #tpu.memory_space<vmem>>, %arg18: memref<8x1xf32, #tpu.memory_space<vmem>>, %arg19: memref<8x1xf32, #tpu.memory_space<vmem>>) attributes {dimension_semantics = [#tpu.dimension_semantics<parallel>, #tpu.dimension_semantics<arbitrary>, #tpu.dimension_semantics<arbitrary>], iteration_bounds = array<i64: 2, 2, 1>, scalar_prefetch = 0 : i64, scratch_operands = 5 : i64, tpu.core_type = #tpu.core_type<tc>, window_params = [{transform_indices = @transform_0, window_bounds = array<i64: 1, 8, 32>}, {transform_indices = @transform_1, window_bounds = array<i64: 1, 64, 8>}, {transform_indices = @transform_2, window_bounds = array<i64: 1, 8, 128>}, {pipeline_mode = #tpu.pipeline_mode<synchronous>, transform_indices = @transform_3, window_bounds = array<i64: 32, 128>}, {pipeline_mode = #tpu.pipeline_mode<synchronous>, transform_indices = @transform_4, window_bounds = array<i64: 1, 128>}, {pipeline_mode = #tpu.pipeline_mode<synchronous>, transform_indices = @transform_5, window_bounds = array<i64: 384, 256>}, {pipeline_mode = #tpu.pipeline_mode<synchronous>, transform_indices = @transform_6, window_bounds = array<i64: 1, 256>}, {pipeline_mode = #tpu.pipeline_mode<synchronous>, transform_indices = @transform_7, window_bounds = array<i64: 64, 128>}, {pipeline_mode = #tpu.pipeline_mode<synchronous>, transform_indices = @transform_8, window_bounds = array<i64: 1, 128>}, {transform_indices = @transform_9, window_bounds = array<i64: 128, 256>}, {transform_indices = @transform_10, window_bounds = array<i64: 1, 256>}, {transform_indices = @transform_11, window_bounds = array<i64: 1, 8, 256>}]} {
    %c0_i32 = arith.constant 0 : i32
    %0 = arith.cmpi eq, %arg1, %c0_i32 : i32
    %c0_i32_0 = arith.constant 0 : i32
    %1 = arith.cmpi eq, %arg2, %c0_i32_0 : i32
    %2 = arith.andi %0, %1 : i1
    %3 = arith.extui %2 : i1 to i32
    %c0_i32_1 = arith.constant 0 : i32
    %4 = arith.cmpi ne, %3, %c0_i32_1 : i32
    scf.if %4 {
      %c0_10 = arith.constant 0 : index
      %c0_11 = arith.constant 0 : index
      %c0_12 = arith.constant 0 : index
      %17 = vector.load %arg3[%c0_10, %c0_11, %c0_12] : memref<1x8x32xbf16, #tpu.memory_space<vmem>>, vector<1x8x32xbf16>
      %18 = vector.shape_cast %17 : vector<1x8x32xbf16> to vector<8x32xbf16>
      %c0_13 = arith.constant 0 : index
      %c0_14 = arith.constant 0 : index
      %19 = vector.load %arg6[%c0_13, %c0_14] : memref<32x128xbf16, #tpu.memory_space<vmem>>, vector<32x128xbf16>
      %cst_15 = arith.constant dense<0.000000e+00> : vector<8x128xf32>
      %20 = tpu.matmul %18, %19, %cst_15 {dimension_numbers = #tpu.dot_dimension_numbers<[1], [0], [0], [1], [0, 0, 1, 1], [], []>} : vector<8x32xbf16>, vector<32x128xbf16>, vector<8x128xf32> -> vector<8x128xf32>
      %c0_16 = arith.constant 0 : index
      %c0_17 = arith.constant 0 : index
      %21 = vector.load %arg7[%c0_16, %c0_17] : memref<1x128xf32, #tpu.memory_space<vmem>>, vector<1x128xf32>
      %22 = vector.broadcast %21 : vector<1x128xf32> to vector<8x128xf32>
      %23 = arith.addf %20, %22 : vector<8x128xf32>
      %cst_18 = arith.constant 0.000000e+00 : f32
      %24 = vector.broadcast %cst_18 : f32 to vector<1x1x128xf32>
      %c0_19 = arith.constant 0 : index
      %c0_20 = arith.constant 0 : index
      %c0_21 = arith.constant 0 : index
      %25 = vector.load %arg15[%c0_19, %c0_20, %c0_21] : memref<1x10x128xf32, #tpu.memory_space<vmem>>, vector<1x1x128xf32>
      tpu.vector_store %arg15[%c0_19, %c0_20, %c0_21], %24 {strides = array<i32>} : memref<1x10x128xf32, #tpu.memory_space<vmem>>, vector<1x1x128xf32>,
      %c0_22 = arith.constant 0 : index
      %c9 = arith.constant 9 : index
      %c0_23 = arith.constant 0 : index
      %26 = vector.load %arg15[%c0_22, %c9, %c0_23] : memref<1x10x128xf32, #tpu.memory_space<vmem>>, vector<1x1x128xf32>
      tpu.vector_store %arg15[%c0_22, %c9, %c0_23], %24 {strides = array<i32>} : memref<1x10x128xf32, #tpu.memory_space<vmem>>, vector<1x1x128xf32>,
      %27 = vector.shape_cast %23 : vector<8x128xf32> to vector<1x8x128xf32>
      %c0_24 = arith.constant 0 : index
      %c1 = arith.constant 1 : index
      %c0_25 = arith.constant 0 : index
      %28 = vector.load %arg15[%c0_24, %c1, %c0_25] : memref<1x10x128xf32, #tpu.memory_space<vmem>>, vector<1x8x128xf32>
      tpu.vector_store %arg15[%c0_24, %c1, %c0_25], %27 {strides = array<i32>} : memref<1x10x128xf32, #tpu.memory_space<vmem>>, vector<1x8x128xf32>,
      %c0_26 = arith.constant 0 : index
      %c0_27 = arith.constant 0 : index
      %c0_28 = arith.constant 0 : index
      %29 = vector.load %arg15[%c0_26, %c0_27, %c0_28] : memref<1x10x128xf32, #tpu.memory_space<vmem>>, vector<1x8x128xf32>
      %30 = vector.shape_cast %29 : vector<1x8x128xf32> to vector<8x128xf32>
      %c0_29 = arith.constant 0 : index
      %c1_30 = arith.constant 1 : index
      %c0_31 = arith.constant 0 : index
      %31 = vector.load %arg15[%c0_29, %c1_30, %c0_31] : memref<1x10x128xf32, #tpu.memory_space<vmem>>, vector<1x8x128xf32>
      %32 = vector.shape_cast %31 : vector<1x8x128xf32> to vector<8x128xf32>
      %c0_32 = arith.constant 0 : index
      %c2 = arith.constant 2 : index
      %c0_33 = arith.constant 0 : index
      %33 = vector.load %arg15[%c0_32, %c2, %c0_33] : memref<1x10x128xf32, #tpu.memory_space<vmem>>, vector<1x8x128xf32>
      %34 = vector.shape_cast %33 : vector<1x8x128xf32> to vector<8x128xf32>
      %35 = tpu.concatenate %30, %32, %34 in 1 : vector<8x128xf32>, vector<8x128xf32>, vector<8x128xf32> -> vector<8x384xf32>
      %36 = arith.truncf %35 : vector<8x384xf32> to vector<8x384xbf16>
      %c0_34 = arith.constant 0 : index
      %c0_35 = arith.constant 0 : index
      %37 = vector.load %arg8[%c0_34, %c0_35] : memref<384x256xbf16, #tpu.memory_space<vmem>>, vector<384x256xbf16>
      %cst_36 = arith.constant dense<0.000000e+00> : vector<8x256xf32>
      %38 = tpu.matmul %36, %37, %cst_36 {dimension_numbers = #tpu.dot_dimension_numbers<[1], [0], [0], [1], [0, 0, 1, 1], [], []>} : vector<8x384xbf16>, vector<384x256xbf16>, vector<8x256xf32> -> vector<8x256xf32>
      %c0_37 = arith.constant 0 : index
      %c0_38 = arith.constant 0 : index
      %39 = vector.load %arg9[%c0_37, %c0_38] : memref<1x256xf32, #tpu.memory_space<vmem>>, vector<1x256xf32>
      %40 = vector.broadcast %39 : vector<1x256xf32> to vector<8x256xf32>
      %41 = arith.addf %38, %40 : vector<8x256xf32>
      %42 = vector.extract_strided_slice %41 {offsets = [0, 0], sizes = [8, 128], strides = [1, 1]} : vector<8x256xf32> to vector<8x128xf32>
      %43 = vector.extract_strided_slice %41 {offsets = [0, 128], sizes = [8, 128], strides = [1, 1]} : vector<8x256xf32> to vector<8x128xf32>
      %44 = arith.negf %43 : vector<8x128xf32>
      %45 = math.exp %44 : vector<8x128xf32>
      %cst_39 = arith.constant 1.000000e+00 : f32
      %46 = vector.broadcast %cst_39 : f32 to vector<8x128xf32>
      %47 = arith.addf %46, %45 : vector<8x128xf32>
      %48 = arith.divf %46, %47 : vector<8x128xf32>
      %49 = arith.mulf %42, %48 : vector<8x128xf32>
      %50 = vector.extract_strided_slice %49 {offsets = [0, 0], sizes = [8, 64], strides = [1, 1]} : vector<8x128xf32> to vector<8x64xf32>
      %51 = vector.extract_strided_slice %49 {offsets = [0, 64], sizes = [8, 64], strides = [1, 1]} : vector<8x128xf32> to vector<8x64xf32>
      %cst_40 = arith.constant dense<0xFF800000> : vector<8xf32>
      %52 = vector.multi_reduction <maximumf>, %51, %cst_40 [1] : vector<8x64xf32> to vector<8xf32>
      %53 = vector.shape_cast %52 : vector<8xf32> to vector<8x1xf32>
      %54 = vector.broadcast %53 : vector<8x1xf32> to vector<8x64xf32>
      %55 = arith.subf %51, %54 : vector<8x64xf32>
      %56 = math.exp %55 : vector<8x64xf32>
      %cst_41 = arith.constant dense<0.000000e+00> : vector<8xf32>
      %57 = vector.multi_reduction <add>, %56, %cst_41 [1] : vector<8x64xf32> to vector<8xf32>
      %58 = vector.shape_cast %57 : vector<8xf32> to vector<8x1xf32>
      %59 = tpu.reciprocal %58 {approx = true} : vector<8x1xf32> -> vector<8x1xf32>
      %60 = vector.broadcast %59 : vector<8x1xf32> to vector<8x64xf32>
      %61 = arith.mulf %56, %60 : vector<8x64xf32>
      %62 = arith.mulf %50, %61 : vector<8x64xf32>
      %63 = arith.truncf %62 : vector<8x64xf32> to vector<8x64xbf16>
      %c0_42 = arith.constant 0 : index
      %c0_43 = arith.constant 0 : index
      %64 = vector.load %arg10[%c0_42, %c0_43] : memref<64x128xbf16, #tpu.memory_space<vmem>>, vector<64x128xbf16>
      %cst_44 = arith.constant dense<0.000000e+00> : vector<8x128xf32>
      %65 = tpu.matmul %63, %64, %cst_44 {dimension_numbers = #tpu.dot_dimension_numbers<[1], [0], [0], [1], [0, 0, 1, 1], [], []>} : vector<8x64xbf16>, vector<64x128xbf16>, vector<8x128xf32> -> vector<8x128xf32>
      %c0_45 = arith.constant 0 : index
      %c0_46 = arith.constant 0 : index
      %66 = vector.load %arg11[%c0_45, %c0_46] : memref<1x128xf32, #tpu.memory_space<vmem>>, vector<1x128xf32>
      %67 = vector.broadcast %66 : vector<1x128xf32> to vector<8x128xf32>
      %68 = arith.addf %65, %67 : vector<8x128xf32>
      %69 = vector.shape_cast %62 : vector<8x64xf32> to vector<1x8x64xf32>
      %70 = arith.truncf %69 : vector<1x8x64xf32> to vector<1x8x64xbf16>
      %c0_47 = arith.constant 0 : index
      %c0_48 = arith.constant 0 : index
      %c0_49 = arith.constant 0 : index
      %71 = vector.load %arg4[%c0_47, %c0_48, %c0_49] : memref<1x64x8xbf16, #tpu.memory_space<vmem>>, vector<1x64x8xbf16>
      "tpu.trace_start"() <{level = 10 : i32, message = "bqd,bdk->bqk"}> : () -> ()
      %cst_50 = arith.constant dense<0.000000e+00> : vector<1x8x8xf32>
      %72 = tpu.matmul %70, %71, %cst_50 {dimension_numbers = #tpu.dot_dimension_numbers<[2], [1], [1], [2], [0, 0, 0, 1, 1, 2], [0], [0]>} : vector<1x8x64xbf16>, vector<1x64x8xbf16>, vector<1x8x8xf32> -> vector<1x8x8xf32>
      "tpu.trace_stop"() : () -> ()
      %cst_51 = arith.constant dense<0xFF800000> : vector<1x8xf32>
      %73 = vector.multi_reduction <maximumf>, %72, %cst_51 [2] : vector<1x8x8xf32> to vector<1x8xf32>
      %74 = vector.shape_cast %73 : vector<1x8xf32> to vector<1x8x1xf32>
      %75 = vector.broadcast %74 : vector<1x8x1xf32> to vector<1x8x8xf32>
      %76 = arith.subf %72, %75 : vector<1x8x8xf32>
      %77 = math.exp %76 : vector<1x8x8xf32>
      %cst_52 = arith.constant dense<0.000000e+00> : vector<1x8xf32>
      %78 = vector.multi_reduction <add>, %77, %cst_52 [2] : vector<1x8x8xf32> to vector<1x8xf32>
      %79 = vector.shape_cast %78 : vector<1x8xf32> to vector<1x8x1xf32>
      %80 = vector.broadcast %79 : vector<1x8x1xf32> to vector<1x8x8xf32>
      %81 = arith.divf %77, %80 : vector<1x8x8xf32>
      %82 = arith.truncf %81 : vector<1x8x8xf32> to vector<1x8x8xbf16>
      %c0_53 = arith.constant 0 : index
      %c0_54 = arith.constant 0 : index
      %c0_55 = arith.constant 0 : index
      %83 = vector.load %arg5[%c0_53, %c0_54, %c0_55] : memref<1x8x128xbf16, #tpu.memory_space<vmem>>, vector<1x8x128xbf16>
      "tpu.trace_start"() <{level = 10 : i32, message = "bqk,bkd->bqd"}> : () -> ()
      %cst_56 = arith.constant dense<0.000000e+00> : vector<1x8x128xf32>
      %84 = tpu.matmul %82, %83, %cst_56 {dimension_numbers = #tpu.dot_dimension_numbers<[2], [1], [1], [2], [0, 0, 0, 1, 1, 2], [0], [0]>} : vector<1x8x8xbf16>, vector<1x8x128xbf16>, vector<1x8x128xf32> -> vector<1x8x128xf32>
      "tpu.trace_stop"() : () -> ()
      %85 = vector.shape_cast %84 : vector<1x8x128xf32> to vector<8x128xf32>
      %86 = arith.addf %68, %85 : vector<8x128xf32>
      %87 = arith.truncf %86 : vector<8x128xf32> to vector<8x128xbf16>
      %c0_57 = arith.constant 0 : index
      %c0_58 = arith.constant 0 : index
      %88 = vector.load %arg16[%c0_57, %c0_58] : memref<8x128xbf16, #tpu.memory_space<vmem>>, vector<8x128xbf16>
      tpu.vector_store %arg16[%c0_57, %c0_58], %87 {strides = array<i32>} : memref<8x128xbf16, #tpu.memory_space<vmem>>, vector<8x128xbf16>,
    } else {
    }
    %c0 = arith.constant 0 : index
    %c0_2 = arith.constant 0 : index
    %5 = vector.load %arg16[%c0, %c0_2] : memref<8x128xbf16, #tpu.memory_space<vmem>>, vector<8x128xbf16>
    %c0_3 = arith.constant 0 : index
    %c0_4 = arith.constant 0 : index
    %6 = vector.load %arg12[%c0_3, %c0_4] : memref<128x256xbf16, #tpu.memory_space<vmem>>, vector<128x256xbf16>
    %cst = arith.constant dense<0.000000e+00> : vector<8x256xf32>
    %7 = tpu.matmul %5, %6, %cst {dimension_numbers = #tpu.dot_dimension_numbers<[1], [0], [0], [1], [0, 0, 1, 1], [], []>} : vector<8x128xbf16>, vector<128x256xbf16>, vector<8x256xf32> -> vector<8x256xf32>
    %c0_5 = arith.constant 0 : index
    %c0_6 = arith.constant 0 : index
    %8 = vector.load %arg13[%c0_5, %c0_6] : memref<1x256xf32, #tpu.memory_space<vmem>>, vector<1x256xf32>
    %9 = vector.broadcast %8 : vector<1x256xf32> to vector<8x256xf32>
    %10 = arith.addf %7, %9 : vector<8x256xf32>
    %c0_i32_7 = arith.constant 0 : i32
    %11 = arith.cmpi eq, %arg1, %c0_i32_7 : i32
    %12 = arith.extui %11 : i1 to i32
    %c0_i32_8 = arith.constant 0 : i32
    %13 = arith.cmpi ne, %12, %c0_i32_8 : i32
    scf.if %13 {
      %c0_i32_10 = arith.constant 0 : i32
      %17 = arith.cmpi eq, %arg2, %c0_i32_10 : i32
      %18 = arith.extui %17 : i1 to i32
      %c0_i32_11 = arith.constant 0 : i32
      %19 = arith.cmpi ne, %18, %c0_i32_11 : i32
      scf.if %19 {
        %cst_24 = arith.constant 0xFF800000 : f32
        %39 = vector.broadcast %cst_24 : f32 to vector<8x1xf32>
        %c0_25 = arith.constant 0 : index
        %c0_26 = arith.constant 0 : index
        %40 = vector.load %arg17[%c0_25, %c0_26] : memref<8x1xf32, #tpu.memory_space<vmem>>, vector<8x1xf32>
        tpu.vector_store %arg17[%c0_25, %c0_26], %39 {strides = array<i32>} : memref<8x1xf32, #tpu.memory_space<vmem>>, vector<8x1xf32>,
        %cst_27 = arith.constant 0.000000e+00 : f32
        %41 = vector.broadcast %cst_27 : f32 to vector<8x1xf32>
        %c0_28 = arith.constant 0 : index
        %c0_29 = arith.constant 0 : index
        %42 = vector.load %arg18[%c0_28, %c0_29] : memref<8x1xf32, #tpu.memory_space<vmem>>, vector<8x1xf32>
        tpu.vector_store %arg18[%c0_28, %c0_29], %41 {strides = array<i32>} : memref<8x1xf32, #tpu.memory_space<vmem>>, vector<8x1xf32>,
      } else {
      }
      %c0_12 = arith.constant 0 : index
      %c0_13 = arith.constant 0 : index
      %20 = vector.load %arg17[%c0_12, %c0_13] : memref<8x1xf32, #tpu.memory_space<vmem>>, vector<8x1xf32>
      %cst_14 = arith.constant dense<0xFF800000> : vector<8xf32>
      %21 = vector.multi_reduction <maximumf>, %10, %cst_14 [1] : vector<8x256xf32> to vector<8xf32>
      %22 = vector.shape_cast %21 : vector<8xf32> to vector<8x1xf32>
      %23 = arith.maximumf %20, %22 : vector<8x1xf32>
      %c0_15 = arith.constant 0 : index
      %c0_16 = arith.constant 0 : index
      %24 = vector.load %arg18[%c0_15, %c0_16] : memref<8x1xf32, #tpu.memory_space<vmem>>, vector<8x1xf32>
      %25 = arith.subf %20, %23 : vector<8x1xf32>
      %26 = math.exp %25 : vector<8x1xf32>
      %27 = arith.mulf %24, %26 : vector<8x1xf32>
      %28 = vector.broadcast %23 : vector<8x1xf32> to vector<8x256xf32>
      %29 = arith.subf %10, %28 : vector<8x256xf32>
      %30 = math.exp %29 : vector<8x256xf32>
      %cst_17 = arith.constant dense<0.000000e+00> : vector<8xf32>
      %31 = vector.multi_reduction <add>, %30, %cst_17 [1] : vector<8x256xf32> to vector<8xf32>
      %32 = vector.shape_cast %31 : vector<8xf32> to vector<8x1xf32>
      %33 = arith.addf %27, %32 : vector<8x1xf32>
      %c0_18 = arith.constant 0 : index
      %c0_19 = arith.constant 0 : index
      %34 = vector.load %arg18[%c0_18, %c0_19] : memref<8x1xf32, #tpu.memory_space<vmem>>, vector<8x1xf32>
      tpu.vector_store %arg18[%c0_18, %c0_19], %33 {strides = array<i32>} : memref<8x1xf32, #tpu.memory_space<vmem>>, vector<8x1xf32>,
      %c0_20 = arith.constant 0 : index
      %c0_21 = arith.constant 0 : index
      %35 = vector.load %arg17[%c0_20, %c0_21] : memref<8x1xf32, #tpu.memory_space<vmem>>, vector<8x1xf32>
      tpu.vector_store %arg17[%c0_20, %c0_21], %23 {strides = array<i32>} : memref<8x1xf32, #tpu.memory_space<vmem>>, vector<8x1xf32>,
      %c0_i32_22 = arith.constant 0 : i32
      %36 = arith.cmpi eq, %arg2, %c0_i32_22 : i32
      %37 = arith.extui %36 : i1 to i32
      %c0_i32_23 = arith.constant 0 : i32
      %38 = arith.cmpi ne, %37, %c0_i32_23 : i32
      scf.if %38 {
        %c0_24 = arith.constant 0 : index
        %c0_25 = arith.constant 0 : index
        %39 = vector.load %arg17[%c0_24, %c0_25] : memref<8x1xf32, #tpu.memory_space<vmem>>, vector<8x1xf32>
        %c0_26 = arith.constant 0 : index
        %c0_27 = arith.constant 0 : index
        %40 = vector.load %arg18[%c0_26, %c0_27] : memref<8x1xf32, #tpu.memory_space<vmem>>, vector<8x1xf32>
        %41 = math.log %40 : vector<8x1xf32>
        %42 = arith.addf %39, %41 : vector<8x1xf32>
        %c0_28 = arith.constant 0 : index
        %c0_29 = arith.constant 0 : index
        %43 = vector.load %arg19[%c0_28, %c0_29] : memref<8x1xf32, #tpu.memory_space<vmem>>, vector<8x1xf32>
        tpu.vector_store %arg19[%c0_28, %c0_29], %42 {strides = array<i32>} : memref<8x1xf32, #tpu.memory_space<vmem>>, vector<8x1xf32>,
      } else {
      }
    } else {
    }
    %c1_i32 = arith.constant 1 : i32
    %14 = arith.cmpi eq, %arg1, %c1_i32 : i32
    %15 = arith.extui %14 : i1 to i32
    %c0_i32_9 = arith.constant 0 : i32
    %16 = arith.cmpi ne, %15, %c0_i32_9 : i32
    scf.if %16 {
      %c0_10 = arith.constant 0 : index
      %c0_11 = arith.constant 0 : index
      %17 = vector.load %arg19[%c0_10, %c0_11] : memref<8x1xf32, #tpu.memory_space<vmem>>, vector<8x1xf32>
      %18 = vector.broadcast %17 : vector<8x1xf32> to vector<8x256xf32>
      %19 = arith.subf %10, %18 : vector<8x256xf32>
      %20 = vector.shape_cast %19 : vector<8x256xf32> to vector<1x8x256xf32>
      %c0_12 = arith.constant 0 : index
      %c0_13 = arith.constant 0 : index
      %c0_14 = arith.constant 0 : index
      %21 = vector.load %arg14[%c0_12, %c0_13, %c0_14] : memref<1x8x256xf32, #tpu.memory_space<vmem>>, vector<1x8x256xf32>
      tpu.vector_store %arg14[%c0_12, %c0_13, %c0_14], %20 {strides = array<i32>} : memref<1x8x256xf32, #tpu.memory_space<vmem>>, vector<1x8x256xf32>,
    } else {
    }
    return
  }
  func.func @transform_0(%arg0: i32, %arg1: i32, %arg2: i32) -> (i32, i32, i32) {
    %c0_i32 = arith.constant 0 : i32
    %c0_i32_0 = arith.constant 0 : i32
    %c0_i32_1 = arith.constant 0 : i32
    return %arg0, %c0_i32, %c0_i32_0 : i32, i32, i32
  }
  func.func @transform_1(%arg0: i32, %arg1: i32, %arg2: i32) -> (i32, i32, i32) {
    %c0_i32 = arith.constant 0 : i32
    %c0_i32_0 = arith.constant 0 : i32
    %c0_i32_1 = arith.constant 0 : i32
    return %arg0, %c0_i32, %c0_i32_0 : i32, i32, i32
  }
  func.func @transform_2(%arg0: i32, %arg1: i32, %arg2: i32) -> (i32, i32, i32) {
    %c0_i32 = arith.constant 0 : i32
    %c0_i32_0 = arith.constant 0 : i32
    %c0_i32_1 = arith.constant 0 : i32
    return %arg0, %c0_i32, %c0_i32_0 : i32, i32, i32
  }
  func.func @transform_3(%arg0: i32, %arg1: i32, %arg2: i32) -> (i32, i32) {
    %c0_i32 = arith.constant 0 : i32
    %c0_i32_0 = arith.constant 0 : i32
    %c0_i32_1 = arith.constant 0 : i32
    return %c0_i32, %c0_i32_0 : i32, i32
  }
  func.func @transform_4(%arg0: i32, %arg1: i32, %arg2: i32) -> (i32, i32) {
    %c0_i32 = arith.constant 0 : i32
    %c0_i32_0 = arith.constant 0 : i32
    %c0_i32_1 = arith.constant 0 : i32
    return %c0_i32, %c0_i32_0 : i32, i32
  }
  func.func @transform_5(%arg0: i32, %arg1: i32, %arg2: i32) -> (i32, i32) {
    %c0_i32 = arith.constant 0 : i32
    %c0_i32_0 = arith.constant 0 : i32
    %c0_i32_1 = arith.constant 0 : i32
    return %c0_i32, %c0_i32_0 : i32, i32
  }
  func.func @transform_6(%arg0: i32, %arg1: i32, %arg2: i32) -> (i32, i32) {
    %c0_i32 = arith.constant 0 : i32
    %c0_i32_0 = arith.constant 0 : i32
    %c0_i32_1 = arith.constant 0 : i32
    return %c0_i32, %c0_i32_0 : i32, i32
  }
  func.func @transform_7(%arg0: i32, %arg1: i32, %arg2: i32) -> (i32, i32) {
    %c0_i32 = arith.constant 0 : i32
    %c0_i32_0 = arith.constant 0 : i32
    %c0_i32_1 = arith.constant 0 : i32
    return %c0_i32, %c0_i32_0 : i32, i32
  }
  func.func @transform_8(%arg0: i32, %arg1: i32, %arg2: i32) -> (i32, i32) {
    %c0_i32 = arith.constant 0 : i32
    %c0_i32_0 = arith.constant 0 : i32
    %c0_i32_1 = arith.constant 0 : i32
    return %c0_i32, %c0_i32_0 : i32, i32
  }
  func.func @transform_9(%arg0: i32, %arg1: i32, %arg2: i32) -> (i32, i32) {
    %c0_i32 = arith.constant 0 : i32
    %c0_i32_0 = arith.constant 0 : i32
    return %c0_i32, %arg2 : i32, i32
  }
  func.func @transform_10(%arg0: i32, %arg1: i32, %arg2: i32) -> (i32, i32) {
    %c0_i32 = arith.constant 0 : i32
    %c0_i32_0 = arith.constant 0 : i32
    return %c0_i32, %arg2 : i32, i32
  }
  func.func @transform_11(%arg0: i32, %arg1: i32, %arg2: i32) -> (i32, i32, i32) {
    %0 = arith.muli %arg1, %arg2 : i32
    %c0_i32 = arith.constant 0 : i32
    %c0_i32_0 = arith.constant 0 : i32
    return %arg0, %c0_i32, %0 : i32, i32, i32
  }
}

</mosaic_0001>

<bundles_post_ra>
// kernel: tpu_custom_call.1
= control target key start
LH: loop header
LB: loop body
LE: loop exit
PB: predicated region body
PF: predicated region fallthrough
CT: control target
= control target key end

     0   :  { %s3309_s0 = inlined_call_operand.hbm [shape: bf16[2,8,32], index: 0, kind: input, shape index: {}]   ;;  %s3310_s1 = inlined_call_operand.hbm [shape: bf16[2,64,8], index: 1, kind: input, shape index: {}]   ;;  %s3311_s2 = inlined_call_operand.hbm [shape: bf16[2,8,128], index: 2, kind: input, shape index: {}]   ;;  %s3312_s3 = inlined_call_operand.hbm [shape: bf16[32,128], index: 3, kind: input, shape index: {}]   ;;  %s3313_s4 = inlined_call_operand.hbm [shape: f32[1,128], index: 4, kind: input, shape index: {}]   ;;  %s3314_s5 = inlined_call_operand.hbm [shape: bf16[384,256], index: 5, kind: input, shape index: {}]   ;;  %s3315_s6 = inlined_call_operand.hbm [shape: f32[1,256], index: 6, kind: input, shape index: {}]   ;;  %s3316_s7 = inlined_call_operand.hbm [shape: bf16[64,128], index: 7, kind: input, shape index: {}]   ;;  %s3317_s8 = inlined_call_operand.hbm [shape: f32[1,128], index: 8, kind: input, shape index: {}]   ;;  %s3318_s9 = inlined_call_operand.hbm [shape: bf16[128,256], index: 9, kind: input, shape index: {}]   ;;  %s3319_s10 = inlined_call_operand.hbm [shape: f32[1,256], index: 10, kind: input, shape index: {}]   ;;  %s3320_s11 = inlined_call_operand.hbm [shape: f32[2,8,256], index: 11, kind: output, shape index: {}]  }
   0x1   :  { %3348 = sst [smem:[#allocation43_spill]] %s3309_s0 }
   0x2   :  { %3349 = sst [smem:[#allocation44_spill]] %s3310_s1 }
   0x3   :  { %3350 = sst [smem:[#allocation45_spill]] %s3311_s2 }
   0x4   :  { %3351 = sst [smem:[#allocation46_spill]] %s3312_s3 }
   0x5   :  { %3352 = sst [smem:[#allocation47_spill]] %s3314_s5 }
   0x6   :  { %3353 = sst [smem:[#allocation48_spill]] %s3316_s7 }
   0x7   :  { %3354 = sst [smem:[#allocation49_spill]] %s3318_s9 }
   0x8   :  { %3355 = sst [smem:[#allocation50_spill]] %s3320_s11 }
   0x9   :  { %16 = vsyncpa [#allocation8], 0 }
   0xa   :  { %18 = vsyncpa [#allocation8 + $0x1], 0 }
   0xb   :  { %19 = vsyncpa [#allocation11], 0 }
   0xc   :  { %21 = vsyncpa [#allocation11 + $0x1], 0 }
   0xd   :  { %22 = vsyncpa [#allocation14], 0 }
   0xe   :  { %23 = vsyncpa [#allocation17], 0 }
   0xf   :  { %24 = vsyncpa [#allocation20], 0 }
  0x10   :  { %25 = vsyncpa [#allocation23], 0 }
  0x11   :  { %26 = vsyncpa [#allocation9], 0 }
  0x12   :  { %28 = vsyncpa [#allocation9 + $0x1], 0  ;;  %s2794_s17 = smov 0   ;;  %s2796_s18 = smov 0  }
  0x13   :  { %s2798_s19 = smov 0   ;;  %s2800_s20 = smov 0  }
  0x14   :  { %s2802_s21 = smov 0   ;;  %s2804_s22 = smov 0  }
  0x15   :  { %s2806_s23 = smov 0   ;;  %s2808_s24 = smov 0  }
  0x16 LB: > { %3356 = sst [smem:[#allocation33_spill]] %s2679_s17  ;;  %s2835_s25 = sadd.s32 4294967295, %s2707_s24   ;;  %s2707_s24 = sphi %s2808_s24, %s34_s24   ;;  %s2703_s23 = sphi %s2806_s23, %s3420_s23   ;;  %s2699_s22 = sphi %s2804_s22, %s3415_s22   ;;  %s2695_s21 = sphi %s2802_s21, %s3419_s21   ;;  %s2691_s20 = sphi %s2800_s20, %s3414_s20   ;;  %s2687_s19 = sphi %s2798_s19, %s3413_s19   ;;  %s2683_s18 = sphi %s2796_s18, %s3418_s18   ;;  %s2679_s17 = sphi %s2794_s17, %s3417_s17  }
  0x17   : > { %3357 = sst [smem:[#allocation34_spill]] %s2687_s19  ;;  %p1781_p0 = scmp.ge.s32.totalorder %s2707_s24, 1 }
  0x18   : > { %3358 = sst [smem:[#allocation35_spill]] %s2691_s20  ;;  %p3322_p1 = scmp.eq.s32.totalorder %s2835_s25, 0 }
  0x19   : > { %3359 = sst [smem:[#allocation36_spill]] %s2695_s21  ;;  %p344_p2 = scmp.lt.s32.totalorder %s2707_s24, 5 }
  0x1a   : > { %3360 = sst [smem:[#allocation37_spill]] %s2699_s22  ;;  %s2709_s27 = smov [#allocation13]  }
  0x1b   : > { %p2840_p3 = pnand %p1781_p0, %p344_p2  ;;  %s356_s28 = sshll.u32 %s2709_s27, 4  ;;  %s357_s28 = int_to_ptr.vmem [resolvable:$true] %s356_s28 }
  0x1c   : > { %s2710_s30 = smov [#allocation16]   ;;  %s3364_s3 = sld [smem:[#allocation46_spill]] }
  0x1d   : > { %s3361_s26 = scalar_select %p2840_p3, 1, 0 }
  0x1e   : > { %p2005_p4 = pneg %p2840_p3  ;;  %s380_s12 = sshll.u32 %s2710_s30, 4  ;;  %s2852_s12 = int_to_ptr.vmem [resolvable:$true] %s380_s12 }
  0x1f   : > { %3362 = sst [smem:[#allocation38_spill]] %s3361_s26 }
  0x20   : > { %p2848_p5 = pnand %p2005_p4, %p3322_p1 }
  0x22   : > { %s3363_s29 = scalar_select %p2848_p5, 1, 0 }
  0x23   : > { %s2275_s15 = scalar_lea.hbm %s3364_s3, 256  ;;  %p2862_p7 = pneg %p2848_p5 }
  0x24   : > { %p2276_p6 = scmp.ne.s32.totalorder %s3364_s3, %s2275_s15  ;;  %p2282_p10 = scmp.lt.u32.totalorder %s2275_s15, %s3364_s3 }
  0x25   : > { %s3365_s27 = scalar_select %p2862_p7, 1, 0 }
  0x26   : > { %p2278_p8 = pnand %p2862_p7, %p2276_p6 }
  0x28   : > { %p2279_p9 = pneg %p2278_p8 }
  0x2a   : > { %p2284_p11 = pnand %p2282_p10, %p2279_p9 }
  0x2c   : > { %2287 = shalt.err (!%p2284_p11)
}
  0x2d   : > { %s2288_s13 = scalar_lea.vmem %s357_s28, 256  ;;  %p2296_p2 = scmp.lt.s32.totalorder %s357_s28, %s357_s28 }
  0x2e   : > { %p2289_p12 = scmp.ne.s32.totalorder %s357_s28, %s2288_s13  ;;  %p2297_p4 = scmp.lt.s32.totalorder %s2288_s13, %s2288_s13 }
  0x30   : > { %p2291_p13 = pnand %p2289_p12, %p2862_p7  ;;  %p2298_p1 = por %p2297_p4, %p2296_p2 }
  0x32   : > { %p2292_p0 = pneg %p2291_p13 }
  0x34   : > { %p2299_p3 = pnand %p2298_p1, %p2292_p0 }
  0x36   : > { %2302 = shalt.err (!%p2299_p3)
}
  0x37   : > { %s3327_s11 = smov 64   ;;  %s3329_s14 = smov 4  }
  0x38   : > { %2008 = dma.hbm_to_vmem [thread:$0]  (!%p2848_p5), %s3364_s3, 256, %s357_s28, [#allocation14], %s3327_s11, %s3327_s11, %s3329_s14  }
  0x39   : > { %s3366_s5 = sld [smem:[#allocation47_spill]] }
  0x3f   : > { %s2303_s20 = scalar_lea.hbm %s3366_s5, 6144 }
  0x40   : > { %p2304_p1 = scmp.ne.s32.totalorder %s3366_s5, %s2303_s20  ;;  %p2310_p8 = scmp.lt.u32.totalorder %s2303_s20, %s3366_s5 }
  0x42   : > { %p2306_p3 = pnand %p2304_p1, %p2862_p7 }
  0x44   : > { %p2307_p6 = pneg %p2306_p3 }
  0x46   : > { %p2312_p9 = pnand %p2310_p8, %p2307_p6 }
  0x48   : > { %2315 = shalt.err (!%p2312_p9)
}
  0x49   : > { %s2316_s28 = scalar_lea.vmem %s2852_s12, 6144  ;;  %p2324_p13 = scmp.lt.s32.totalorder %s2852_s12, %s2852_s12 }
  0x4a   : > { %p2317_p10 = scmp.ne.s32.totalorder %s2852_s12, %s2316_s28  ;;  %p2325_p0 = scmp.lt.s32.totalorder %s2316_s28, %s2316_s28 }
  0x4c   : > { %p2319_p11 = pnand %p2317_p10, %p2862_p7  ;;  %p2326_p2 = por %p2325_p0, %p2324_p13 }
  0x4e   : > { %p2320_p12 = pneg %p2319_p11 }
  0x50   : > { %p2327_p4 = pnand %p2326_p2, %p2320_p12 }
  0x52   : > { %2330 = shalt.err (!%p2327_p4)
}
  0x53   : > { %s3331_s26 = smov 128   ;;  %s2714_s0 = smov 8  }
  0x54   : > { %2014 = dma.hbm_to_vmem [thread:$0]  (!%p2848_p5), %s3366_s5, 6144, %s2852_s12, [#allocation17], %s3331_s26, %s3331_s26, %s2714_s0  }
  0x55   : > { %s2715_s21 = smov [#allocation19]   ;;  %s2716_s16 = smov [#allocation22]  }
  0x56   : > { %s404_s15 = sshll.u32 %s2715_s21, 4  ;;  %s431_s30 = sshll.u32 %s2716_s16, 4  ;;  %s405_s15 = int_to_ptr.vmem [resolvable:$true] %s404_s15  ;;  %s2907_s30 = int_to_ptr.vmem [resolvable:$true] %s431_s30 }
  0x57   : > { %s3367_s7 = sld [smem:[#allocation48_spill]] }
  0x5d   : > { %s2331_s11 = scalar_lea.hbm %s3367_s7, 512 }
  0x5e   : > { %p2332_p1 = scmp.ne.s32.totalorder %s3367_s7, %s2331_s11  ;;  %p2338_p8 = scmp.lt.u32.totalorder %s2331_s11, %s3367_s7 }
  0x60   : > { %p2334_p3 = pnand %p2332_p1, %p2862_p7 }
  0x62   : > { %p2335_p6 = pneg %p2334_p3 }
  0x64   : > { %p2340_p9 = pnand %p2338_p8, %p2335_p6 }
  0x66   : > { %2343 = shalt.err (!%p2340_p9)
}
  0x67   : > { %s2344_s20 = scalar_lea.vmem %s405_s15, 512  ;;  %p2352_p13 = scmp.lt.s32.totalorder %s405_s15, %s405_s15 }
  0x68   : > { %p2345_p10 = scmp.ne.s32.totalorder %s405_s15, %s2344_s20  ;;  %p2353_p0 = scmp.lt.s32.totalorder %s2344_s20, %s2344_s20 }
  0x6a   : > { %p2347_p11 = pnand %p2345_p10, %p2862_p7  ;;  %p2354_p2 = por %p2353_p0, %p2352_p13 }
  0x6c   : > { %p2348_p12 = pneg %p2347_p11 }
  0x6e   : > { %p2355_p4 = pnand %p2354_p2, %p2348_p12 }
  0x70   : > { %2358 = shalt.err (!%p2355_p4)
}
  0x71   : > { %s3368_s3 = smov 4   ;;  %s3369_s14 = smov 64  }
  0x72   : > { %2020 = dma.hbm_to_vmem [thread:$0]  (!%p2848_p5), %s3367_s7, 512, %s405_s15, [#allocation20], %s3369_s14, %s3369_s14, %s3368_s3  }
  0x73   : > { %s3370_s9 = sld [smem:[#allocation49_spill]] }
  0x79   : > { %s2359_s28 = scalar_lea.hbm %s3370_s9, 2048 }
  0x7a   : > { %p2360_p1 = scmp.ne.s32.totalorder %s3370_s9, %s2359_s28  ;;  %p2366_p8 = scmp.lt.u32.totalorder %s2359_s28, %s3370_s9 }
  0x7c   : > { %p2362_p3 = pnand %p2360_p1, %p2862_p7 }
  0x7e   : > { %p2363_p6 = pneg %p2362_p3 }
  0x80   : > { %p2368_p9 = pnand %p2366_p8, %p2363_p6 }
  0x82   : > { %2371 = shalt.err (!%p2368_p9)
}
  0x83   : > { %s2372_s15 = scalar_lea.vmem %s2907_s30, 2048  ;;  %p2380_p13 = scmp.lt.s32.totalorder %s2907_s30, %s2907_s30 }
  0x84   : > { %p2373_p10 = scmp.ne.s32.totalorder %s2907_s30, %s2372_s15  ;;  %p2381_p0 = scmp.lt.s32.totalorder %s2372_s15, %s2372_s15 }
  0x86   : > { %p2375_p11 = pnand %p2373_p10, %p2862_p7  ;;  %p2382_p2 = por %p2381_p0, %p2380_p13 }
  0x88   : > { %p2376_p12 = pneg %p2375_p11 }
  0x8a   : > { %p2383_p4 = pnand %p2382_p2, %p2376_p12 }
  0x8c   : > { %2386 = shalt.err (!%p2383_p4)
}
  0x8d   : > { %s3371_s26 = smov 128   ;;  %s1780_s16 = sadd.s32 4294967294, %s2707_s24  }
  0x8e   : > { %2026 = dma.hbm_to_vmem [thread:$0]  (!%p2848_p5), %s3370_s9, 2048, %s2907_s30, [#allocation23], %s3371_s26, %s3371_s26, %s2714_s0  }
  0x8f   : > { %s49_s13 = sadd.s32 1, %s2699_s22  ;;  %s53_s28 = sadd.s32 1, %s2703_s23 }
  0x90   : > { %p51_p1 = scmp.ge.s32.totalorder %s49_s13, 2  ;;  %s60_s2 = sadd.s32 1, %s2687_s19 }
  0x91   : > { %p67_p3 = scmp.ne.s32.totalorder %s2687_s19, %s2683_s18  ;;  %p68_p6 = scmp.eq.s32.totalorder %s2707_s24, 0 }
  0x92   : > { %s3422_s13 = smov (%p51_p1, %s49_s13), 0  ;;  %s3424_s28 = smov (!%p51_p1, %s53_s28), %s2703_s23 }
  0x93   : > { %3372 = sst [smem:[#allocation39_spill]] %s3422_s13  ;;  %p73_p8 = scmp.ne.s32.totalorder %s2683_s18, %s2679_s17 }
  0x94   : > { %p55_p9 = scmp.ge.s32.totalorder %s3424_s28, 2  ;;  %p331_p10 = scmp.eq.s32.totalorder %s2835_s25, 3 }
  0x95   : > { %p69_p11 = por %p68_p6, %p67_p3  ;;  %p3373_p12 = scmp.eq.s32.totalorder %s2835_s25, 0 }
  0x96   : > { %s3426_s28 = smov (%p55_p9, %s3424_s28), 0  ;;  %p2977_p0 = por %p331_p10, %p67_p3 }
  0x97   : > { %p2971_p13 = por %p3373_p12, %p73_p8  ;;  %3375 = sst [smem:[#allocation40_spill]] %s3426_s28 }
  0x98   : > { %s3376_s30 = scalar_select %p2977_p0, 1, 0 }
  0x99   : > { %s3374_s0 = scalar_select %p2971_p13, 1, 0 }
  0x9a   : > { %p337_p2 = scmp.eq.s32.totalorder %s1780_s16, 3  ;;  %s57_s12 = ssub.s32 %s2703_s23, %s3426_s28 }
  0x9b   : > { %p2052_p4 = scmp.lt.s32.totalorder %s2707_s24, 4  ;;  %p58_p1 = scmp.eq.s32.totalorder %s57_s12, 0 }
  0x9c   : > { %p2984_p5 = por %p337_p2, %p73_p8  ;;  %s2989_s15 = sand.u32 1, %s2687_s19  }
  0x9d   : > { %p2991_p6 = pnand %p2052_p4, %p69_p11  ;;  %s477_s11 = sand.u32 1, %s2707_s24  }
  0x9e   : > { %s3377_s20 = scalar_select %p2984_p5, 1, 0 }
  0x9f   : > { %s3379_s26 = scalar_select %p2991_p6, 1, 0 }
  0xa0   : > { %3378 = sst [smem:[#allocation41_spill]] %s3377_s20  ;;  %s1793_s5 = sshll.u32 %s2989_s15, 5 }
  0xa1   : > { %s2996_s21 = scalar_select %p58_p1, %s2687_s19, %s60_s2  }
  0xa2   : > { %s1900_s16 = sshll.u32 %s2703_s23, 9  ;;  %s3381_s1 = sld [smem:[#allocation44_spill]] }
  0xa3   : > { %3380 = sst [smem:[#allocation42_spill]] %s2996_s21  ;;  %s481_s28 = scalar_lea.vmem [#allocation10], %s1793_s5 }
  0xa4   : > { %s488_s13 = sshll.u32 %s481_s28, 4  ;;  %s3008_s22 = scalar_lea.sflag [#allocation11], %s477_s11  ;;  %s3006_s13 = int_to_ptr.vmem [resolvable:$true] %s488_s13 }
  0xa5   : > { %p3014_p8 = pneg %p2991_p6 }
  0xa7   : > { %s3382_s21 = scalar_select %p3014_p8, 1, 0 }
  0xa8   : > { %s3004_s12 = scalar_lea.hbm %s3381_s1, %s1900_s16  ;;  %s2392_s5 = scalar_lea.hbm %s3381_s1, 1024 }
  0xa9   : > { %s2387_s2 = scalar_lea.hbm %s3004_s12, 512  ;;  %p2393_p11 = scmp.lt.u32.totalorder %s3004_s12, %s3381_s1 }
  0xaa   : > { %p2388_p3 = scmp.ne.s32.totalorder %s3004_s12, %s2387_s2  ;;  %p2394_p12 = scmp.lt.u32.totalorder %s2392_s5, %s2387_s2 }
  0xab   : > { %p2396_p4 = scmp.lt.u32.totalorder %s2387_s2, %s3004_s12 }
  0xac   : > { %p2390_p9 = pnand %p3014_p8, %p2388_p3  ;;  %p2395_p2 = por %p2394_p12, %p2393_p11 }
  0xae   : > { %p2391_p10 = pneg %p2390_p9  ;;  %p2397_p1 = por %p2396_p4, %p2395_p2 }
  0xb0   : > { %p2398_p5 = pnand %p2397_p1, %p2391_p10 }
  0xb2   : > { %2401 = shalt.err (!%p2398_p5)
}
  0xb3   : > { %s2402_s11 = scalar_lea.vmem %s3006_s13, 512  ;;  %s2717_s7 = smov [#allocation10]  }
  0xb4   : > { %p2403_p3 = scmp.ne.s32.totalorder %s3006_s13, %s2402_s11  ;;  %s2407_s9 = sshll.u32 %s2717_s7, 4  ;;  %s2408_s9 = int_to_ptr.vmem [resolvable:$false] %s2407_s9 }
  0xb5   : > { %s2409_s28 = scalar_lea.vmem %s2408_s9, 1024  ;;  %p2410_p13 = scmp.lt.s32.totalorder %s3006_s13, %s2408_s9 }
  0xb6   : > { %p2405_p9 = pnand %p2403_p3, %p3014_p8  ;;  %p2411_p7 = scmp.lt.s32.totalorder %s2409_s28, %s2402_s11 }
  0xb8   : > { %p2406_p0 = pneg %p2405_p9  ;;  %p2412_p11 = por %p2411_p7, %p2410_p13 }
  0xba   : > { %p2413_p12 = pnand %p2412_p11, %p2406_p0 }
  0xbc   : > { %2416 = shalt.err (!%p2413_p12)
}
  0xbd   : > { %2036 = dma.hbm_to_vmem [thread:$0]  (!%p2991_p6), %s3004_s12, 512, %s3006_s13, %s3008_s22, %s3369_s14, %s3369_s14, %s3368_s3  }
  0xbe   : > { %s2718_s2 = smov [#allocation15]   ;;  %s2719_s16 = smov [#allocation18]  }
  0xbf   : > { %s370_s5 = sshll.u32 %s2718_s2, 4  ;;  %s394_s7 = sshll.u32 %s2719_s16, 4  ;;  %s371_s5 = int_to_ptr.vmem [resolvable:$true] %s370_s5  ;;  %s395_s7 = int_to_ptr.vmem [resolvable:$true] %s394_s7 }
  0xc0   : > { %s2417_s28 = scalar_lea.hbm %s3313_s4, 16  ;;  %p3383_p7 = scmp.ne.s32.totalorder %s3365_s27, 0 }
  0xc1   : > { %p2418_p5 = scmp.ne.s32.totalorder %s3313_s4, %s2417_s28  ;;  %p2424_p10 = scmp.lt.u32.totalorder %s2417_s28, %s3313_s4 }
  0xc3   : > { %p2420_p13 = pnand %p2418_p5, %p3383_p7 }
  0xc5   : > { %p2421_p0 = pneg %p2420_p13 }
  0xc7   : > { %p2426_p2 = pnand %p2424_p10, %p2421_p0 }
  0xc9   : > { %2429 = shalt.err (!%p2426_p2)
}
  0xca   : > { %s2430_s3 = scalar_lea.vmem %s371_s5, 16  ;;  %s2437_s14 = scalar_lea.vmem %s371_s5, 32 }
  0xcb   : > { %p2431_p4 = scmp.ne.s32.totalorder %s371_s5, %s2430_s3  ;;  %p2438_p9 = scmp.lt.s32.totalorder %s371_s5, %s371_s5 }
  0xcc   : > { %p2439_p11 = scmp.lt.s32.totalorder %s2437_s14, %s2430_s3 }
  0xcd   : > { %p2433_p1 = pnand %p2431_p4, %p3383_p7 }
  0xce   : > { %p2440_p12 = por %p2439_p11, %p2438_p9 }
  0xcf   : > { %p2434_p3 = pneg %p2433_p1 }
  0xd1   : > { %p2441_p6 = pnand %p2440_p12, %p2434_p3 }
  0xd3   : > { %2444 = shalt.err (!%p2441_p6)
}
  0xd4   : > { %p3384_p5 = scmp.ne.s32.totalorder %s3363_s29, 0  ;;  %s2445_s20 = scalar_lea.hbm %s3315_s6, 32 }
  0xd5   : > { %p2446_p13 = scmp.ne.s32.totalorder %s3315_s6, %s2445_s20  ;;  %p2452_p6 = scmp.lt.u32.totalorder %s2445_s20, %s3315_s6 }
  0xd6   : > { %2011 = dma.hbm_to_vmem [thread:$0]  (!%p3384_p5), %s3313_s4, 16, %s371_s5, [#allocation14]  }
  0xd7   : > { %p2448_p0 = pnand %p2446_p13, %p3383_p7 }
  0xd9   : > { %p2449_p10 = pneg %p2448_p0 }
  0xdb   : > { %p2454_p2 = pnand %p2452_p6, %p2449_p10 }
  0xdd   : > { %2457 = shalt.err (!%p2454_p2)
}
  0xde   : > { %s2458_s11 = scalar_lea.vmem %s395_s7, 32  ;;  %p2466_p9 = scmp.lt.s32.totalorder %s395_s7, %s395_s7 }
  0xdf   : > { %p2459_p4 = scmp.ne.s32.totalorder %s395_s7, %s2458_s11  ;;  %p2467_p11 = scmp.lt.s32.totalorder %s2458_s11, %s2458_s11 }
  0xe1   : > { %p2461_p1 = pnand %p2459_p4, %p3383_p7  ;;  %p2468_p12 = por %p2467_p11, %p2466_p9 }
  0xe3   : > { %p2462_p3 = pneg %p2461_p1 }
  0xe5   : > { %p2469_p8 = pnand %p2468_p12, %p2462_p3 }
  0xe7   : > { %2472 = shalt.err (!%p2469_p8)
}
  0xe8   : > { %2017 = dma.hbm_to_vmem [thread:$0]  (!%p3384_p5), %s3315_s6, 32, %s395_s7, [#allocation17]  }
  0xe9   : > { %s2720_s3 = smov [#allocation21]   ;;  %s2721_s1 = smov [#allocation24]  }
  0xea   : > { %s418_s14 = sshll.u32 %s2720_s3, 4  ;;  %s448_s19 = sshll.u32 %s2721_s1, 4  ;;  %s419_s14 = int_to_ptr.vmem [resolvable:$true] %s418_s14  ;;  %s449_s19 = int_to_ptr.vmem [resolvable:$true] %s448_s19 }
  0xeb   : > { %s2473_s20 = scalar_lea.hbm %s3317_s8, 16 }
  0xec   : > { %p2474_p8 = scmp.ne.s32.totalorder %s3317_s8, %s2473_s20  ;;  %p2480_p10 = scmp.lt.u32.totalorder %s2473_s20, %s3317_s8 }
  0xee   : > { %p2476_p13 = pnand %p2474_p8, %p3383_p7 }
  0xf0   : > { %p2477_p0 = pneg %p2476_p13 }
  0xf2   : > { %p2482_p6 = pnand %p2480_p10, %p2477_p0 }
  0xf4   : > { %2485 = shalt.err (!%p2482_p6)
}
  0xf5   : > { %s2486_s7 = scalar_lea.vmem %s419_s14, 16  ;;  %s2493_s11 = scalar_lea.vmem %s419_s14, 32 }
  0xf6   : > { %p2487_p2 = scmp.ne.s32.totalorder %s419_s14, %s2486_s7  ;;  %p2494_p3 = scmp.lt.s32.totalorder %s419_s14, %s419_s14 }
  0xf7   : > { %p2495_p9 = scmp.lt.s32.totalorder %s2493_s11, %s2486_s7 }
  0xf8   : > { %p2489_p4 = pnand %p2487_p2, %p3383_p7 }
  0xf9   : > { %p2496_p11 = por %p2495_p9, %p2494_p3 }
  0xfa   : > { %p2490_p1 = pneg %p2489_p4 }
  0xfc   : > { %p2497_p12 = pnand %p2496_p11, %p2490_p1 }
  0xfe   : > { %2500 = shalt.err (!%p2497_p12)
}
  0xff   : > { %2023 = dma.hbm_to_vmem [thread:$0]  (!%p3384_p5), %s3317_s8, 16, %s419_s14, [#allocation20]  }
 0x100   : > { %s2501_s17 = scalar_lea.hbm %s3319_s10, 32 }
 0x101   : > { %p2502_p8 = scmp.ne.s32.totalorder %s3319_s10, %s2501_s17  ;;  %p2508_p10 = scmp.lt.u32.totalorder %s2501_s17, %s3319_s10 }
 0x103   : > { %p2504_p13 = pnand %p2502_p8, %p3383_p7 }
 0x105   : > { %p2505_p0 = pneg %p2504_p13 }
 0x107   : > { %p2510_p6 = pnand %p2508_p10, %p2505_p0 }
 0x109   : > { %2513 = shalt.err (!%p2510_p6)
}
 0x10a   : > { %s2514_s16 = scalar_lea.vmem %s449_s19, 32  ;;  %p2522_p3 = scmp.lt.s32.totalorder %s449_s19, %s449_s19 }
 0x10b   : > { %p2515_p2 = scmp.ne.s32.totalorder %s449_s19, %s2514_s16  ;;  %p2523_p9 = scmp.lt.s32.totalorder %s2514_s16, %s2514_s16 }
 0x10d   : > { %p2517_p4 = pnand %p2515_p2, %p3383_p7  ;;  %p2524_p11 = por %p2523_p9, %p2522_p3 }
 0x10f   : > { %p2518_p1 = pneg %p2517_p4 }
 0x111   : > { %p2525_p12 = pnand %p2524_p11, %p2518_p1 }
 0x113   : > { %2528 = shalt.err (!%p2525_p12)
}
 0x114   : > { %2029 = dma.hbm_to_vmem [thread:$0]  (!%p3384_p5), %s3319_s10, 32, %s449_s19, [#allocation23]  }
 0x115   : > { %s3347_s7 = sshll.u32 %s2989_s15, 2  ;;  %s1792_s27 = sshll.u32 %s2703_s23, 6 }
 0x116   : > { %s3385_s28 = sld [smem:[#allocation43_spill]]  ;;  %s463_s29 = scalar_lea.vmem [#allocation7], %s3347_s7 }
 0x117   : > { %s470_s1 = sshll.u32 %s463_s29, 4  ;;  %s3386_s20 = sld [smem:[#allocation45_spill]]  ;;  %s3122_s1 = int_to_ptr.vmem [resolvable:$true] %s470_s1 }
 0x118   : > { %s460_s2 = scalar_lea.sflag [#allocation8], %s2989_s15  ;;  %p3388_p5 = scmp.ne.s32.totalorder %s3382_s21, 0 }
 0x11c   : > { %s3118_s3 = scalar_lea.hbm %s3385_s28, %s1792_s27  ;;  %s2534_s11 = scalar_lea.hbm %s3385_s28, 128 }
 0x11d   : > { %s3387_s12 = smov %s3386_s20  ;;  %s3127_s19 = scalar_lea.hbm %s3386_s20, %s1792_s27 }
 0x11e   : > { %s2529_s16 = scalar_lea.hbm %s3118_s3, 64  ;;  %p2535_p0 = scmp.lt.u32.totalorder %s3118_s3, %s3385_s28 }
 0x11f   : > { %p2530_p7 = scmp.ne.s32.totalorder %s3118_s3, %s2529_s16  ;;  %p2536_p10 = scmp.lt.u32.totalorder %s2534_s11, %s2529_s16 }
 0x120   : > { %p2538_p2 = scmp.lt.u32.totalorder %s2529_s16, %s3118_s3 }
 0x121   : > { %p2532_p8 = pnand %p2530_p7, %p3388_p5  ;;  %p2537_p6 = por %p2536_p10, %p2535_p0 }
 0x123   : > { %p2533_p13 = pneg %p2532_p8  ;;  %p2539_p4 = por %p2538_p2, %p2537_p6 }
 0x125   : > { %p2540_p1 = pnand %p2539_p4, %p2533_p13 }
 0x127   : > { %2543 = shalt.err (!%p2540_p1)
}
 0x128   : > { %s2544_s27 = scalar_lea.vmem %s3122_s1, 64  ;;  %s2722_s29 = smov [#allocation7]  }
 0x129   : > { %p2545_p3 = scmp.ne.s32.totalorder %s3122_s1, %s2544_s27  ;;  %s2549_s17 = sshll.u32 %s2722_s29, 4  ;;  %s2550_s17 = int_to_ptr.vmem [resolvable:$false] %s2549_s17 }
 0x12a   : > { %s2551_s7 = scalar_lea.vmem %s2550_s17, 128  ;;  %p2552_p12 = scmp.lt.s32.totalorder %s3122_s1, %s2550_s17 }
 0x12b   : > { %p2547_p9 = pnand %p2545_p3, %p3388_p5  ;;  %p2553_p7 = scmp.lt.s32.totalorder %s2551_s7, %s2544_s27 }
 0x12d   : > { %p2548_p11 = pneg %p2547_p9  ;;  %p2554_p8 = por %p2553_p7, %p2552_p12 }
 0x12f   : > { %p2555_p0 = pnand %p2554_p8, %p2548_p11 }
 0x131   : > { %2558 = shalt.err (!%p2555_p0)
}
 0x132   : > { %p3389_p13 = scmp.ne.s32.totalorder %s3379_s26, 0  ;;  %s3390_s13 = sshll.u32 %s2989_s15, 2 }
 0x133   : > { %s502_s20 = scalar_lea.vmem [#allocation12], %s3390_s13  ;;  %s2559_s14 = scalar_lea.hbm %s3127_s19, 64 }
 0x134   : > { %2033 = dma.hbm_to_vmem [thread:$0]  (!%p3389_p13), %s3118_s3, 64, %s3122_s1, %s460_s2  }
 0x135   : > { %s509_s16 = sshll.u32 %s502_s20, 4  ;;  %p2560_p10 = scmp.ne.s32.totalorder %s3127_s19, %s2559_s14  ;;  %s510_s16 = int_to_ptr.vmem [resolvable:$true] %s509_s16 }
 0x136   : > { %s2564_s5 = scalar_lea.hbm %s3387_s12, 128  ;;  %p2565_p4 = scmp.lt.u32.totalorder %s3127_s19, %s3387_s12 }
 0x137   : > { %p2562_p6 = pnand %p2560_p10, %p3388_p5  ;;  %p2566_p1 = scmp.lt.u32.totalorder %s2564_s5, %s2559_s14 }
 0x138   : > { %p2568_p9 = scmp.lt.u32.totalorder %s2559_s14, %s3127_s19 }
 0x139   : > { %p2563_p2 = pneg %p2562_p6  ;;  %p2567_p3 = por %p2566_p1, %p2565_p4 }
 0x13b   : > { %p2569_p11 = por %p2568_p9, %p2567_p3 }
 0x13d   : > { %p2570_p12 = pnand %p2569_p11, %p2563_p2 }
 0x13f   : > { %2573 = shalt.err (!%p2570_p12)
}
 0x140   : > { %s2574_s15 = scalar_lea.vmem %s510_s16, 64  ;;  %s2723_s3 = smov [#allocation12]  }
 0x141   : > { %p2575_p7 = scmp.ne.s32.totalorder %s510_s16, %s2574_s15  ;;  %s2579_s1 = sshll.u32 %s2723_s3, 4  ;;  %s2580_s1 = int_to_ptr.vmem [resolvable:$false] %s2579_s1 }
 0x142   : > { %s2581_s2 = scalar_lea.vmem %s2580_s1, 128  ;;  %p2582_p10 = scmp.lt.s32.totalorder %s510_s16, %s2580_s1 }
 0x143   : > { %p2577_p8 = pnand %p2575_p7, %p3388_p5  ;;  %p2583_p6 = scmp.lt.s32.totalorder %s2581_s2, %s2574_s15 }
 0x145   : > { %p2578_p0 = pneg %p2577_p8  ;;  %p2584_p13 = por %p2583_p6, %p2582_p10 }
 0x147   : > { %p2585_p1 = pnand %p2584_p13, %p2578_p0 }
 0x149   : > { %2588 = shalt.err (!%p2585_p1)
}
 0x14a   : > { %p3391_p4 = scmp.ne.s32.totalorder %s3379_s26, 0  ;;  %s3392_s17 = sld [smem:[#allocation38_spill]] }
 0x14c   : > { %2039 = dma.hbm_to_vmem [thread:$0]  (!%p3391_p4), %s3127_s19, 64, %s510_s16, %s3008_s22  }
 0x150   : > { %p3393_p2 = scmp.ne.s32.totalorder %s3392_s17, 0 }
 0x151   : > { %s3174_s21 = sand.u32 (!%p3393_p2), 1, %s2683_s18   ;;  %p3394_p5 = scmp.ne.s32.totalorder (!%p3393_p2), %s3374_s0, 0 }
 0x152   : > { %518 = sbr.rel (%p3393_p2) target bundleno = 3032 (0xbd8), region = 64  ;;  %s1799_s7 = sshll.u32 (!%p3393_p2), %s3174_s21, 2 }
 0x153   : > { %s521_s13 = scalar_lea.sflag (!%p3393_p2), [#allocation8], %s3174_s21  ;;  %s3178_s20 = scalar_lea.vmem (!%p3393_p2), [#allocation7], %s1799_s7 }
 0x159   : > { %2650 = dma.done.wait (%p3394_p5), %s521_s13, 64  }
 0x15a   : > { %2652 = vsyncadd (%p3394_p5), %s521_s13, 4294967232  ;;  %s529_s22 = sand.u32 1, %s2835_s25   ;;  %s1800_s26 = sshll.u32 %s3174_s21, 5 }
 0x15b   : > { %s530_s19 = scalar_lea.sflag [#allocation11], %s529_s22  ;;  %s3186_s16 = scalar_lea.vmem [#allocation10], %s1800_s26 }
 0x15c   : > { %2654 = dma.done.wait (%p3394_p5), %s530_s19, 576  }
 0x15d   : > { %2656 = vsyncadd (%p3394_p5), %s530_s19, 4294966720  ;;  %s3192_s14 = scalar_lea.vmem [#allocation12], %s1799_s7  ;;  %p3395_p13 = scmp.eq.s32.totalorder %s2835_s25, 0 }
 0x15f   : > { %2658 = dma.done.wait (%p3395_p13), [#allocation14], 272   ;;  %p3396_p3 = pmov %p3395_p13 }
 0x161   : > { %2660 = vsyncadd (%p3396_p3), [#allocation14], 4294967024  ;;  %p3397_p9 = pmov %p3396_p3 }
 0x162   : > { %p3398_p11 = pmov %p3396_p3 }
 0x163   : > { %2662 = dma.done.wait (%p3397_p9), [#allocation17], 6176  }
 0x164   : > { %2664 = vsyncadd (%p3398_p11), [#allocation17], 4294961120  ;;  %p3399_p12 = pmov %p3396_p3 }
 0x165   : > { %p3400_p7 = pmov %p3396_p3 }
 0x166   : > { %2666 = dma.done.wait (%p3399_p12), [#allocation20], 528  }
 0x167   : > { %2668 = vsyncadd (%p3400_p7), [#allocation20], 4294966768  ;;  %p3401_p8 = pmov %p3396_p3 }
 0x168   : > { %p3402_p0 = pmov %p3396_p3 }
 0x169   : > { %2670 = dma.done.wait (%p3401_p8), [#allocation23], 2080  }
 0x16a   : > { %2672 = vsyncadd (%p3402_p0), [#allocation23], 4294965216  ;;  %s3403_s0 = sld [smem:[#allocation35_spill]]  ;;  %s1810_s9 = sshll.u32 %s3174_s21, 4 }
 0x16b   : > { %s3212_s11 = scalar_lea.vmem [#allocation25], %s1810_s9 }
 0x170   : > { %p628_p10 = scmp.eq.s32.totalorder %s3403_s0, 0 }
 0x171   : > { %v2147_v0 = vld [vmem:[#allocation13] sm:$0xff] (%p628_p10)   ;;  %v2724_v1 = vmov (%p628_p10), 0.0   ;;  %v2148_v2 = vld [vmem:[#allocation13 + $0x8] sm:$0xff] (%p628_p10)   ;;  %vm2725_vm0 = vmmov (%p628_p10), 0   ;;  %v634_v4 = vld [vmem:[%s3178_s20] sm:$0xf] (%p628_p10) }
 0x172   : > { %633 = sbr.rel (!%p628_p10) target bundleno = 2157 (0x86d), region = 112  ;;  %1918 = vmatprep.subr.bf16.mxu1 (%p628_p10), %v2724_v1  ;;  %702 = vst [vmem:[#allocation2] sm:$0x1] (%p628_p10), %v2724_v1  ;;  %703 = vst [vmem:[#allocation2 + $0x9] sm:$0x1] (%p628_p10), %v2724_v1  ;;  %1922 = vmatprep.mubr.msk.bf16.mxu1 (%p628_p10), %vm2725_vm0, %v2724_v1  ;;  %vm658_vm1 = vcmask (%p628_p10), 261120  }
 0x173   : > { %1919 = vmatpush3.bf16.msra.mxu1 (%p628_p10), %v2147_v0  ;;  %v2151_v3 = vld [vmem:[#allocation16 + $0x4] ss:$8 sps:$4 sm:$0xff] (%p628_p10)   ;;  %v2149_v5 = vld [vmem:[#allocation16] ss:$8 sps:$4 sm:$0xff] (%p628_p10)   ;;  %v2154_v6 = vld [vmem:[#allocation16 + $0x14] ss:$8 sps:$4 sm:$0xff] (%p628_p10)   ;;  %v761_v0 = vlaneseq (%p628_p10) }
 0x174   : > { %1920 = vmatprep.subr.bf16.mxu1 (%p628_p10), %v2724_v1  ;;  %v2152_v7 = vld [vmem:[#allocation16 + $0x10] ss:$8 sps:$4 sm:$0xff] (%p628_p10)   ;;  %v2157_v8 = vld [vmem:[#allocation16 + $0x24] ss:$8 sps:$4 sm:$0xff] (%p628_p10)   ;;  %v2155_v10 = vld [vmem:[#allocation16 + $0x20] ss:$8 sps:$4 sm:$0xff] (%p628_p10)  }
 0x175   : > { %v2173_v9 = vld [vmem:[#allocation16 + $0x104] ss:$8 sps:$4 sm:$0xff] (%p628_p10)   ;;  %v2160_v11 = vld [vmem:[#allocation16 + $0x34] ss:$8 sps:$4 sm:$0xff] (%p628_p10)   ;;  %v2178_v12 = vld [vmem:[#allocation16 + $0x100] ss:$8 sps:$4 sm:$0xff] (%p628_p10)  }
 0x176   : > { %1052 = vmatprep.subr.bf16.mxu0 (%p628_p10), %v2173_v9  ;;  %v2179_v13 = vld [vmem:[#allocation16 + $0x114] ss:$8 sps:$4 sm:$0xff] (%p628_p10)   ;;  %v2158_v14 = vld [vmem:[#allocation16 + $0x30] ss:$8 sps:$4 sm:$0xff] (%p628_p10)   ;;  %v2163_v15 = vld [vmem:[#allocation16 + $0x44] ss:$8 sps:$4 sm:$0xff] (%p628_p10)  }
 0x177   : > { %1921 = vmatpush3.bf16.msra.mxu1 (%p628_p10), %v2148_v2  ;;  %1053 = vmatpush1.bf16.msra.mxu0 (%p628_p10), %v2178_v12  ;;  %v2184_v16 = vld [vmem:[#allocation16 + $0x110] ss:$8 sps:$4 sm:$0xff] (%p628_p10)   ;;  %v2185_v17 = vld [vmem:[#allocation16 + $0x124] ss:$8 sps:$4 sm:$0xff] (%p628_p10)   ;;  %v2161_v18 = vld [vmem:[#allocation16 + $0x40] ss:$8 sps:$4 sm:$0xff] (%p628_p10)  }
 0x178   : > { %1011 = vmatprep.subr.bf16.mxu1 (%p628_p10), %v2151_v3  ;;  %1054 = vmatprep.subr.bf16.mxu0 (%p628_p10), %v2179_v13  ;;  %v2190_v19 = vld [vmem:[#allocation16 + $0x120] ss:$8 sps:$4 sm:$0xff] (%p628_p10)   ;;  %v2191_v20 = vld [vmem:[#allocation16 + $0x134] ss:$8 sps:$4 sm:$0xff] (%p628_p10)   ;;  %v2164_v22 = vld [vmem:[#allocation16 + $0x50] ss:$8 sps:$4 sm:$0xff] (%p628_p10)  }
 0x179   : > { %v2166_v21 = vld [vmem:[#allocation16 + $0x54] ss:$8 sps:$4 sm:$0xff]   ;;  %v2196_v23 = vld [vmem:[#allocation16 + $0x130] ss:$8 sps:$4 sm:$0xff]   ;;  %v2169_v24 = vld [vmem:[#allocation16 + $0x64] ss:$8 sps:$4 sm:$0xff]  }
 0x17a   : > { %1923 = vmatmul.mubr.msk.bf16.vlgmr.msra.gmra.mrb[0].mxu1 %vm658_vm1, %v634_v4  ;;  %v2197_v25 = vld [vmem:[#allocation16 + $0x144] ss:$8 sps:$4 sm:$0xff]   ;;  %v2202_v26 = vld [vmem:[#allocation16 + $0x140] ss:$8 sps:$4 sm:$0xff]   ;;  %v2172_v28 = vld [vmem:[#allocation16 + $0x74] ss:$8 sps:$4 sm:$0xff]  }
 0x17b   : > { %1012 = vmatpush1.bf16.msra.mxu1 %v2149_v5  ;;  %1055 = vmatpush1.bf16.msra.mxu0 %v2184_v16  ;;  %v2167_v27 = vld [vmem:[#allocation16 + $0x60] ss:$8 sps:$4 sm:$0xff]   ;;  %v2170_v29 = vld [vmem:[#allocation16 + $0x70] ss:$8 sps:$4 sm:$0xff]   ;;  %v2177_v30 = vld [vmem:[#allocation16 + $0x84] ss:$8 sps:$4 sm:$0xff]  }
 0x17c   : > { %1013 = vmatprep.subr.bf16.mxu1 %v2154_v6  ;;  %1056 = vmatprep.subr.bf16.mxu0 %v2185_v17  ;;  %v2175_v31 = vld [vmem:[#allocation16 + $0x80] ss:$8 sps:$4 sm:$0xff]   ;;  %v2183_v32 = vld [vmem:[#allocation16 + $0x94] ss:$8 sps:$4 sm:$0xff]   ;;  %v2181_v33 = vld [vmem:[#allocation16 + $0x90] ss:$8 sps:$4 sm:$0xff]  }
 0x17d   : > { %v2189_v34 = vld [vmem:[#allocation16 + $0xa4] ss:$8 sps:$4 sm:$0xff]   ;;  %v2187_v35 = vld [vmem:[#allocation16 + $0xa0] ss:$8 sps:$4 sm:$0xff]   ;;  %v2195_v36 = vld [vmem:[#allocation16 + $0xb4] ss:$8 sps:$4 sm:$0xff]  }
 0x17e   : > { %v2193_v37 = vld [vmem:[#allocation16 + $0xb0] ss:$8 sps:$4 sm:$0xff]   ;;  %v2201_v38 = vld [vmem:[#allocation16 + $0xc4] ss:$8 sps:$4 sm:$0xff]   ;;  %v2199_v39 = vld [vmem:[#allocation16 + $0xc0] ss:$8 sps:$4 sm:$0xff]  }
 0x17f   : > { %1014 = vmatpush1.bf16.msra.mxu1 %v2152_v7  ;;  %1057 = vmatpush1.bf16.msra.mxu0 %v2190_v19  ;;  %v2203_v40 = vld [vmem:[#allocation16 + $0x154] ss:$8 sps:$4 sm:$0xff]   ;;  %v2205_v42 = vld [vmem:[#allocation16 + $0xd0] ss:$8 sps:$4 sm:$0xff]   ;;  %v2209_v44 = vld [vmem:[#allocation16 + $0x164] ss:$8 sps:$4 sm:$0xff]  }
 0x180   : > { %1015 = vmatprep.subr.bf16.mxu1 %v2157_v8  ;;  %1058 = vmatprep.subr.bf16.mxu0 %v2191_v20  ;;  %v2207_v41 = vld [vmem:[#allocation16 + $0xd4] ss:$8 sps:$4 sm:$0xff]   ;;  %v2208_v43 = vld [vmem:[#allocation16 + $0x150] ss:$8 sps:$4 sm:$0xff]   ;;  %v2211_v45 = vld [vmem:[#allocation16 + $0xe0] ss:$8 sps:$4 sm:$0xff]  }
 0x181   : > { %v2213_v46 = vld [vmem:[#allocation16 + $0xe4] ss:$8 sps:$4 sm:$0xff]   ;;  %v2214_v47 = vld [vmem:[#allocation16 + $0x160] ss:$8 sps:$4 sm:$0xff]   ;;  %v2215_v48 = vld [vmem:[#allocation16 + $0x174] ss:$8 sps:$4 sm:$0xff]  }
 0x182   : > { %v2219_v49 = vld [vmem:[#allocation16 + $0xf4] ss:$8 sps:$4 sm:$0xff]   ;;  %v2217_v50 = vld [vmem:[#allocation16 + $0xf0] ss:$8 sps:$4 sm:$0xff]   ;;  %v2726_v52 = vmov 0   ;;  %v762_v2 = vshrl.u32 %v761_v0, 7 }
 0x183   : > { %1016 = vmatpush1.bf16.msra.mxu1 %v2155_v10  ;;  %1059 = vmatpush1.bf16.msra.mxu0 %v2196_v23  ;;  %v2220_v51 = vld [vmem:[#allocation16 + $0x170] ss:$8 sps:$4 sm:$0xff]   ;;  %v1812_v53 = vld [vmem:[#allocation15] ss:$0 sm:$0xff]  ;;  %v759_v4 = vld [vmem:[#allocation18] sm:$0x3] }
 0x184   : > { %1017 = vmatprep.subr.bf16.mxu1 %v2160_v11  ;;  %1060 = vmatprep.subr.bf16.mxu0 %v2197_v25  ;;  %v763_v3 = vsub.s32 0, %v762_v2  ;;  %v767_v5 = vsub.s32 1, %v762_v2  ;;  %vm1100_vm2 = vcmask 1048064   ;;  %s2727_s25 = smov 64   ;;  %vm1111_vm3 = vcmask 523264  }
 0x185   : > { %1084 = vmatprep.mubr.bf16.mxu0 %v2726_v52  ;;  %vm1277_vm4 = vcmask 64512   ;;  %vm1294_vm5 = vcmask 1043456  }
 0x186   : > { %v764_v6 = vrot.slane %v759_v4, %v763_v3  ;;  %v768_v7 = vrot.slane %v759_v4, %v767_v5 }
 0x187   : > { %1018 = vmatpush1.bf16.msra.mxu1 %v2158_v14  ;;  %1061 = vmatpush1.bf16.msra.mxu0 %v2202_v26 }
 0x188   : > { %1019 = vmatprep.subr.bf16.mxu1 %v2163_v15  ;;  %1062 = vmatprep.subr.bf16.mxu0 %v2203_v40 }
 0x18b   : > { %1020 = vmatpush1.bf16.msra.mxu1 %v2161_v18  ;;  %1063 = vmatpush1.bf16.msra.mxu0 %v2208_v43  ;;  %v2226_v43 = vld [vmem:[%s3186_s16 + $0x8] sm:$0xff]  }
 0x18c   : > { %1021 = vmatprep.subr.bf16.mxu1 %v2166_v21  ;;  %1064 = vmatprep.subr.bf16.mxu0 %v2209_v44  ;;  %v2227_v44 = vld [vmem:[%s3186_s16 + $0x10] sm:$0xff]  }
 0x18f   : > { %1022 = vmatpush1.bf16.msra.mxu1 %v2164_v22  ;;  %1065 = vmatpush1.bf16.msra.mxu0 %v2214_v47 }
 0x190   : > { %1023 = vmatprep.subr.bf16.mxu1 %v2169_v24  ;;  %1066 = vmatprep.subr.bf16.mxu0 %v2215_v48 }
 0x193   : > { %1024 = vmatpush1.bf16.msra.mxu1 %v2167_v27  ;;  %1067 = vmatpush1.bf16.msra.mxu0 %v2220_v51 }
 0x194   : > { %1025 = vmatprep.subr.bf16.mxu1 %v2172_v28  ;;  %1926 = vmatprep.subr.bf16.mxu0 %v2724_v1 }
 0x197   : > { %1026 = vmatpush1.bf16.msra.mxu1 %v2170_v29 }
 0x198   : > { %1027 = vmatprep.subr.bf16.mxu1 %v2177_v30 }
 0x19b   : > { %1028 = vmatpush1.bf16.msra.mxu1 %v2175_v31 }
 0x19c   : > { %1029 = vmatprep.subr.bf16.mxu1 %v2183_v32  ;;  %v2221_v32 = vld [vmem:[#allocation19] sm:$0xff]  }
 0x19f   : > { %1030 = vmatpush1.bf16.msra.mxu1 %v2181_v33  ;;  %v2222_v33 = vld [vmem:[#allocation19 + $0x8] sm:$0xff]  }
 0x1a0   : > { %1031 = vmatprep.subr.bf16.mxu1 %v2189_v34  ;;  %v2223_v34 = vld [vmem:[#allocation19 + $0x10] sm:$0xff]  }
 0x1a3   : > { %1032 = vmatpush1.bf16.msra.mxu1 %v2187_v35  ;;  %v2224_v35 = vld [vmem:[#allocation19 + $0x18] sm:$0xff]  }
 0x1a4   : > { %1033 = vmatprep.subr.bf16.mxu1 %v2195_v36 }
 0x1a7   : > { %1034 = vmatpush1.bf16.msra.mxu1 %v2193_v37 }
 0x1a8   : > { %1035 = vmatprep.subr.bf16.mxu1 %v2201_v38 }
 0x1ab   : > { %1036 = vmatpush1.bf16.msra.mxu1 %v2199_v39 }
 0x1ac   : > { %1037 = vmatprep.subr.bf16.mxu1 %v2207_v41  ;;  %v2225_v41 = vld [vmem:[%s3186_s16] sm:$0xff]  }
 0x1af   : > { %1038 = vmatpush1.bf16.msra.mxu1 %v2205_v42 }
 0x1b0   : > { %1039 = vmatprep.subr.bf16.mxu1 %v2213_v46 }
 0x1b3   : > { %1040 = vmatpush1.bf16.msra.mxu1 %v2211_v45  ;;  %v2228_v45 = vld [vmem:[%s3186_s16 + $0x18] sm:$0xff]  }
 0x1b4   : > { %1041 = vmatprep.subr.bf16.mxu1 %v2219_v49 }
 0x1b7   : > { %1042 = vmatpush1.bf16.msra.mxu1 %v2217_v50 }
 0x24d   : > { %v696_v54 = vpop.f32.mrb[0].mxu1 }
 0x24e   : > { %v697_v55 = vadd.f32 %v1812_v53, %v696_v54  ;;  %v1924_v56 = vpop.f32.mrb[1].mxu1 }
 0x24f   : > { %v699_v57 = vpop.f32.mrb[2].mxu1  ;;  %v1290_v56 = vld [vmem:[%s3192_s14] sm:$0xf] }
 0x250   : > { %704 = vst [vmem:[#allocation2 + $0x1] sm:$0xff] %v697_v55  ;;  %v1925_v58 = vpop.f32.mrb[3].mxu1  ;;  %v709_v59 = vpack.c.bf16 %v697_v55, %v697_v55  ;;  %v1296_v57 = vsel %vm1294_vm5, %v1290_v56, 0 }
 0x252   : > { %1043 = vmatprep.mubr.bf16.mxu1 %v709_v59 }
 0x257   : > { %v707_v60 = vld [vmem:[#allocation2 + $0x2] sm:$0xff] }
 0x258   : > { %v705_v61 = vld [vmem:[#allocation2] sm:$0xff]  ;;  %v710_v62 = vpack.c.bf16 %v707_v60, %v707_v60 }
 0x259   : > { %v708_v63 = vpack.c.bf16 %v705_v61, %v705_v61  ;;  %v1865_v61 = vld [vmem:[#allocation21] ss:$0 sm:$0xff] }
 0x25a   : > { %1085 = vmatmul.mubr.bf16.vlgmr.msra.gmra.mrb[0].mxu0 %v710_v62 }
 0x25b   : > { %1044 = vmatmul.mubr.bf16.vlgmr.msra.gmra.mrb[4].mxu1 %v708_v63  ;;  %1934 = vmatprep.mubr.msk.bf16.mxu0 %vm2725_vm0, %v2724_v1 }
 0x25c   : > { %1927 = vmatpush3.bf16.msra.mxu0 %v2221_v32 }
 0x25d   : > { %1928 = vmatprep.subr.bf16.mxu0 %v2724_v1 }
 0x260   : > { %1929 = vmatpush3.bf16.msra.mxu0 %v2222_v33 }
 0x261   : > { %1930 = vmatprep.subr.bf16.mxu0 %v2724_v1 }
 0x264   : > { %1931 = vmatpush3.bf16.msra.mxu0 %v2223_v34 }
 0x265   : > { %1932 = vmatprep.subr.bf16.mxu0 %v2724_v1 }
 0x268   : > { %1933 = vmatpush3.bf16.msra.mxu0 %v2224_v35 }
 0x269   : > { %1938 = vmatprep.subr.bf16.mxu0 %v2724_v1 }
 0x32d   : > { %v1086_v8 = vpop.f32.mrb[0].mxu0 }
 0x32e   : > { %v1045_v9 = vpop.f32.mrb[4].mxu1  ;;  %v1088_v11 = vpop.f32.mrb[1].mxu0 }
 0x32f   : > { %v1046_v10 = vadd.f32 %v1045_v9, %v764_v6  ;;  %v1047_v12 = vpop.f32.mrb[5].mxu1  ;;  %v1090_v14 = vpop.f32.mrb[2].mxu0 }
 0x330   : > { %v1048_v13 = vadd.f32 %v1047_v12, %v768_v7  ;;  %v1049_v15 = vpop.f32.mrb[6].mxu1  ;;  %v1091_v17 = vpop.f32.mrb[3].mxu0 }
 0x331   : > { %v1087_v16 = vadd.f32 %v1086_v8, %v1046_v10  ;;  %v1050_v18 = vpop.f32.mrb[7].mxu1 }
 0x332   : > { %v1089_v19 = vadd.f32 %v1088_v11, %v1048_v13 }
 0x334   : > { %v1864_v20 = vmul.f32 -1.442695, %v1089_v19 }
 0x336   : > { %2229 = vpow2.f32 %v1864_v20 }
 0x340   : > { %v2230_v21 = vpop.eup %2229 }
 0x341   : > { %v1096_v22 = vadd.f32 1.0, %v2230_v21 }
 0x343   : > { %2231 = vrcp.f32 %v1096_v22 }
 0x34d   : > { %v2232_v23 = vpop.eup %2231 }
 0x34e   : > { %v1099_v24 = vmul.f32 %v2232_v23, %v1087_v16 }
 0x350   : > { %v1101_v25 = vsel %vm1100_vm2, %v1099_v24, -inf }
 0x351   : > { %1102 = vmax.xlane.f32.xlu0 %v1101_v25 }
 0x3de   : > { %v1103_v26 = vpop.xlane.xlu0 %1102 }
 0x3df   : > { %v1104_v27 = vsub.f32 %v1099_v24, %v1103_v26 }
 0x3e1   : > { %v1105_v28 = vmul.f32 1.442695, %v1104_v27 }
 0x3e3   : > { %2233 = vpow2.f32 %v1105_v28 }
 0x3ed   : > { %v2234_v29 = vpop.eup %2233 }
 0x3ee   : > { %1108 = vrot.lane.b32.xlu0 %v2234_v29, %s2727_s25 }
 0x460   : > { %v1109_v30 = vpop.permute.xlu0 %1108 }
 0x461   : > { %v1112_v31 = vsel %vm1111_vm3, %v1109_v30, 0.0 }
 0x462   : > { %1113 = vadd.xlane.f32.xlu1 %v1112_v31 }
 0x4ef   : > { %v1114_v36 = vpop.xlane.xlu1 %1113 }
 0x4f0   : > { %2235 = vrcp.f32 %v1114_v36 }
 0x4fa   : > { %v2236_v37 = vpop.eup %2235 }
 0x4fb   : > { %v1116_v38 = vmul.f32 %v2236_v37, %v2234_v29 }
 0x4fd   : > { %1118 = vrot.lane.b32.xlu1 %v1116_v38, %s2727_s25 }
 0x56f   : > { %v1119_v39 = vpop.permute.xlu1 %1118 }
 0x570   : > { %v1121_v40 = vmul.f32 %v1119_v39, %v1099_v24 }
 0x572   : > { %v1122_v42 = vpack.c.bf16 %v1121_v40, %v1121_v40 }
 0x574   : > { %1935 = vmatmul.mubr.msk.bf16.vlgmr.msra.gmra.mrb[4].mxu0 %vm1111_vm3, %v1122_v42 }
 0x575   : > { %1939 = vmatpush3.bf16.msra.mxu0 %v2225_v41  ;;  %1946 = vmatprep.mubr.msk.bf16.mxu0 %vm2725_vm0, %v2724_v1 }
 0x576   : > { %1940 = vmatprep.subr.bf16.mxu0 %v2724_v1 }
 0x579   : > { %1941 = vmatpush3.bf16.msra.mxu0 %v2226_v43 }
 0x57a   : > { %1942 = vmatprep.subr.bf16.mxu0 %v2724_v1 }
 0x57d   : > { %1943 = vmatpush3.bf16.msra.mxu0 %v2227_v44 }
 0x57e   : > { %1944 = vmatprep.subr.bf16.mxu0 %v2724_v1 }
 0x581   : > { %1945 = vmatpush3.bf16.msra.mxu0 %v2228_v45 }
 0x582   : > { %1950 = vmatprep.subr.bf16.mxu0 %v2724_v1 }
 0x584   : > { %1947 = vmatmul.mubr.msk.bf16.vlgmr.msra.gmra.mrb[8].mxu0 %vm1111_vm3, %v1122_v42 }
 0x585   : > { %1952 = vmatprep.mubr.msk.bf16.mxu0 %vm2725_vm0, %v2724_v1  ;;  %1951 = vmatpush3.bf16.msra.mxu0 %v1296_v57 }
 0x657   : > { %v1271_v46 = vpop.f32.mrb[8].mxu0 }
 0x658   : > { %v1948_v47 = vpop.f32.mrb[9].mxu0  ;;  %v1278_v48 = vsel %vm1277_vm4, %v1271_v46, -inf }
 0x659   : > { %1279 = vmax.xlane.f32.xlu1 %v1278_v48  ;;  %v1274_v49 = vpop.f32.mrb[10].mxu0 }
 0x65a   : > { %v1949_v50 = vpop.f32.mrb[11].mxu0 }
 0x6e6   : > { %v1280_v51 = vpop.xlane.xlu1 %1279 }
 0x6e7   : > { %v1281_v52 = vsub.f32 %v1271_v46, %v1280_v51 }
 0x6e9   : > { %v1282_v53 = vmul.f32 1.442695, %v1281_v52 }
 0x6eb   : > { %2237 = vpow2.f32 %v1282_v53 }
 0x6f5   : > { %v2238_v54 = vpop.eup %2237 }
 0x6f6   : > { %v1284_v55 = vsel %vm1277_vm4, %v2238_v54, 0.0 }
 0x6f7   : > { %1285 = vadd.xlane.f32.xlu0 %v1284_v55 }
 0x784   : > { %v1286_v1 = vpop.xlane.xlu0 %1285 }
 0x785   : > { %2239 = vrcp.f32 %v1286_v1 }
 0x78f   : > { %v2240_v58 = vpop.eup %2239 }
 0x790   : > { %v1288_v59 = vmul.f32 %v2240_v58, %v2238_v54 }
 0x792   : > { %v1289_v60 = vpack.c.bf16 %v1288_v59, %v1288_v59 }
 0x794   : > { %1953 = vmatmul.mubr.msk.bf16.vlgmr.msra.gmra.mrb[4].mxu0 %vm1277_vm4, %v1289_v60 }
 0x867   : > { %v1332_v62 = vpop.f32.mrb[4].mxu0 }
 0x868   : > { %v1960_v63 = vadd.f32 %v1865_v61, %v1332_v62  ;;  %v1954_v0 = vpop.f32.mrb[5].mxu0 }
 0x869   : > { %v1335_v2 = vpop.f32.mrb[6].mxu0 }
 0x86a   : > { %v1339_v3 = vpack.c.bf16 %v1960_v63, %v1960_v63  ;;  %v1955_v4 = vpop.f32.mrb[7].mxu0 }
 0x86c   : > { %1340 = vst [vmem:[#allocation3] sm:$0xf] %v1339_v3 }
 0x86d PF: > { %v2241_v5 = vld [vmem:[#allocation22 + $0x4] ss:$8 sps:$4 sm:$0xff]   ;;  %v2243_v6 = vld [vmem:[#allocation22] ss:$8 sps:$4 sm:$0xff]   ;;  %v2728_v7 = vmov 0   ;;  %v1360_v23 = vlaneseq  ;;  %s3404_s5 = sld [smem:[#allocation35_spill]] }
 0x86e   : > { %1482 = vmatprep.mubr.bf16.mxu0 %v2728_v7  ;;  %1450 = vmatprep.subr.bf16.mxu0 %v2241_v5  ;;  %v2244_v8 = vld [vmem:[#allocation22 + $0x14] ss:$8 sps:$4 sm:$0xff]   ;;  %v2246_v9 = vld [vmem:[#allocation22 + $0x10] ss:$8 sps:$4 sm:$0xff]   ;;  %v2247_v10 = vld [vmem:[#allocation22 + $0x24] ss:$8 sps:$4 sm:$0xff]  }
 0x86f   : > { %1451 = vmatpush1.bf16.msra.mxu0 %v2243_v6  ;;  %v2249_v11 = vld [vmem:[#allocation22 + $0x20] ss:$8 sps:$4 sm:$0xff]   ;;  %v2250_v12 = vld [vmem:[#allocation22 + $0x34] ss:$8 sps:$4 sm:$0xff]   ;;  %v2252_v13 = vld [vmem:[#allocation22 + $0x30] ss:$8 sps:$4 sm:$0xff]  }
 0x870   : > { %1452 = vmatprep.subr.bf16.mxu0 %v2244_v8  ;;  %v2253_v14 = vld [vmem:[#allocation22 + $0x44] ss:$8 sps:$4 sm:$0xff]   ;;  %v2255_v15 = vld [vmem:[#allocation22 + $0x40] ss:$8 sps:$4 sm:$0xff]   ;;  %v2256_v16 = vld [vmem:[#allocation22 + $0x54] ss:$8 sps:$4 sm:$0xff]  }
 0x871   : > { %v2258_v17 = vld [vmem:[#allocation22 + $0x50] ss:$8 sps:$4 sm:$0xff]   ;;  %v2259_v18 = vld [vmem:[#allocation22 + $0x64] ss:$8 sps:$4 sm:$0xff]   ;;  %v2261_v19 = vld [vmem:[#allocation22 + $0x60] ss:$8 sps:$4 sm:$0xff]  }
 0x872   : > { %v2262_v20 = vld [vmem:[#allocation22 + $0x74] ss:$8 sps:$4 sm:$0xff]   ;;  %v2264_v21 = vld [vmem:[#allocation22 + $0x70] ss:$8 sps:$4 sm:$0xff]   ;;  %v1361_v24 = vshrl.u32 %v1360_v23, 7 }
 0x873   : > { %1453 = vmatpush1.bf16.msra.mxu0 %v2246_v9  ;;  %v1341_v22 = vld [vmem:[#allocation3] sm:$0xf]  ;;  %p1893_p6 = scmp.ne.s32.totalorder %s3404_s5, 0 }
 0x874   : > { %1454 = vmatprep.subr.bf16.mxu0 %v2247_v10  ;;  %v1362_v25 = vsub.s32 0, %v1361_v24  ;;  %v1358_v26 = vld [vmem:[#allocation24] sm:$0x3]  ;;  %v1366_v27 = vsub.s32 1, %v1361_v24  ;;  %vm1497_vm6 = vcmask (!%p1893_p6), 7168   ;;  %v2729_v37 = vmov (!%p1893_p6), -inf  }
 0x875   : > { %1498 = vst.msk [vmem:[#allocation4] sm:$0xff] (!%p1893_p6), %vm1497_vm6, %v2729_v37  ;;  %v2730_v38 = vmov (!%p1893_p6), 0   ;;  %v2731_v39 = vmov (!%p1893_p6), 0.0  }
 0x876   : > { %v1363_v28 = vrot.slane %v1358_v26, %v1362_v25  ;;  %v1367_v29 = vrot.slane %v1358_v26, %v1366_v27  ;;  %2265 = vset.pattern.permute.xlu0 (!%p1893_p6), %v2730_v38  ;;  %1499 = vst.msk [vmem:[#allocation5] sm:$0xff] (!%p1893_p6), %vm1497_vm6, %v2731_v39 }
 0x877   : > { %1455 = vmatpush1.bf16.msra.mxu0 %v2249_v11 }
 0x878   : > { %1456 = vmatprep.subr.bf16.mxu0 %v2250_v12 }
 0x87b   : > { %1457 = vmatpush1.bf16.msra.mxu0 %v2252_v13 }
 0x87c   : > { %1458 = vmatprep.subr.bf16.mxu0 %v2253_v14  ;;  %v1500_v40 = vld [vmem:[#allocation4] sm:$0xff] (!%p1893_p6) }
 0x87d   : > { %v1505_v54 = vld [vmem:[#allocation5] sm:$0xff] (!%p1893_p6) }
 0x87f   : > { %1459 = vmatpush1.bf16.msra.mxu0 %v2255_v15 }
 0x880   : > { %1460 = vmatprep.subr.bf16.mxu0 %v2256_v16 }
 0x883   : > { %1461 = vmatpush1.bf16.msra.mxu0 %v2258_v17 }
 0x884   : > { %1462 = vmatprep.subr.bf16.mxu0 %v2259_v18 }
 0x887   : > { %1463 = vmatpush1.bf16.msra.mxu0 %v2261_v19 }
 0x888   : > { %1464 = vmatprep.subr.bf16.mxu0 %v2262_v20 }
 0x88b   : > { %1465 = vmatpush1.bf16.msra.mxu0 %v2264_v21 }
 0x88e   : > { %1483 = vmatmul.mubr.bf16.vlgmr.msra.gmra.mrb[0].mxu0 %v1341_v22 }
 0x95e   : > { %1493 = sbr.rel (%p1893_p6) target bundleno = 2865 (0xb31), region = 116 }
 0x961   : > { %v1484_v30 = vpop.f32.mrb[0].mxu0 }
 0x962   : > { %v1485_v31 = vadd.f32 %v1484_v30, %v1363_v28  ;;  %v1486_v32 = vpop.f32.mrb[1].mxu0 }
 0x963   : > { %v1487_v33 = vadd.f32 %v1486_v32, %v1367_v29  ;;  %v1488_v34 = vpop.f32.mrb[2].mxu0 }
 0x964   : > { %v1489_v35 = vpop.f32.mrb[3].mxu0 }
 0x965   : > { %v1501_v36 = vmax.f32 %v1485_v31, %v1487_v33 }
 0x967   : > { %1502 = vmax.xlane.f32.xlu0 %v1501_v36 }
 0x9f4   : > { %v1503_v41 = vpop.xlane.xlu0 %1502 }
 0x9f5   : > { %v1504_v42 = vmax.f32 %v1500_v40, %v1503_v41 }
 0x9f7   : > { %v1506_v43 = vsub.f32 %v1500_v40, %v1504_v42  ;;  %1527 = vst.msk [vmem:[#allocation4] sm:$0xff] %vm1497_vm6, %v1504_v42  ;;  %1512 = vperm.xlu0 %2265, %v1504_v42  }
 0x9f9   : > { %v1507_v52 = vmul.f32 1.442695, %v1506_v43 }
 0x9fe   : > { %v1531_v60 = vld [vmem:[#allocation4] sm:$0xff] }
 0xa76   : > { %v1513_v44 = vpop.permute.xlu0 %1512 }
 0xa77   : > { %v1515_v45 = vsub.f32 %v1485_v31, %v1513_v44  ;;  %v1516_v46 = vsub.f32 %v1487_v33, %v1513_v44 }
 0xa79   : > { %v1517_v47 = vmul.f32 1.442695, %v1515_v45  ;;  %v1519_v48 = vmul.f32 1.442695, %v1516_v46 }
 0xa7b   : > { %2266 = vpow2.f32 %v1517_v47 }
 0xa7c   : > { %2268 = vpow2.f32 %v1519_v48 }
 0xa7d   : > { %2270 = vpow2.f32 %v1507_v52 }
 0xa85   : > { %v2267_v49 = vpop.eup %2266 }
 0xa86   : > { %v2269_v50 = vpop.eup %2268 }
 0xa87   : > { %v1521_v51 = vadd.f32 %v2269_v50, %v2267_v49  ;;  %v2271_v53 = vpop.eup %2270 }
 0xa88   : > { %v1509_v55 = vmul.f32 %v2271_v53, %v1505_v54 }
 0xa89   : > { %1522 = vadd.xlane.f32.xlu1 %v1521_v51 }
 0xb16   : > { %v1523_v56 = vpop.xlane.xlu1 %1522 }
 0xb17   : > { %v1524_v57 = vadd.f32 %v1523_v56, %v1509_v55 }
 0xb19   : > { %1526 = vst.msk [vmem:[#allocation5] sm:$0xff] %vm1497_vm6, %v1524_v57 }
 0xb20   : > { %v1532_v1 = vld [vmem:[#allocation5] sm:$0xff] }
 0xb21   : > { %2272 = vlog2.f32 %v1532_v1 }
 0xb2b   : > { %v2273_v58 = vpop.eup %2272 }
 0xb2c   : > { %v1534_v59 = vmul.f32 0.6931472, %v2273_v58 }
 0xb2e   : > { %v1535_v61 = vadd.f32 %v1534_v59, %v1531_v60 }
 0xb30   : > { %1536 = vst.msk [vmem:[#allocation6] sm:$0xff] %vm1497_vm6, %v1535_v61 }
 0xb31 PF: > { %s3405_s27 = sld [smem:[#allocation35_spill]] }
 0xb37   : > { %p1894_p1 = scmp.ne.s32.totalorder %s3405_s27, 1 }
 0xb38   : > { %v1541_v62 = vld [vmem:[#allocation6] sm:$0xff] (!%p1894_p1)  ;;  %v2732_v63 = vmov (!%p1894_p1), 0  }
 0xb39   : > { %1540 = sbr.rel (%p1894_p1) target bundleno = 3005 (0xbbd), region = 128  ;;  %2274 = vset.pattern.permute.xlu0 (!%p1894_p1), %v2732_v63 }
 0xb3a   : > { %1544 = vperm.xlu0 (!%p1894_p1), %2274, %v1541_v62  }
 0xbb9   : > { %v1545_v0 = vpop.permute.xlu0 %1544 }
 0xbba   : > { %v1547_v2 = vsub.f32 %v1485_v31, %v1545_v0  ;;  %v1548_v3 = vsub.f32 %v1487_v33, %v1545_v0 }
 0xbbc   : > { %1549 = vst [vmem:[%s3212_s11] sm:$0xff] %v1547_v2  ;;  %1550 = vst [vmem:[%s3212_s11 + $0x8] sm:$0xff] %v1548_v3 }
 0xbbd PF: > { %s3406_s29 = sld [smem:[#allocation36_spill]]  ;;  %s1569_s7 = sshll.u32 %s3212_s11, 4  ;;  %s1570_s7 = int_to_ptr.vmem [resolvable:$true] %s1569_s7 }
 0xbbe   : > { %s3407_s2 = sld [smem:[#allocation50_spill]]  ;;  %s1552_s13 = scalar_lea.sflag [#allocation9], %s3174_s21 }
 0xbbf   : > { %s2589_s20 = scalar_lea.vmem %s1570_s7, 256  ;;  %p3408_p2 = scmp.ne.s32.totalorder %s3376_s30, 0 }
 0xbc0   : > { %p2590_p4 = scmp.ne.s32.totalorder %s1570_s7, %s2589_s20  ;;  %s2733_s22 = smov [#allocation25]  }
 0xbc1   : > { %s2593_s26 = sshll.u32 %s2733_s22, 4  ;;  %s2594_s26 = int_to_ptr.vmem [resolvable:$false] %s2593_s26 }
 0xbc2   : > { %p2591_p5 = pnand %p2590_p4, %p3408_p2  ;;  %s2595_s19 = scalar_lea.vmem %s2594_s26, 512 }
 0xbc3   : > { %s1902_s15 = sshll.u32 %s3406_s29, 8  ;;  %p2596_p3 = scmp.lt.s32.totalorder %s1570_s7, %s2594_s26 }
 0xbc4   : > { %s3260_s17 = scalar_lea.hbm %s3407_s2, %s1902_s15  ;;  %p2592_p13 = pneg %p2591_p5 }
 0xbc5   : > { %p2597_p9 = scmp.lt.s32.totalorder %s2595_s19, %s2589_s20 }
 0xbc7   : > { %p2598_p11 = por %p2597_p9, %p2596_p3 }
 0xbc9   : > { %p2599_p12 = pnand %p2598_p11, %p2592_p13 }
 0xbcb   : > { %2602 = shalt.err (!%p2599_p12)
}
 0xbcc   : > { %s2603_s21 = scalar_lea.hbm %s3260_s17, 256  ;;  %s2607_s0 = scalar_lea.hbm %s3407_s2, 512 }
 0xbcd   : > { %p2604_p7 = scmp.ne.s32.totalorder %s3260_s17, %s2603_s21  ;;  %p2608_p10 = scmp.lt.u32.totalorder %s3260_s17, %s3407_s2 }
 0xbce   : > { %p2609_p6 = scmp.lt.u32.totalorder %s2607_s0, %s2603_s21  ;;  %p2611_p4 = scmp.lt.u32.totalorder %s2603_s21, %s3260_s17 }
 0xbcf   : > { %p2605_p8 = pnand %p2604_p7, %p3408_p2 }
 0xbd0   : > { %p2610_p1 = por %p2609_p6, %p2608_p10 }
 0xbd1   : > { %p2606_p0 = pneg %p2605_p8 }
 0xbd2   : > { %p2612_p5 = por %p2611_p4, %p2610_p1 }
 0xbd4   : > { %p2613_p13 = pnand %p2612_p5, %p2606_p0 }
 0xbd6   : > { %2616 = shalt.err (!%p2613_p13)
}
 0xbd7   : > { %2003 = dma.vmem_to_hbm [thread:$0]  (%p3408_p2), %s1570_s7, 256, %s3260_s17, %s1552_s13  }
 0xbd8 PF: > { %s3409_s25 = sld [smem:[#allocation33_spill]]  ;;  %s3410_s5 = sld [smem:[#allocation41_spill]] }
 0xbd9   : > { %p2061_p3 = scmp.ge.s32.totalorder %s2707_s24, 2 }
 0xbde   : > { %s1581_s27 = sand.u32 1, %s3409_s25   ;;  %p3411_p9 = scmp.ne.s32.totalorder %s3410_s5, 0 }
 0xbdf   : > { %s1582_s29 = scalar_lea.sflag [#allocation9], %s1581_s27 }
 0xbe0   : > { %p2041_p11 = pnand %p2061_p3, %p3411_p9 }
 0xbe2   : > { %2674 = dma.done.wait (!%p2041_p11), %s1582_s29, 256  }
 0xbe3   : > { %2676 = vsyncadd (!%p2041_p11), %s1582_s29, 4294967040  ;;  %s34_s24 = sadd.s32 1, %s2707_s24   ;;  %s3412_s15 = sld [smem:[#allocation34_spill]] }
 0xbe4   : > { %p31_p12 = scmp.ge.s32.totalorder %s34_s24, 6   ;;  %s3413_s19 = sld [smem:[#allocation42_spill]] }
 0xbe5   : > { %s3414_s20 = sld [smem:[#allocation37_spill]]  ;;  %s3415_s22 = sld [smem:[#allocation39_spill]] }
 0xbe6   : > { %s3416_s30 = sld [smem:[#allocation40_spill]]  ;;  %s3417_s17 = smov %s2683_s18 }
 0xbe7   : > { %s3419_s21 = smov %s2703_s23  ;;  %33 = sbr.rel (!%p31_p12) target bundleno = 22 (0x16), region = 187 }
 0xbe9   : > { %s3418_s18 = smov %s3412_s15 }
 0xbec   : > { %s3420_s23 = smov %s3416_s30 }
 0xbee   :  { %1587 = vsyncpa [#allocation8], 1 }
 0xbef   :  { %1589 = vsyncpa [#allocation8 + $0x1], 1 }
 0xbf0   :  { %1590 = vsyncpa [#allocation11], 1 }
 0xbf1   :  { %1592 = vsyncpa [#allocation11 + $0x1], 1 }
 0xbf2   :  { %1593 = vsyncpa [#allocation14], 1 }
 0xbf3   :  { %1594 = vsyncpa [#allocation17], 1 }
 0xbf4   :  { %1595 = vsyncpa [#allocation20], 1 }
 0xbf5   :  { %1596 = vsyncpa [#allocation23], 1 }
 0xbf6   :  { %1597 = vsyncpa [#allocation9], 1 }
 0xbf7   :  { %1599 = vsyncpa [#allocation9 + $0x1], 1 }

// kernel: tpu_custom_call.1
= control target key start
LH: loop header
LB: loop body
LE: loop exit
PB: predicated region body
PF: predicated region fallthrough
CT: control target
= control target key end

     0   :  { %s3309_s0 = inlined_call_operand.hbm [shape: bf16[2,8,32], index: 0, kind: input, shape index: {}]   ;;  %s3310_s1 = inlined_call_operand.hbm [shape: bf16[2,64,8], index: 1, kind: input, shape index: {}]   ;;  %s3311_s2 = inlined_call_operand.hbm [shape: bf16[2,8,128], index: 2, kind: input, shape index: {}]   ;;  %s3312_s3 = inlined_call_operand.hbm [shape: bf16[32,128], index: 3, kind: input, shape index: {}]   ;;  %s3313_s4 = inlined_call_operand.hbm [shape: f32[1,128], index: 4, kind: input, shape index: {}]   ;;  %s3314_s5 = inlined_call_operand.hbm [shape: bf16[384,256], index: 5, kind: input, shape index: {}]   ;;  %s3315_s6 = inlined_call_operand.hbm [shape: f32[1,256], index: 6, kind: input, shape index: {}]   ;;  %s3316_s7 = inlined_call_operand.hbm [shape: bf16[64,128], index: 7, kind: input, shape index: {}]   ;;  %s3317_s8 = inlined_call_operand.hbm [shape: f32[1,128], index: 8, kind: input, shape index: {}]   ;;  %s3318_s9 = inlined_call_operand.hbm [shape: bf16[128,256], index: 9, kind: input, shape index: {}]   ;;  %s3319_s10 = inlined_call_operand.hbm [shape: f32[1,256], index: 10, kind: input, shape index: {}]   ;;  %s3320_s11 = inlined_call_operand.hbm [shape: f32[2,8,256], index: 11, kind: output, shape index: {}]  }
   0x1   :  { %3348 = sst [smem:[#allocation43_spill]] %s3309_s0 }
   0x2   :  { %3349 = sst [smem:[#allocation44_spill]] %s3310_s1 }
   0x3   :  { %3350 = sst [smem:[#allocation45_spill]] %s3311_s2 }
   0x4   :  { %3351 = sst [smem:[#allocation46_spill]] %s3312_s3 }
   0x5   :  { %3352 = sst [smem:[#allocation47_spill]] %s3314_s5 }
   0x6   :  { %3353 = sst [smem:[#allocation48_spill]] %s3316_s7 }
   0x7   :  { %3354 = sst [smem:[#allocation49_spill]] %s3318_s9 }
   0x8   :  { %3355 = sst [smem:[#allocation50_spill]] %s3320_s11 }
   0x9   :  { %16 = vsyncpa [#allocation8], 0 }
   0xa   :  { %18 = vsyncpa [#allocation8 + $0x1], 0 }
   0xb   :  { %19 = vsyncpa [#allocation11], 0 }
   0xc   :  { %21 = vsyncpa [#allocation11 + $0x1], 0 }
   0xd   :  { %22 = vsyncpa [#allocation14], 0 }
   0xe   :  { %23 = vsyncpa [#allocation17], 0 }
   0xf   :  { %24 = vsyncpa [#allocation20], 0 }
  0x10   :  { %25 = vsyncpa [#allocation23], 0 }
  0x11   :  { %26 = vsyncpa [#allocation9], 0 }
  0x12   :  { %28 = vsyncpa [#allocation9 + $0x1], 0  ;;  %s2794_s17 = smov 0   ;;  %s2796_s18 = smov 0  }
  0x13   :  { %s2798_s19 = smov 0   ;;  %s2800_s20 = smov 0  }
  0x14   :  { %s2802_s21 = smov 0   ;;  %s2804_s22 = smov 0  }
  0x15   :  { %s2806_s23 = smov 0   ;;  %s2808_s24 = smov 0  }
  0x16 LB: > { %3356 = sst [smem:[#allocation33_spill]] %s2679_s17  ;;  %s2835_s25 = sadd.s32 4294967295, %s2707_s24   ;;  %s2707_s24 = sphi %s2808_s24, %s34_s24   ;;  %s2703_s23 = sphi %s2806_s23, %s3420_s23   ;;  %s2699_s22 = sphi %s2804_s22, %s3415_s22   ;;  %s2695_s21 = sphi %s2802_s21, %s3419_s21   ;;  %s2691_s20 = sphi %s2800_s20, %s3414_s20   ;;  %s2687_s19 = sphi %s2798_s19, %s3413_s19   ;;  %s2683_s18 = sphi %s2796_s18, %s3418_s18   ;;  %s2679_s17 = sphi %s2794_s17, %s3417_s17  }
  0x17   : > { %3357 = sst [smem:[#allocation34_spill]] %s2687_s19  ;;  %p1781_p0 = scmp.ge.s32.totalorder %s2707_s24, 1 }
  0x18   : > { %3358 = sst [smem:[#allocation35_spill]] %s2691_s20  ;;  %p3322_p1 = scmp.eq.s32.totalorder %s2835_s25, 0 }
  0x19   : > { %3359 = sst [smem:[#allocation36_spill]] %s2695_s21  ;;  %p344_p2 = scmp.lt.s32.totalorder %s2707_s24, 5 }
  0x1a   : > { %3360 = sst [smem:[#allocation37_spill]] %s2699_s22  ;;  %s2709_s27 = smov [#allocation13]  }
  0x1b   : > { %p2840_p3 = pnand %p1781_p0, %p344_p2  ;;  %s356_s28 = sshll.u32 %s2709_s27, 4  ;;  %s357_s28 = int_to_ptr.vmem [resolvable:$true] %s356_s28 }
  0x1c   : > { %s2710_s30 = smov [#allocation16]   ;;  %s3364_s3 = sld [smem:[#allocation46_spill]] }
  0x1d   : > { %s3361_s26 = scalar_select %p2840_p3, 1, 0 }
  0x1e   : > { %p2005_p4 = pneg %p2840_p3  ;;  %s380_s12 = sshll.u32 %s2710_s30, 4  ;;  %s2852_s12 = int_to_ptr.vmem [resolvable:$true] %s380_s12 }
  0x1f   : > { %3362 = sst [smem:[#allocation38_spill]] %s3361_s26 }
  0x20   : > { %p2848_p5 = pnand %p2005_p4, %p3322_p1 }
  0x22   : > { %s3363_s29 = scalar_select %p2848_p5, 1, 0 }
  0x23   : > { %s2275_s15 = scalar_lea.hbm %s3364_s3, 256  ;;  %p2862_p7 = pneg %p2848_p5 }
  0x24   : > { %p2276_p6 = scmp.ne.s32.totalorder %s3364_s3, %s2275_s15  ;;  %p2282_p10 = scmp.lt.u32.totalorder %s2275_s15, %s3364_s3 }
  0x25   : > { %s3365_s27 = scalar_select %p2862_p7, 1, 0 }
  0x26   : > { %p2278_p8 = pnand %p2862_p7, %p2276_p6 }
  0x28   : > { %p2279_p9 = pneg %p2278_p8 }
  0x2a   : > { %p2284_p11 = pnand %p2282_p10, %p2279_p9 }
  0x2c   : > { %2287 = shalt.err (!%p2284_p11)
}
  0x2d   : > { %s2288_s13 = scalar_lea.vmem %s357_s28, 256  ;;  %p2296_p2 = scmp.lt.s32.totalorder %s357_s28, %s357_s28 }
  0x2e   : > { %p2289_p12 = scmp.ne.s32.totalorder %s357_s28, %s2288_s13  ;;  %p2297_p4 = scmp.lt.s32.totalorder %s2288_s13, %s2288_s13 }
  0x30   : > { %p2291_p13 = pnand %p2289_p12, %p2862_p7  ;;  %p2298_p1 = por %p2297_p4, %p2296_p2 }
  0x32   : > { %p2292_p0 = pneg %p2291_p13 }
  0x34   : > { %p2299_p3 = pnand %p2298_p1, %p2292_p0 }
  0x36   : > { %2302 = shalt.err (!%p2299_p3)
}
  0x37   : > { %s3327_s11 = smov 64   ;;  %s3329_s14 = smov 4  }
  0x38   : > { %2008 = dma.hbm_to_vmem [thread:$0]  (!%p2848_p5), %s3364_s3, 256, %s357_s28, [#allocation14], %s3327_s11, %s3327_s11, %s3329_s14  }
  0x39   : > { %s3366_s5 = sld [smem:[#allocation47_spill]] }
  0x3f   : > { %s2303_s20 = scalar_lea.hbm %s3366_s5, 6144 }
  0x40   : > { %p2304_p1 = scmp.ne.s32.totalorder %s3366_s5, %s2303_s20  ;;  %p2310_p8 = scmp.lt.u32.totalorder %s2303_s20, %s3366_s5 }
  0x42   : > { %p2306_p3 = pnand %p2304_p1, %p2862_p7 }
  0x44   : > { %p2307_p6 = pneg %p2306_p3 }
  0x46   : > { %p2312_p9 = pnand %p2310_p8, %p2307_p6 }
  0x48   : > { %2315 = shalt.err (!%p2312_p9)
}
  0x49   : > { %s2316_s28 = scalar_lea.vmem %s2852_s12, 6144  ;;  %p2324_p13 = scmp.lt.s32.totalorder %s2852_s12, %s2852_s12 }
  0x4a   : > { %p2317_p10 = scmp.ne.s32.totalorder %s2852_s12, %s2316_s28  ;;  %p2325_p0 = scmp.lt.s32.totalorder %s2316_s28, %s2316_s28 }
  0x4c   : > { %p2319_p11 = pnand %p2317_p10, %p2862_p7  ;;  %p2326_p2 = por %p2325_p0, %p2324_p13 }
  0x4e   : > { %p2320_p12 = pneg %p2319_p11 }
  0x50   : > { %p2327_p4 = pnand %p2326_p2, %p2320_p12 }
  0x52   : > { %2330 = shalt.err (!%p2327_p4)
}
  0x53   : > { %s3331_s26 = smov 128   ;;  %s2714_s0 = smov 8  }
  0x54   : > { %2014 = dma.hbm_to_vmem [thread:$0]  (!%p2848_p5), %s3366_s5, 6144, %s2852_s12, [#allocation17], %s3331_s26, %s3331_s26, %s2714_s0  }
  0x55   : > { %s2715_s21 = smov [#allocation19]   ;;  %s2716_s16 = smov [#allocation22]  }
  0x56   : > { %s404_s15 = sshll.u32 %s2715_s21, 4  ;;  %s431_s30 = sshll.u32 %s2716_s16, 4  ;;  %s405_s15 = int_to_ptr.vmem [resolvable:$true] %s404_s15  ;;  %s2907_s30 = int_to_ptr.vmem [resolvable:$true] %s431_s30 }
  0x57   : > { %s3367_s7 = sld [smem:[#allocation48_spill]] }
  0x5d   : > { %s2331_s11 = scalar_lea.hbm %s3367_s7, 512 }
  0x5e   : > { %p2332_p1 = scmp.ne.s32.totalorder %s3367_s7, %s2331_s11  ;;  %p2338_p8 = scmp.lt.u32.totalorder %s2331_s11, %s3367_s7 }
  0x60   : > { %p2334_p3 = pnand %p2332_p1, %p2862_p7 }
  0x62   : > { %p2335_p6 = pneg %p2334_p3 }
  0x64   : > { %p2340_p9 = pnand %p2338_p8, %p2335_p6 }
  0x66   : > { %2343 = shalt.err (!%p2340_p9)
}
  0x67   : > { %s2344_s20 = scalar_lea.vmem %s405_s15, 512  ;;  %p2352_p13 = scmp.lt.s32.totalorder %s405_s15, %s405_s15 }
  0x68   : > { %p2345_p10 = scmp.ne.s32.totalorder %s405_s15, %s2344_s20  ;;  %p2353_p0 = scmp.lt.s32.totalorder %s2344_s20, %s2344_s20 }
  0x6a   : > { %p2347_p11 = pnand %p2345_p10, %p2862_p7  ;;  %p2354_p2 = por %p2353_p0, %p2352_p13 }
  0x6c   : > { %p2348_p12 = pneg %p2347_p11 }
  0x6e   : > { %p2355_p4 = pnand %p2354_p2, %p2348_p12 }
  0x70   : > { %2358 = shalt.err (!%p2355_p4)
}
  0x71   : > { %s3368_s3 = smov 4   ;;  %s3369_s14 = smov 64  }
  0x72   : > { %2020 = dma.hbm_to_vmem [thread:$0]  (!%p2848_p5), %s3367_s7, 512, %s405_s15, [#allocation20], %s3369_s14, %s3369_s14, %s3368_s3  }
  0x73   : > { %s3370_s9 = sld [smem:[#allocation49_spill]] }
  0x79   : > { %s2359_s28 = scalar_lea.hbm %s3370_s9, 2048 }
  0x7a   : > { %p2360_p1 = scmp.ne.s32.totalorder %s3370_s9, %s2359_s28  ;;  %p2366_p8 = scmp.lt.u32.totalorder %s2359_s28, %s3370_s9 }
  0x7c   : > { %p2362_p3 = pnand %p2360_p1, %p2862_p7 }
  0x7e   : > { %p2363_p6 = pneg %p2362_p3 }
  0x80   : > { %p2368_p9 = pnand %p2366_p8, %p2363_p6 }
  0x82   : > { %2371 = shalt.err (!%p2368_p9)
}
  0x83   : > { %s2372_s15 = scalar_lea.vmem %s2907_s30, 2048  ;;  %p2380_p13 = scmp.lt.s32.totalorder %s2907_s30, %s2907_s30 }
  0x84   : > { %p2373_p10 = scmp.ne.s32.totalorder %s2907_s30, %s2372_s15  ;;  %p2381_p0 = scmp.lt.s32.totalorder %s2372_s15, %s2372_s15 }
  0x86   : > { %p2375_p11 = pnand %p2373_p10, %p2862_p7  ;;  %p2382_p2 = por %p2381_p0, %p2380_p13 }
  0x88   : > { %p2376_p12 = pneg %p2375_p11 }
  0x8a   : > { %p2383_p4 = pnand %p2382_p2, %p2376_p12 }
  0x8c   : > { %2386 = shalt.err (!%p2383_p4)
}
  0x8d   : > { %s3371_s26 = smov 128   ;;  %s1780_s16 = sadd.s32 4294967294, %s2707_s24  }
  0x8e   : > { %2026 = dma.hbm_to_vmem [thread:$0]  (!%p2848_p5), %s3370_s9, 2048, %s2907_s30, [#allocation23], %s3371_s26, %s3371_s26, %s2714_s0  }
  0x8f   : > { %s49_s13 = sadd.s32 1, %s2699_s22  ;;  %s53_s28 = sadd.s32 1, %s2703_s23 }
  0x90   : > { %p51_p1 = scmp.ge.s32.totalorder %s49_s13, 2  ;;  %s60_s2 = sadd.s32 1, %s2687_s19 }
  0x91   : > { %p67_p3 = scmp.ne.s32.totalorder %s2687_s19, %s2683_s18  ;;  %p68_p6 = scmp.eq.s32.totalorder %s2707_s24, 0 }
  0x92   : > { %s3422_s13 = smov (%p51_p1, %s49_s13), 0  ;;  %s3424_s28 = smov (!%p51_p1, %s53_s28), %s2703_s23 }
  0x93   : > { %3372 = sst [smem:[#allocation39_spill]] %s3422_s13  ;;  %p73_p8 = scmp.ne.s32.totalorder %s2683_s18, %s2679_s17 }
  0x94   : > { %p55_p9 = scmp.ge.s32.totalorder %s3424_s28, 2  ;;  %p331_p10 = scmp.eq.s32.totalorder %s2835_s25, 3 }
  0x95   : > { %p69_p11 = por %p68_p6, %p67_p3  ;;  %p3373_p12 = scmp.eq.s32.totalorder %s2835_s25, 0 }
  0x96   : > { %s3426_s28 = smov (%p55_p9, %s3424_s28), 0  ;;  %p2977_p0 = por %p331_p10, %p67_p3 }
  0x97   : > { %p2971_p13 = por %p3373_p12, %p73_p8  ;;  %3375 = sst [smem:[#allocation40_spill]] %s3426_s28 }
  0x98   : > { %s3376_s30 = scalar_select %p2977_p0, 1, 0 }
  0x99   : > { %s3374_s0 = scalar_select %p2971_p13, 1, 0 }
  0x9a   : > { %p337_p2 = scmp.eq.s32.totalorder %s1780_s16, 3  ;;  %s57_s12 = ssub.s32 %s2703_s23, %s3426_s28 }
  0x9b   : > { %p2052_p4 = scmp.lt.s32.totalorder %s2707_s24, 4  ;;  %p58_p1 = scmp.eq.s32.totalorder %s57_s12, 0 }
  0x9c   : > { %p2984_p5 = por %p337_p2, %p73_p8  ;;  %s2989_s15 = sand.u32 1, %s2687_s19  }
  0x9d   : > { %p2991_p6 = pnand %p2052_p4, %p69_p11  ;;  %s477_s11 = sand.u32 1, %s2707_s24  }
  0x9e   : > { %s3377_s20 = scalar_select %p2984_p5, 1, 0 }
  0x9f   : > { %s3379_s26 = scalar_select %p2991_p6, 1, 0 }
  0xa0   : > { %3378 = sst [smem:[#allocation41_spill]] %s3377_s20  ;;  %s1793_s5 = sshll.u32 %s2989_s15, 5 }
  0xa1   : > { %s2996_s21 = scalar_select %p58_p1, %s2687_s19, %s60_s2  }
  0xa2   : > { %s1900_s16 = sshll.u32 %s2703_s23, 9  ;;  %s3381_s1 = sld [smem:[#allocation44_spill]] }
  0xa3   : > { %3380 = sst [smem:[#allocation42_spill]] %s2996_s21  ;;  %s481_s28 = scalar_lea.vmem [#allocation10], %s1793_s5 }
  0xa4   : > { %s488_s13 = sshll.u32 %s481_s28, 4  ;;  %s3008_s22 = scalar_lea.sflag [#allocation11], %s477_s11  ;;  %s3006_s13 = int_to_ptr.vmem [resolvable:$true] %s488_s13 }
  0xa5   : > { %p3014_p8 = pneg %p2991_p6 }
  0xa7   : > { %s3382_s21 = scalar_select %p3014_p8, 1, 0 }
  0xa8   : > { %s3004_s12 = scalar_lea.hbm %s3381_s1, %s1900_s16  ;;  %s2392_s5 = scalar_lea.hbm %s3381_s1, 1024 }
  0xa9   : > { %s2387_s2 = scalar_lea.hbm %s3004_s12, 512  ;;  %p2393_p11 = scmp.lt.u32.totalorder %s3004_s12, %s3381_s1 }
  0xaa   : > { %p2388_p3 = scmp.ne.s32.totalorder %s3004_s12, %s2387_s2  ;;  %p2394_p12 = scmp.lt.u32.totalorder %s2392_s5, %s2387_s2 }
  0xab   : > { %p2396_p4 = scmp.lt.u32.totalorder %s2387_s2, %s3004_s12 }
  0xac   : > { %p2390_p9 = pnand %p3014_p8, %p2388_p3  ;;  %p2395_p2 = por %p2394_p12, %p2393_p11 }
  0xae   : > { %p2391_p10 = pneg %p2390_p9  ;;  %p2397_p1 = por %p2396_p4, %p2395_p2 }
  0xb0   : > { %p2398_p5 = pnand %p2397_p1, %p2391_p10 }
  0xb2   : > { %2401 = shalt.err (!%p2398_p5)
}
  0xb3   : > { %s2402_s11 = scalar_lea.vmem %s3006_s13, 512  ;;  %s2717_s7 = smov [#allocation10]  }
  0xb4   : > { %p2403_p3 = scmp.ne.s32.totalorder %s3006_s13, %s2402_s11  ;;  %s2407_s9 = sshll.u32 %s2717_s7, 4  ;;  %s2408_s9 = int_to_ptr.vmem [resolvable:$false] %s2407_s9 }
  0xb5   : > { %s2409_s28 = scalar_lea.vmem %s2408_s9, 1024  ;;  %p2410_p13 = scmp.lt.s32.totalorder %s3006_s13, %s2408_s9 }
  0xb6   : > { %p2405_p9 = pnand %p2403_p3, %p3014_p8  ;;  %p2411_p7 = scmp.lt.s32.totalorder %s2409_s28, %s2402_s11 }
  0xb8   : > { %p2406_p0 = pneg %p2405_p9  ;;  %p2412_p11 = por %p2411_p7, %p2410_p13 }
  0xba   : > { %p2413_p12 = pnand %p2412_p11, %p2406_p0 }
  0xbc   : > { %2416 = shalt.err (!%p2413_p12)
}
  0xbd   : > { %2036 = dma.hbm_to_vmem [thread:$0]  (!%p2991_p6), %s3004_s12, 512, %s3006_s13, %s3008_s22, %s3369_s14, %s3369_s14, %s3368_s3  }
  0xbe   : > { %s2718_s2 = smov [#allocation15]   ;;  %s2719_s16 = smov [#allocation18]  }
  0xbf   : > { %s370_s5 = sshll.u32 %s2718_s2, 4  ;;  %s394_s7 = sshll.u32 %s2719_s16, 4  ;;  %s371_s5 = int_to_ptr.vmem [resolvable:$true] %s370_s5  ;;  %s395_s7 = int_to_ptr.vmem [resolvable:$true] %s394_s7 }
  0xc0   : > { %s2417_s28 = scalar_lea.hbm %s3313_s4, 16  ;;  %p3383_p7 = scmp.ne.s32.totalorder %s3365_s27, 0 }
  0xc1   : > { %p2418_p5 = scmp.ne.s32.totalorder %s3313_s4, %s2417_s28  ;;  %p2424_p10 = scmp.lt.u32.totalorder %s2417_s28, %s3313_s4 }
  0xc3   : > { %p2420_p13 = pnand %p2418_p5, %p3383_p7 }
  0xc5   : > { %p2421_p0 = pneg %p2420_p13 }
  0xc7   : > { %p2426_p2 = pnand %p2424_p10, %p2421_p0 }
  0xc9   : > { %2429 = shalt.err (!%p2426_p2)
}
  0xca   : > { %s2430_s3 = scalar_lea.vmem %s371_s5, 16  ;;  %s2437_s14 = scalar_lea.vmem %s371_s5, 32 }
  0xcb   : > { %p2431_p4 = scmp.ne.s32.totalorder %s371_s5, %s2430_s3  ;;  %p2438_p9 = scmp.lt.s32.totalorder %s371_s5, %s371_s5 }
  0xcc   : > { %p2439_p11 = scmp.lt.s32.totalorder %s2437_s14, %s2430_s3 }
  0xcd   : > { %p2433_p1 = pnand %p2431_p4, %p3383_p7 }
  0xce   : > { %p2440_p12 = por %p2439_p11, %p2438_p9 }
  0xcf   : > { %p2434_p3 = pneg %p2433_p1 }
  0xd1   : > { %p2441_p6 = pnand %p2440_p12, %p2434_p3 }
  0xd3   : > { %2444 = shalt.err (!%p2441_p6)
}
  0xd4   : > { %p3384_p5 = scmp.ne.s32.totalorder %s3363_s29, 0  ;;  %s2445_s20 = scalar_lea.hbm %s3315_s6, 32 }
  0xd5   : > { %p2446_p13 = scmp.ne.s32.totalorder %s3315_s6, %s2445_s20  ;;  %p2452_p6 = scmp.lt.u32.totalorder %s2445_s20, %s3315_s6 }
  0xd6   : > { %2011 = dma.hbm_to_vmem [thread:$0]  (!%p3384_p5), %s3313_s4, 16, %s371_s5, [#allocation14]  }
  0xd7   : > { %p2448_p0 = pnand %p2446_p13, %p3383_p7 }
  0xd9   : > { %p2449_p10 = pneg %p2448_p0 }
  0xdb   : > { %p2454_p2 = pnand %p2452_p6, %p2449_p10 }
  0xdd   : > { %2457 = shalt.err (!%p2454_p2)
}
  0xde   : > { %s2458_s11 = scalar_lea.vmem %s395_s7, 32  ;;  %p2466_p9 = scmp.lt.s32.totalorder %s395_s7, %s395_s7 }
  0xdf   : > { %p2459_p4 = scmp.ne.s32.totalorder %s395_s7, %s2458_s11  ;;  %p2467_p11 = scmp.lt.s32.totalorder %s2458_s11, %s2458_s11 }
  0xe1   : > { %p2461_p1 = pnand %p2459_p4, %p3383_p7  ;;  %p2468_p12 = por %p2467_p11, %p2466_p9 }
  0xe3   : > { %p2462_p3 = pneg %p2461_p1 }
  0xe5   : > { %p2469_p8 = pnand %p2468_p12, %p2462_p3 }
  0xe7   : > { %2472 = shalt.err (!%p2469_p8)
}
  0xe8   : > { %2017 = dma.hbm_to_vmem [thread:$0]  (!%p3384_p5), %s3315_s6, 32, %s395_s7, [#allocation17]  }
  0xe9   : > { %s2720_s3 = smov [#allocation21]   ;;  %s2721_s1 = smov [#allocation24]  }
  0xea   : > { %s418_s14 = sshll.u32 %s2720_s3, 4  ;;  %s448_s19 = sshll.u32 %s2721_s1, 4  ;;  %s419_s14 = int_to_ptr.vmem [resolvable:$true] %s418_s14  ;;  %s449_s19 = int_to_ptr.vmem [resolvable:$true] %s448_s19 }
  0xeb   : > { %s2473_s20 = scalar_lea.hbm %s3317_s8, 16 }
  0xec   : > { %p2474_p8 = scmp.ne.s32.totalorder %s3317_s8, %s2473_s20  ;;  %p2480_p10 = scmp.lt.u32.totalorder %s2473_s20, %s3317_s8 }
  0xee   : > { %p2476_p13 = pnand %p2474_p8, %p3383_p7 }
  0xf0   : > { %p2477_p0 = pneg %p2476_p13 }
  0xf2   : > { %p2482_p6 = pnand %p2480_p10, %p2477_p0 }
  0xf4   : > { %2485 = shalt.err (!%p2482_p6)
}
  0xf5   : > { %s2486_s7 = scalar_lea.vmem %s419_s14, 16  ;;  %s2493_s11 = scalar_lea.vmem %s419_s14, 32 }
  0xf6   : > { %p2487_p2 = scmp.ne.s32.totalorder %s419_s14, %s2486_s7  ;;  %p2494_p3 = scmp.lt.s32.totalorder %s419_s14, %s419_s14 }
  0xf7   : > { %p2495_p9 = scmp.lt.s32.totalorder %s2493_s11, %s2486_s7 }
  0xf8   : > { %p2489_p4 = pnand %p2487_p2, %p3383_p7 }
  0xf9   : > { %p2496_p11 = por %p2495_p9, %p2494_p3 }
  0xfa   : > { %p2490_p1 = pneg %p2489_p4 }
  0xfc   : > { %p2497_p12 = pnand %p2496_p11, %p2490_p1 }
  0xfe   : > { %2500 = shalt.err (!%p2497_p12)
}
  0xff   : > { %2023 = dma.hbm_to_vmem [thread:$0]  (!%p3384_p5), %s3317_s8, 16, %s419_s14, [#allocation20]  }
 0x100   : > { %s2501_s17 = scalar_lea.hbm %s3319_s10, 32 }
 0x101   : > { %p2502_p8 = scmp.ne.s32.totalorder %s3319_s10, %s2501_s17  ;;  %p2508_p10 = scmp.lt.u32.totalorder %s2501_s17, %s3319_s10 }
 0x103   : > { %p2504_p13 = pnand %p2502_p8, %p3383_p7 }
 0x105   : > { %p2505_p0 = pneg %p2504_p13 }
 0x107   : > { %p2510_p6 = pnand %p2508_p10, %p2505_p0 }
 0x109   : > { %2513 = shalt.err (!%p2510_p6)
}
 0x10a   : > { %s2514_s16 = scalar_lea.vmem %s449_s19, 32  ;;  %p2522_p3 = scmp.lt.s32.totalorder %s449_s19, %s449_s19 }
 0x10b   : > { %p2515_p2 = scmp.ne.s32.totalorder %s449_s19, %s2514_s16  ;;  %p2523_p9 = scmp.lt.s32.totalorder %s2514_s16, %s2514_s16 }
 0x10d   : > { %p2517_p4 = pnand %p2515_p2, %p3383_p7  ;;  %p2524_p11 = por %p2523_p9, %p2522_p3 }
 0x10f   : > { %p2518_p1 = pneg %p2517_p4 }
 0x111   : > { %p2525_p12 = pnand %p2524_p11, %p2518_p1 }
 0x113   : > { %2528 = shalt.err (!%p2525_p12)
}
 0x114   : > { %2029 = dma.hbm_to_vmem [thread:$0]  (!%p3384_p5), %s3319_s10, 32, %s449_s19, [#allocation23]  }
 0x115   : > { %s3347_s7 = sshll.u32 %s2989_s15, 2  ;;  %s1792_s27 = sshll.u32 %s2703_s23, 6 }
 0x116   : > { %s3385_s28 = sld [smem:[#allocation43_spill]]  ;;  %s463_s29 = scalar_lea.vmem [#allocation7], %s3347_s7 }
 0x117   : > { %s470_s1 = sshll.u32 %s463_s29, 4  ;;  %s3386_s20 = sld [smem:[#allocation45_spill]]  ;;  %s3122_s1 = int_to_ptr.vmem [resolvable:$true] %s470_s1 }
 0x118   : > { %s460_s2 = scalar_lea.sflag [#allocation8], %s2989_s15  ;;  %p3388_p5 = scmp.ne.s32.totalorder %s3382_s21, 0 }
 0x11c   : > { %s3118_s3 = scalar_lea.hbm %s3385_s28, %s1792_s27  ;;  %s2534_s11 = scalar_lea.hbm %s3385_s28, 128 }
 0x11d   : > { %s3387_s12 = smov %s3386_s20  ;;  %s3127_s19 = scalar_lea.hbm %s3386_s20, %s1792_s27 }
 0x11e   : > { %s2529_s16 = scalar_lea.hbm %s3118_s3, 64  ;;  %p2535_p0 = scmp.lt.u32.totalorder %s3118_s3, %s3385_s28 }
 0x11f   : > { %p2530_p7 = scmp.ne.s32.totalorder %s3118_s3, %s2529_s16  ;;  %p2536_p10 = scmp.lt.u32.totalorder %s2534_s11, %s2529_s16 }
 0x120   : > { %p2538_p2 = scmp.lt.u32.totalorder %s2529_s16, %s3118_s3 }
 0x121   : > { %p2532_p8 = pnand %p2530_p7, %p3388_p5  ;;  %p2537_p6 = por %p2536_p10, %p2535_p0 }
 0x123   : > { %p2533_p13 = pneg %p2532_p8  ;;  %p2539_p4 = por %p2538_p2, %p2537_p6 }
 0x125   : > { %p2540_p1 = pnand %p2539_p4, %p2533_p13 }
 0x127   : > { %2543 = shalt.err (!%p2540_p1)
}
 0x128   : > { %s2544_s27 = scalar_lea.vmem %s3122_s1, 64  ;;  %s2722_s29 = smov [#allocation7]  }
 0x129   : > { %p2545_p3 = scmp.ne.s32.totalorder %s3122_s1, %s2544_s27  ;;  %s2549_s17 = sshll.u32 %s2722_s29, 4  ;;  %s2550_s17 = int_to_ptr.vmem [resolvable:$false] %s2549_s17 }
 0x12a   : > { %s2551_s7 = scalar_lea.vmem %s2550_s17, 128  ;;  %p2552_p12 = scmp.lt.s32.totalorder %s3122_s1, %s2550_s17 }
 0x12b   : > { %p2547_p9 = pnand %p2545_p3, %p3388_p5  ;;  %p2553_p7 = scmp.lt.s32.totalorder %s2551_s7, %s2544_s27 }
 0x12d   : > { %p2548_p11 = pneg %p2547_p9  ;;  %p2554_p8 = por %p2553_p7, %p2552_p12 }
 0x12f   : > { %p2555_p0 = pnand %p2554_p8, %p2548_p11 }
 0x131   : > { %2558 = shalt.err (!%p2555_p0)
}
 0x132   : > { %p3389_p13 = scmp.ne.s32.totalorder %s3379_s26, 0  ;;  %s3390_s13 = sshll.u32 %s2989_s15, 2 }
 0x133   : > { %s502_s20 = scalar_lea.vmem [#allocation12], %s3390_s13  ;;  %s2559_s14 = scalar_lea.hbm %s3127_s19, 64 }
 0x134   : > { %2033 = dma.hbm_to_vmem [thread:$0]  (!%p3389_p13), %s3118_s3, 64, %s3122_s1, %s460_s2  }
 0x135   : > { %s509_s16 = sshll.u32 %s502_s20, 4  ;;  %p2560_p10 = scmp.ne.s32.totalorder %s3127_s19, %s2559_s14  ;;  %s510_s16 = int_to_ptr.vmem [resolvable:$true] %s509_s16 }
 0x136   : > { %s2564_s5 = scalar_lea.hbm %s3387_s12, 128  ;;  %p2565_p4 = scmp.lt.u32.totalorder %s3127_s19, %s3387_s12 }
 0x137   : > { %p2562_p6 = pnand %p2560_p10, %p3388_p5  ;;  %p2566_p1 = scmp.lt.u32.totalorder %s2564_s5, %s2559_s14 }
 0x138   : > { %p2568_p9 = scmp.lt.u32.totalorder %s2559_s14, %s3127_s19 }
 0x139   : > { %p2563_p2 = pneg %p2562_p6  ;;  %p2567_p3 = por %p2566_p1, %p2565_p4 }
 0x13b   : > { %p2569_p11 = por %p2568_p9, %p2567_p3 }
 0x13d   : > { %p2570_p12 = pnand %p2569_p11, %p2563_p2 }
 0x13f   : > { %2573 = shalt.err (!%p2570_p12)
}
 0x140   : > { %s2574_s15 = scalar_lea.vmem %s510_s16, 64  ;;  %s2723_s3 = smov [#allocation12]  }
 0x141   : > { %p2575_p7 = scmp.ne.s32.totalorder %s510_s16, %s2574_s15  ;;  %s2579_s1 = sshll.u32 %s2723_s3, 4  ;;  %s2580_s1 = int_to_ptr.vmem [resolvable:$false] %s2579_s1 }
 0x142   : > { %s2581_s2 = scalar_lea.vmem %s2580_s1, 128  ;;  %p2582_p10 = scmp.lt.s32.totalorder %s510_s16, %s2580_s1 }
 0x143   : > { %p2577_p8 = pnand %p2575_p7, %p3388_p5  ;;  %p2583_p6 = scmp.lt.s32.totalorder %s2581_s2, %s2574_s15 }
 0x145   : > { %p2578_p0 = pneg %p2577_p8  ;;  %p2584_p13 = por %p2583_p6, %p2582_p10 }
 0x147   : > { %p2585_p1 = pnand %p2584_p13, %p2578_p0 }
 0x149   : > { %2588 = shalt.err (!%p2585_p1)
}
 0x14a   : > { %p3391_p4 = scmp.ne.s32.totalorder %s3379_s26, 0  ;;  %s3392_s17 = sld [smem:[#allocation38_spill]] }
 0x14c   : > { %2039 = dma.hbm_to_vmem [thread:$0]  (!%p3391_p4), %s3127_s19, 64, %s510_s16, %s3008_s22  }
 0x150   : > { %p3393_p2 = scmp.ne.s32.totalorder %s3392_s17, 0 }
 0x151   : > { %s3174_s21 = sand.u32 (!%p3393_p2), 1, %s2683_s18   ;;  %p3394_p5 = scmp.ne.s32.totalorder (!%p3393_p2), %s3374_s0, 0 }
 0x152   : > { %518 = sbr.rel (%p3393_p2) target bundleno = 3032 (0xbd8), region = 64  ;;  %s1799_s7 = sshll.u32 (!%p3393_p2), %s3174_s21, 2 }
 0x153   : > { %s521_s13 = scalar_lea.sflag (!%p3393_p2), [#allocation8], %s3174_s21  ;;  %s3178_s20 = scalar_lea.vmem (!%p3393_p2), [#allocation7], %s1799_s7 }
 0x159   : > { %2650 = dma.done.wait (%p3394_p5), %s521_s13, 64  }
 0x15a   : > { %2652 = vsyncadd (%p3394_p5), %s521_s13, 4294967232  ;;  %s529_s22 = sand.u32 1, %s2835_s25   ;;  %s1800_s26 = sshll.u32 %s3174_s21, 5 }
 0x15b   : > { %s530_s19 = scalar_lea.sflag [#allocation11], %s529_s22  ;;  %s3186_s16 = scalar_lea.vmem [#allocation10], %s1800_s26 }
 0x15c   : > { %2654 = dma.done.wait (%p3394_p5), %s530_s19, 576  }
 0x15d   : > { %2656 = vsyncadd (%p3394_p5), %s530_s19, 4294966720  ;;  %s3192_s14 = scalar_lea.vmem [#allocation12], %s1799_s7  ;;  %p3395_p13 = scmp.eq.s32.totalorder %s2835_s25, 0 }
 0x15f   : > { %2658 = dma.done.wait (%p3395_p13), [#allocation14], 272   ;;  %p3396_p3 = pmov %p3395_p13 }
 0x161   : > { %2660 = vsyncadd (%p3396_p3), [#allocation14], 4294967024  ;;  %p3397_p9 = pmov %p3396_p3 }
 0x162   : > { %p3398_p11 = pmov %p3396_p3 }
 0x163   : > { %2662 = dma.done.wait (%p3397_p9), [#allocation17], 6176  }
 0x164   : > { %2664 = vsyncadd (%p3398_p11), [#allocation17], 4294961120  ;;  %p3399_p12 = pmov %p3396_p3 }
 0x165   : > { %p3400_p7 = pmov %p3396_p3 }
 0x166   : > { %2666 = dma.done.wait (%p3399_p12), [#allocation20], 528  }
 0x167   : > { %2668 = vsyncadd (%p3400_p7), [#allocation20], 4294966768  ;;  %p3401_p8 = pmov %p3396_p3 }
 0x168   : > { %p3402_p0 = pmov %p3396_p3 }
 0x169   : > { %2670 = dma.done.wait (%p3401_p8), [#allocation23], 2080  }
 0x16a   : > { %2672 = vsyncadd (%p3402_p0), [#allocation23], 4294965216  ;;  %s3403_s0 = sld [smem:[#allocation35_spill]]  ;;  %s1810_s9 = sshll.u32 %s3174_s21, 4 }
 0x16b   : > { %s3212_s11 = scalar_lea.vmem [#allocation25], %s1810_s9 }
 0x170   : > { %p628_p10 = scmp.eq.s32.totalorder %s3403_s0, 0 }
 0x171   : > { %v2147_v0 = vld [vmem:[#allocation13] sm:$0xff] (%p628_p10)   ;;  %v2724_v1 = vmov (%p628_p10), 0.0   ;;  %v2148_v2 = vld [vmem:[#allocation13 + $0x8] sm:$0xff] (%p628_p10)   ;;  %vm2725_vm0 = vmmov (%p628_p10), 0   ;;  %v634_v4 = vld [vmem:[%s3178_s20] sm:$0xf] (%p628_p10) }
 0x172   : > { %633 = sbr.rel (!%p628_p10) target bundleno = 2157 (0x86d), region = 112  ;;  %1918 = vmatprep.subr.bf16.mxu1 (%p628_p10), %v2724_v1  ;;  %702 = vst [vmem:[#allocation2] sm:$0x1] (%p628_p10), %v2724_v1  ;;  %703 = vst [vmem:[#allocation2 + $0x9] sm:$0x1] (%p628_p10), %v2724_v1  ;;  %1922 = vmatprep.mubr.msk.bf16.mxu1 (%p628_p10), %vm2725_vm0, %v2724_v1  ;;  %vm658_vm1 = vcmask (%p628_p10), 261120  }
 0x173   : > { %1919 = vmatpush3.bf16.msra.mxu1 (%p628_p10), %v2147_v0  ;;  %v2151_v3 = vld [vmem:[#allocation16 + $0x4] ss:$8 sps:$4 sm:$0xff] (%p628_p10)   ;;  %v2149_v5 = vld [vmem:[#allocation16] ss:$8 sps:$4 sm:$0xff] (%p628_p10)   ;;  %v2154_v6 = vld [vmem:[#allocation16 + $0x14] ss:$8 sps:$4 sm:$0xff] (%p628_p10)   ;;  %v761_v0 = vlaneseq (%p628_p10) }
 0x174   : > { %1920 = vmatprep.subr.bf16.mxu1 (%p628_p10), %v2724_v1  ;;  %v2152_v7 = vld [vmem:[#allocation16 + $0x10] ss:$8 sps:$4 sm:$0xff] (%p628_p10)   ;;  %v2157_v8 = vld [vmem:[#allocation16 + $0x24] ss:$8 sps:$4 sm:$0xff] (%p628_p10)   ;;  %v2155_v10 = vld [vmem:[#allocation16 + $0x20] ss:$8 sps:$4 sm:$0xff] (%p628_p10)  }
 0x175   : > { %v2173_v9 = vld [vmem:[#allocation16 + $0x104] ss:$8 sps:$4 sm:$0xff] (%p628_p10)   ;;  %v2160_v11 = vld [vmem:[#allocation16 + $0x34] ss:$8 sps:$4 sm:$0xff] (%p628_p10)   ;;  %v2178_v12 = vld [vmem:[#allocation16 + $0x100] ss:$8 sps:$4 sm:$0xff] (%p628_p10)  }
 0x176   : > { %1052 = vmatprep.subr.bf16.mxu0 (%p628_p10), %v2173_v9  ;;  %v2179_v13 = vld [vmem:[#allocation16 + $0x114] ss:$8 sps:$4 sm:$0xff] (%p628_p10)   ;;  %v2158_v14 = vld [vmem:[#allocation16 + $0x30] ss:$8 sps:$4 sm:$0xff] (%p628_p10)   ;;  %v2163_v15 = vld [vmem:[#allocation16 + $0x44] ss:$8 sps:$4 sm:$0xff] (%p628_p10)  }
 0x177   : > { %1921 = vmatpush3.bf16.msra.mxu1 (%p628_p10), %v2148_v2  ;;  %1053 = vmatpush1.bf16.msra.mxu0 (%p628_p10), %v2178_v12  ;;  %v2184_v16 = vld [vmem:[#allocation16 + $0x110] ss:$8 sps:$4 sm:$0xff] (%p628_p10)   ;;  %v2185_v17 = vld [vmem:[#allocation16 + $0x124] ss:$8 sps:$4 sm:$0xff] (%p628_p10)   ;;  %v2161_v18 = vld [vmem:[#allocation16 + $0x40] ss:$8 sps:$4 sm:$0xff] (%p628_p10)  }
 0x178   : > { %1011 = vmatprep.subr.bf16.mxu1 (%p628_p10), %v2151_v3  ;;  %1054 = vmatprep.subr.bf16.mxu0 (%p628_p10), %v2179_v13  ;;  %v2190_v19 = vld [vmem:[#allocation16 + $0x120] ss:$8 sps:$4 sm:$0xff] (%p628_p10)   ;;  %v2191_v20 = vld [vmem:[#allocation16 + $0x134] ss:$8 sps:$4 sm:$0xff] (%p628_p10)   ;;  %v2164_v22 = vld [vmem:[#allocation16 + $0x50] ss:$8 sps:$4 sm:$0xff] (%p628_p10)  }
 0x179   : > { %v2166_v21 = vld [vmem:[#allocation16 + $0x54] ss:$8 sps:$4 sm:$0xff]   ;;  %v2196_v23 = vld [vmem:[#allocation16 + $0x130] ss:$8 sps:$4 sm:$0xff]   ;;  %v2169_v24 = vld [vmem:[#allocation16 + $0x64] ss:$8 sps:$4 sm:$0xff]  }
 0x17a   : > { %1923 = vmatmul.mubr.msk.bf16.vlgmr.msra.gmra.mrb[0].mxu1 %vm658_vm1, %v634_v4  ;;  %v2197_v25 = vld [vmem:[#allocation16 + $0x144] ss:$8 sps:$4 sm:$0xff]   ;;  %v2202_v26 = vld [vmem:[#allocation16 + $0x140] ss:$8 sps:$4 sm:$0xff]   ;;  %v2172_v28 = vld [vmem:[#allocation16 + $0x74] ss:$8 sps:$4 sm:$0xff]  }
 0x17b   : > { %1012 = vmatpush1.bf16.msra.mxu1 %v2149_v5  ;;  %1055 = vmatpush1.bf16.msra.mxu0 %v2184_v16  ;;  %v2167_v27 = vld [vmem:[#allocation16 + $0x60] ss:$8 sps:$4 sm:$0xff]   ;;  %v2170_v29 = vld [vmem:[#allocation16 + $0x70] ss:$8 sps:$4 sm:$0xff]   ;;  %v2177_v30 = vld [vmem:[#allocation16 + $0x84] ss:$8 sps:$4 sm:$0xff]  }
 0x17c   : > { %1013 = vmatprep.subr.bf16.mxu1 %v2154_v6  ;;  %1056 = vmatprep.subr.bf16.mxu0 %v2185_v17  ;;  %v2175_v31 = vld [vmem:[#allocation16 + $0x80] ss:$8 sps:$4 sm:$0xff]   ;;  %v2183_v32 = vld [vmem:[#allocation16 + $0x94] ss:$8 sps:$4 sm:$0xff]   ;;  %v2181_v33 = vld [vmem:[#allocation16 + $0x90] ss:$8 sps:$4 sm:$0xff]  }
 0x17d   : > { %v2189_v34 = vld [vmem:[#allocation16 + $0xa4] ss:$8 sps:$4 sm:$0xff]   ;;  %v2187_v35 = vld [vmem:[#allocation16 + $0xa0] ss:$8 sps:$4 sm:$0xff]   ;;  %v2195_v36 = vld [vmem:[#allocation16 + $0xb4] ss:$8 sps:$4 sm:$0xff]  }
 0x17e   : > { %v2193_v37 = vld [vmem:[#allocation16 + $0xb0] ss:$8 sps:$4 sm:$0xff]   ;;  %v2201_v38 = vld [vmem:[#allocation16 + $0xc4] ss:$8 sps:$4 sm:$0xff]   ;;  %v2199_v39 = vld [vmem:[#allocation16 + $0xc0] ss:$8 sps:$4 sm:$0xff]  }
 0x17f   : > { %1014 = vmatpush1.bf16.msra.mxu1 %v2152_v7  ;;  %1057 = vmatpush1.bf16.msra.mxu0 %v2190_v19  ;;  %v2203_v40 = vld [vmem:[#allocation16 + $0x154] ss:$8 sps:$4 sm:$0xff]   ;;  %v2205_v42 = vld [vmem:[#allocation16 + $0xd0] ss:$8 sps:$4 sm:$0xff]   ;;  %v2209_v44 = vld [vmem:[#allocation16 + $0x164] ss:$8 sps:$4 sm:$0xff]  }
 0x180   : > { %1015 = vmatprep.subr.bf16.mxu1 %v2157_v8  ;;  %1058 = vmatprep.subr.bf16.mxu0 %v2191_v20  ;;  %v2207_v41 = vld [vmem:[#allocation16 + $0xd4] ss:$8 sps:$4 sm:$0xff]   ;;  %v2208_v43 = vld [vmem:[#allocation16 + $0x150] ss:$8 sps:$4 sm:$0xff]   ;;  %v2211_v45 = vld [vmem:[#allocation16 + $0xe0] ss:$8 sps:$4 sm:$0xff]  }
 0x181   : > { %v2213_v46 = vld [vmem:[#allocation16 + $0xe4] ss:$8 sps:$4 sm:$0xff]   ;;  %v2214_v47 = vld [vmem:[#allocation16 + $0x160] ss:$8 sps:$4 sm:$0xff]   ;;  %v2215_v48 = vld [vmem:[#allocation16 + $0x174] ss:$8 sps:$4 sm:$0xff]  }
 0x182   : > { %v2219_v49 = vld [vmem:[#allocation16 + $0xf4] ss:$8 sps:$4 sm:$0xff]   ;;  %v2217_v50 = vld [vmem:[#allocation16 + $0xf0] ss:$8 sps:$4 sm:$0xff]   ;;  %v2726_v52 = vmov 0   ;;  %v762_v2 = vshrl.u32 %v761_v0, 7 }
 0x183   : > { %1016 = vmatpush1.bf16.msra.mxu1 %v2155_v10  ;;  %1059 = vmatpush1.bf16.msra.mxu0 %v2196_v23  ;;  %v2220_v51 = vld [vmem:[#allocation16 + $0x170] ss:$8 sps:$4 sm:$0xff]   ;;  %v1812_v53 = vld [vmem:[#allocation15] ss:$0 sm:$0xff]  ;;  %v759_v4 = vld [vmem:[#allocation18] sm:$0x3] }
 0x184   : > { %1017 = vmatprep.subr.bf16.mxu1 %v2160_v11  ;;  %1060 = vmatprep.subr.bf16.mxu0 %v2197_v25  ;;  %v763_v3 = vsub.s32 0, %v762_v2  ;;  %v767_v5 = vsub.s32 1, %v762_v2  ;;  %vm1100_vm2 = vcmask 1048064   ;;  %s2727_s25 = smov 64   ;;  %vm1111_vm3 = vcmask 523264  }
 0x185   : > { %1084 = vmatprep.mubr.bf16.mxu0 %v2726_v52  ;;  %vm1277_vm4 = vcmask 64512   ;;  %vm1294_vm5 = vcmask 1043456  }
 0x186   : > { %v764_v6 = vrot.slane %v759_v4, %v763_v3  ;;  %v768_v7 = vrot.slane %v759_v4, %v767_v5 }
 0x187   : > { %1018 = vmatpush1.bf16.msra.mxu1 %v2158_v14  ;;  %1061 = vmatpush1.bf16.msra.mxu0 %v2202_v26 }
 0x188   : > { %1019 = vmatprep.subr.bf16.mxu1 %v2163_v15  ;;  %1062 = vmatprep.subr.bf16.mxu0 %v2203_v40 }
 0x18b   : > { %1020 = vmatpush1.bf16.msra.mxu1 %v2161_v18  ;;  %1063 = vmatpush1.bf16.msra.mxu0 %v2208_v43  ;;  %v2226_v43 = vld [vmem:[%s3186_s16 + $0x8] sm:$0xff]  }
 0x18c   : > { %1021 = vmatprep.subr.bf16.mxu1 %v2166_v21  ;;  %1064 = vmatprep.subr.bf16.mxu0 %v2209_v44  ;;  %v2227_v44 = vld [vmem:[%s3186_s16 + $0x10] sm:$0xff]  }
 0x18f   : > { %1022 = vmatpush1.bf16.msra.mxu1 %v2164_v22  ;;  %1065 = vmatpush1.bf16.msra.mxu0 %v2214_v47 }
 0x190   : > { %1023 = vmatprep.subr.bf16.mxu1 %v2169_v24  ;;  %1066 = vmatprep.subr.bf16.mxu0 %v2215_v48 }
 0x193   : > { %1024 = vmatpush1.bf16.msra.mxu1 %v2167_v27  ;;  %1067 = vmatpush1.bf16.msra.mxu0 %v2220_v51 }
 0x194   : > { %1025 = vmatprep.subr.bf16.mxu1 %v2172_v28  ;;  %1926 = vmatprep.subr.bf16.mxu0 %v2724_v1 }
 0x197   : > { %1026 = vmatpush1.bf16.msra.mxu1 %v2170_v29 }
 0x198   : > { %1027 = vmatprep.subr.bf16.mxu1 %v2177_v30 }
 0x19b   : > { %1028 = vmatpush1.bf16.msra.mxu1 %v2175_v31 }
 0x19c   : > { %1029 = vmatprep.subr.bf16.mxu1 %v2183_v32  ;;  %v2221_v32 = vld [vmem:[#allocation19] sm:$0xff]  }
 0x19f   : > { %1030 = vmatpush1.bf16.msra.mxu1 %v2181_v33  ;;  %v2222_v33 = vld [vmem:[#allocation19 + $0x8] sm:$0xff]  }
 0x1a0   : > { %1031 = vmatprep.subr.bf16.mxu1 %v2189_v34  ;;  %v2223_v34 = vld [vmem:[#allocation19 + $0x10] sm:$0xff]  }
 0x1a3   : > { %1032 = vmatpush1.bf16.msra.mxu1 %v2187_v35  ;;  %v2224_v35 = vld [vmem:[#allocation19 + $0x18] sm:$0xff]  }
 0x1a4   : > { %1033 = vmatprep.subr.bf16.mxu1 %v2195_v36 }
 0x1a7   : > { %1034 = vmatpush1.bf16.msra.mxu1 %v2193_v37 }
 0x1a8   : > { %1035 = vmatprep.subr.bf16.mxu1 %v2201_v38 }
 0x1ab   : > { %1036 = vmatpush1.bf16.msra.mxu1 %v2199_v39 }
 0x1ac   : > { %1037 = vmatprep.subr.bf16.mxu1 %v2207_v41  ;;  %v2225_v41 = vld [vmem:[%s3186_s16] sm:$0xff]  }
 0x1af   : > { %1038 = vmatpush1.bf16.msra.mxu1 %v2205_v42 }
 0x1b0   : > { %1039 = vmatprep.subr.bf16.mxu1 %v2213_v46 }
 0x1b3   : > { %1040 = vmatpush1.bf16.msra.mxu1 %v2211_v45  ;;  %v2228_v45 = vld [vmem:[%s3186_s16 + $0x18] sm:$0xff]  }
 0x1b4   : > { %1041 = vmatprep.subr.bf16.mxu1 %v2219_v49 }
 0x1b7   : > { %1042 = vmatpush1.bf16.msra.mxu1 %v2217_v50 }
 0x24d   : > { %v696_v54 = vpop.f32.mrb[0].mxu1 }
 0x24e   : > { %v697_v55 = vadd.f32 %v1812_v53, %v696_v54  ;;  %v1924_v56 = vpop.f32.mrb[1].mxu1 }
 0x24f   : > { %v699_v57 = vpop.f32.mrb[2].mxu1  ;;  %v1290_v56 = vld [vmem:[%s3192_s14] sm:$0xf] }
 0x250   : > { %704 = vst [vmem:[#allocation2 + $0x1] sm:$0xff] %v697_v55  ;;  %v1925_v58 = vpop.f32.mrb[3].mxu1  ;;  %v709_v59 = vpack.c.bf16 %v697_v55, %v697_v55  ;;  %v1296_v57 = vsel %vm1294_vm5, %v1290_v56, 0 }
 0x252   : > { %1043 = vmatprep.mubr.bf16.mxu1 %v709_v59 }
 0x257   : > { %v707_v60 = vld [vmem:[#allocation2 + $0x2] sm:$0xff] }
 0x258   : > { %v705_v61 = vld [vmem:[#allocation2] sm:$0xff]  ;;  %v710_v62 = vpack.c.bf16 %v707_v60, %v707_v60 }
 0x259   : > { %v708_v63 = vpack.c.bf16 %v705_v61, %v705_v61  ;;  %v1865_v61 = vld [vmem:[#allocation21] ss:$0 sm:$0xff] }
 0x25a   : > { %1085 = vmatmul.mubr.bf16.vlgmr.msra.gmra.mrb[0].mxu0 %v710_v62 }
 0x25b   : > { %1044 = vmatmul.mubr.bf16.vlgmr.msra.gmra.mrb[4].mxu1 %v708_v63  ;;  %1934 = vmatprep.mubr.msk.bf16.mxu0 %vm2725_vm0, %v2724_v1 }
 0x25c   : > { %1927 = vmatpush3.bf16.msra.mxu0 %v2221_v32 }
 0x25d   : > { %1928 = vmatprep.subr.bf16.mxu0 %v2724_v1 }
 0x260   : > { %1929 = vmatpush3.bf16.msra.mxu0 %v2222_v33 }
 0x261   : > { %1930 = vmatprep.subr.bf16.mxu0 %v2724_v1 }
 0x264   : > { %1931 = vmatpush3.bf16.msra.mxu0 %v2223_v34 }
 0x265   : > { %1932 = vmatprep.subr.bf16.mxu0 %v2724_v1 }
 0x268   : > { %1933 = vmatpush3.bf16.msra.mxu0 %v2224_v35 }
 0x269   : > { %1938 = vmatprep.subr.bf16.mxu0 %v2724_v1 }
 0x32d   : > { %v1086_v8 = vpop.f32.mrb[0].mxu0 }
 0x32e   : > { %v1045_v9 = vpop.f32.mrb[4].mxu1  ;;  %v1088_v11 = vpop.f32.mrb[1].mxu0 }
 0x32f   : > { %v1046_v10 = vadd.f32 %v1045_v9, %v764_v6  ;;  %v1047_v12 = vpop.f32.mrb[5].mxu1  ;;  %v1090_v14 = vpop.f32.mrb[2].mxu0 }
 0x330   : > { %v1048_v13 = vadd.f32 %v1047_v12, %v768_v7  ;;  %v1049_v15 = vpop.f32.mrb[6].mxu1  ;;  %v1091_v17 = vpop.f32.mrb[3].mxu0 }
 0x331   : > { %v1087_v16 = vadd.f32 %v1086_v8, %v1046_v10  ;;  %v1050_v18 = vpop.f32.mrb[7].mxu1 }
 0x332   : > { %v1089_v19 = vadd.f32 %v1088_v11, %v1048_v13 }
 0x334   : > { %v1864_v20 = vmul.f32 -1.442695, %v1089_v19 }
 0x336   : > { %2229 = vpow2.f32 %v1864_v20 }
 0x340   : > { %v2230_v21 = vpop.eup %2229 }
 0x341   : > { %v1096_v22 = vadd.f32 1.0, %v2230_v21 }
 0x343   : > { %2231 = vrcp.f32 %v1096_v22 }
 0x34d   : > { %v2232_v23 = vpop.eup %2231 }
 0x34e   : > { %v1099_v24 = vmul.f32 %v2232_v23, %v1087_v16 }
 0x350   : > { %v1101_v25 = vsel %vm1100_vm2, %v1099_v24, -inf }
 0x351   : > { %1102 = vmax.xlane.f32.xlu0 %v1101_v25 }
 0x3de   : > { %v1103_v26 = vpop.xlane.xlu0 %1102 }
 0x3df   : > { %v1104_v27 = vsub.f32 %v1099_v24, %v1103_v26 }
 0x3e1   : > { %v1105_v28 = vmul.f32 1.442695, %v1104_v27 }
 0x3e3   : > { %2233 = vpow2.f32 %v1105_v28 }
 0x3ed   : > { %v2234_v29 = vpop.eup %2233 }
 0x3ee   : > { %1108 = vrot.lane.b32.xlu0 %v2234_v29, %s2727_s25 }
 0x460   : > { %v1109_v30 = vpop.permute.xlu0 %1108 }
 0x461   : > { %v1112_v31 = vsel %vm1111_vm3, %v1109_v30, 0.0 }
 0x462   : > { %1113 = vadd.xlane.f32.xlu1 %v1112_v31 }
 0x4ef   : > { %v1114_v36 = vpop.xlane.xlu1 %1113 }
 0x4f0   : > { %2235 = vrcp.f32 %v1114_v36 }
 0x4fa   : > { %v2236_v37 = vpop.eup %2235 }
 0x4fb   : > { %v1116_v38 = vmul.f32 %v2236_v37, %v2234_v29 }
 0x4fd   : > { %1118 = vrot.lane.b32.xlu1 %v1116_v38, %s2727_s25 }
 0x56f   : > { %v1119_v39 = vpop.permute.xlu1 %1118 }
 0x570   : > { %v1121_v40 = vmul.f32 %v1119_v39, %v1099_v24 }
 0x572   : > { %v1122_v42 = vpack.c.bf16 %v1121_v40, %v1121_v40 }
 0x574   : > { %1935 = vmatmul.mubr.msk.bf16.vlgmr.msra.gmra.mrb[4].mxu0 %vm1111_vm3, %v1122_v42 }
 0x575   : > { %1939 = vmatpush3.bf16.msra.mxu0 %v2225_v41  ;;  %1946 = vmatprep.mubr.msk.bf16.mxu0 %vm2725_vm0, %v2724_v1 }
 0x576   : > { %1940 = vmatprep.subr.bf16.mxu0 %v2724_v1 }
 0x579   : > { %1941 = vmatpush3.bf16.msra.mxu0 %v2226_v43 }
 0x57a   : > { %1942 = vmatprep.subr.bf16.mxu0 %v2724_v1 }
 0x57d   : > { %1943 = vmatpush3.bf16.msra.mxu0 %v2227_v44 }
 0x57e   : > { %1944 = vmatprep.subr.bf16.mxu0 %v2724_v1 }
 0x581   : > { %1945 = vmatpush3.bf16.msra.mxu0 %v2228_v45 }
 0x582   : > { %1950 = vmatprep.subr.bf16.mxu0 %v2724_v1 }
 0x584   : > { %1947 = vmatmul.mubr.msk.bf16.vlgmr.msra.gmra.mrb[8].mxu0 %vm1111_vm3, %v1122_v42 }
 0x585   : > { %1952 = vmatprep.mubr.msk.bf16.mxu0 %vm2725_vm0, %v2724_v1  ;;  %1951 = vmatpush3.bf16.msra.mxu0 %v1296_v57 }
 0x657   : > { %v1271_v46 = vpop.f32.mrb[8].mxu0 }
 0x658   : > { %v1948_v47 = vpop.f32.mrb[9].mxu0  ;;  %v1278_v48 = vsel %vm1277_vm4, %v1271_v46, -inf }
 0x659   : > { %1279 = vmax.xlane.f32.xlu1 %v1278_v48  ;;  %v1274_v49 = vpop.f32.mrb[10].mxu0 }
 0x65a   : > { %v1949_v50 = vpop.f32.mrb[11].mxu0 }
 0x6e6   : > { %v1280_v51 = vpop.xlane.xlu1 %1279 }
 0x6e7   : > { %v1281_v52 = vsub.f32 %v1271_v46, %v1280_v51 }
 0x6e9   : > { %v1282_v53 = vmul.f32 1.442695, %v1281_v52 }
 0x6eb   : > { %2237 = vpow2.f32 %v1282_v53 }
 0x6f5   : > { %v2238_v54 = vpop.eup %2237 }
 0x6f6   : > { %v1284_v55 = vsel %vm1277_vm4, %v2238_v54, 0.0 }
 0x6f7   : > { %1285 = vadd.xlane.f32.xlu0 %v1284_v55 }
 0x784   : > { %v1286_v1 = vpop.xlane.xlu0 %1285 }
 0x785   : > { %2239 = vrcp.f32 %v1286_v1 }
 0x78f   : > { %v2240_v58 = vpop.eup %2239 }
 0x790   : > { %v1288_v59 = vmul.f32 %v2240_v58, %v2238_v54 }
 0x792   : > { %v1289_v60 = vpack.c.bf16 %v1288_v59, %v1288_v59 }
 0x794   : > { %1953 = vmatmul.mubr.msk.bf16.vlgmr.msra.gmra.mrb[4].mxu0 %vm1277_vm4, %v1289_v60 }
 0x867   : > { %v1332_v62 = vpop.f32.mrb[4].mxu0 }
 0x868   : > { %v1960_v63 = vadd.f32 %v1865_v61, %v1332_v62  ;;  %v1954_v0 = vpop.f32.mrb[5].mxu0 }
 0x869   : > { %v1335_v2 = vpop.f32.mrb[6].mxu0 }
 0x86a   : > { %v1339_v3 = vpack.c.bf16 %v1960_v63, %v1960_v63  ;;  %v1955_v4 = vpop.f32.mrb[7].mxu0 }
 0x86c   : > { %1340 = vst [vmem:[#allocation3] sm:$0xf] %v1339_v3 }
 0x86d PF: > { %v2241_v5 = vld [vmem:[#allocation22 + $0x4] ss:$8 sps:$4 sm:$0xff]   ;;  %v2243_v6 = vld [vmem:[#allocation22] ss:$8 sps:$4 sm:$0xff]   ;;  %v2728_v7 = vmov 0   ;;  %v1360_v23 = vlaneseq  ;;  %s3404_s5 = sld [smem:[#allocation35_spill]] }
 0x86e   : > { %1482 = vmatprep.mubr.bf16.mxu0 %v2728_v7  ;;  %1450 = vmatprep.subr.bf16.mxu0 %v2241_v5  ;;  %v2244_v8 = vld [vmem:[#allocation22 + $0x14] ss:$8 sps:$4 sm:$0xff]   ;;  %v2246_v9 = vld [vmem:[#allocation22 + $0x10] ss:$8 sps:$4 sm:$0xff]   ;;  %v2247_v10 = vld [vmem:[#allocation22 + $0x24] ss:$8 sps:$4 sm:$0xff]  }
 0x86f   : > { %1451 = vmatpush1.bf16.msra.mxu0 %v2243_v6  ;;  %v2249_v11 = vld [vmem:[#allocation22 + $0x20] ss:$8 sps:$4 sm:$0xff]   ;;  %v2250_v12 = vld [vmem:[#allocation22 + $0x34] ss:$8 sps:$4 sm:$0xff]   ;;  %v2252_v13 = vld [vmem:[#allocation22 + $0x30] ss:$8 sps:$4 sm:$0xff]  }
 0x870   : > { %1452 = vmatprep.subr.bf16.mxu0 %v2244_v8  ;;  %v2253_v14 = vld [vmem:[#allocation22 + $0x44] ss:$8 sps:$4 sm:$0xff]   ;;  %v2255_v15 = vld [vmem:[#allocation22 + $0x40] ss:$8 sps:$4 sm:$0xff]   ;;  %v2256_v16 = vld [vmem:[#allocation22 + $0x54] ss:$8 sps:$4 sm:$0xff]  }
 0x871   : > { %v2258_v17 = vld [vmem:[#allocation22 + $0x50] ss:$8 sps:$4 sm:$0xff]   ;;  %v2259_v18 = vld [vmem:[#allocation22 + $0x64] ss:$8 sps:$4 sm:$0xff]   ;;  %v2261_v19 = vld [vmem:[#allocation22 + $0x60] ss:$8 sps:$4 sm:$0xff]  }
 0x872   : > { %v2262_v20 = vld [vmem:[#allocation22 + $0x74] ss:$8 sps:$4 sm:$0xff]   ;;  %v2264_v21 = vld [vmem:[#allocation22 + $0x70] ss:$8 sps:$4 sm:$0xff]   ;;  %v1361_v24 = vshrl.u32 %v1360_v23, 7 }
 0x873   : > { %1453 = vmatpush1.bf16.msra.mxu0 %v2246_v9  ;;  %v1341_v22 = vld [vmem:[#allocation3] sm:$0xf]  ;;  %p1893_p6 = scmp.ne.s32.totalorder %s3404_s5, 0 }
 0x874   : > { %1454 = vmatprep.subr.bf16.mxu0 %v2247_v10  ;;  %v1362_v25 = vsub.s32 0, %v1361_v24  ;;  %v1358_v26 = vld [vmem:[#allocation24] sm:$0x3]  ;;  %v1366_v27 = vsub.s32 1, %v1361_v24  ;;  %vm1497_vm6 = vcmask (!%p1893_p6), 7168   ;;  %v2729_v37 = vmov (!%p1893_p6), -inf  }
 0x875   : > { %1498 = vst.msk [vmem:[#allocation4] sm:$0xff] (!%p1893_p6), %vm1497_vm6, %v2729_v37  ;;  %v2730_v38 = vmov (!%p1893_p6), 0   ;;  %v2731_v39 = vmov (!%p1893_p6), 0.0  }
 0x876   : > { %v1363_v28 = vrot.slane %v1358_v26, %v1362_v25  ;;  %v1367_v29 = vrot.slane %v1358_v26, %v1366_v27  ;;  %2265 = vset.pattern.permute.xlu0 (!%p1893_p6), %v2730_v38  ;;  %1499 = vst.msk [vmem:[#allocation5] sm:$0xff] (!%p1893_p6), %vm1497_vm6, %v2731_v39 }
 0x877   : > { %1455 = vmatpush1.bf16.msra.mxu0 %v2249_v11 }
 0x878   : > { %1456 = vmatprep.subr.bf16.mxu0 %v2250_v12 }
 0x87b   : > { %1457 = vmatpush1.bf16.msra.mxu0 %v2252_v13 }
 0x87c   : > { %1458 = vmatprep.subr.bf16.mxu0 %v2253_v14  ;;  %v1500_v40 = vld [vmem:[#allocation4] sm:$0xff] (!%p1893_p6) }
 0x87d   : > { %v1505_v54 = vld [vmem:[#allocation5] sm:$0xff] (!%p1893_p6) }
 0x87f   : > { %1459 = vmatpush1.bf16.msra.mxu0 %v2255_v15 }
 0x880   : > { %1460 = vmatprep.subr.bf16.mxu0 %v2256_v16 }
 0x883   : > { %1461 = vmatpush1.bf16.msra.mxu0 %v2258_v17 }
 0x884   : > { %1462 = vmatprep.subr.bf16.mxu0 %v2259_v18 }
 0x887   : > { %1463 = vmatpush1.bf16.msra.mxu0 %v2261_v19 }
 0x888   : > { %1464 = vmatprep.subr.bf16.mxu0 %v2262_v20 }
 0x88b   : > { %1465 = vmatpush1.bf16.msra.mxu0 %v2264_v21 }
 0x88e   : > { %1483 = vmatmul.mubr.bf16.vlgmr.msra.gmra.mrb[0].mxu0 %v1341_v22 }
 0x95e   : > { %1493 = sbr.rel (%p1893_p6) target bundleno = 2865 (0xb31), region = 116 }
 0x961   : > { %v1484_v30 = vpop.f32.mrb[0].mxu0 }
 0x962   : > { %v1485_v31 = vadd.f32 %v1484_v30, %v1363_v28  ;;  %v1486_v32 = vpop.f32.mrb[1].mxu0 }
 0x963   : > { %v1487_v33 = vadd.f32 %v1486_v32, %v1367_v29  ;;  %v1488_v34 = vpop.f32.mrb[2].mxu0 }
 0x964   : > { %v1489_v35 = vpop.f32.mrb[3].mxu0 }
 0x965   : > { %v1501_v36 = vmax.f32 %v1485_v31, %v1487_v33 }
 0x967   : > { %1502 = vmax.xlane.f32.xlu0 %v1501_v36 }
 0x9f4   : > { %v1503_v41 = vpop.xlane.xlu0 %1502 }
 0x9f5   : > { %v1504_v42 = vmax.f32 %v1500_v40, %v1503_v41 }
 0x9f7   : > { %v1506_v43 = vsub.f32 %v1500_v40, %v1504_v42  ;;  %1527 = vst.msk [vmem:[#allocation4] sm:$0xff] %vm1497_vm6, %v1504_v42  ;;  %1512 = vperm.xlu0 %2265, %v1504_v42  }
 0x9f9   : > { %v1507_v52 = vmul.f32 1.442695, %v1506_v43 }
 0x9fe   : > { %v1531_v60 = vld [vmem:[#allocation4] sm:$0xff] }
 0xa76   : > { %v1513_v44 = vpop.permute.xlu0 %1512 }
 0xa77   : > { %v1515_v45 = vsub.f32 %v1485_v31, %v1513_v44  ;;  %v1516_v46 = vsub.f32 %v1487_v33, %v1513_v44 }
 0xa79   : > { %v1517_v47 = vmul.f32 1.442695, %v1515_v45  ;;  %v1519_v48 = vmul.f32 1.442695, %v1516_v46 }
 0xa7b   : > { %2266 = vpow2.f32 %v1517_v47 }
 0xa7c   : > { %2268 = vpow2.f32 %v1519_v48 }
 0xa7d   : > { %2270 = vpow2.f32 %v1507_v52 }
 0xa85   : > { %v2267_v49 = vpop.eup %2266 }
 0xa86   : > { %v2269_v50 = vpop.eup %2268 }
 0xa87   : > { %v1521_v51 = vadd.f32 %v2269_v50, %v2267_v49  ;;  %v2271_v53 = vpop.eup %2270 }
 0xa88   : > { %v1509_v55 = vmul.f32 %v2271_v53, %v1505_v54 }
 0xa89   : > { %1522 = vadd.xlane.f32.xlu1 %v1521_v51 }
 0xb16   : > { %v1523_v56 = vpop.xlane.xlu1 %1522 }
 0xb17   : > { %v1524_v57 = vadd.f32 %v1523_v56, %v1509_v55 }
 0xb19   : > { %1526 = vst.msk [vmem:[#allocation5] sm:$0xff] %vm1497_vm6, %v1524_v57 }
 0xb20   : > { %v1532_v1 = vld [vmem:[#allocation5] sm:$0xff] }
 0xb21   : > { %2272 = vlog2.f32 %v1532_v1 }
 0xb2b   : > { %v2273_v58 = vpop.eup %2272 }
 0xb2c   : > { %v1534_v59 = vmul.f32 0.6931472, %v2273_v58 }
 0xb2e   : > { %v1535_v61 = vadd.f32 %v1534_v59, %v1531_v60 }
 0xb30   : > { %1536 = vst.msk [vmem:[#allocation6] sm:$0xff] %vm1497_vm6, %v1535_v61 }
 0xb31 PF: > { %s3405_s27 = sld [smem:[#allocation35_spill]] }
 0xb37   : > { %p1894_p1 = scmp.ne.s32.totalorder %s3405_s27, 1 }
 0xb38   : > { %v1541_v62 = vld [vmem:[#allocation6] sm:$0xff] (!%p1894_p1)  ;;  %v2732_v63 = vmov (!%p1894_p1), 0  }
 0xb39   : > { %1540 = sbr.rel (%p1894_p1) target bundleno = 3005 (0xbbd), region = 128  ;;  %2274 = vset.pattern.permute.xlu0 (!%p1894_p1), %v2732_v63 }
 0xb3a   : > { %1544 = vperm.xlu0 (!%p1894_p1), %2274, %v1541_v62  }
 0xbb9   : > { %v1545_v0 = vpop.permute.xlu0 %1544 }
 0xbba   : > { %v1547_v2 = vsub.f32 %v1485_v31, %v1545_v0  ;;  %v1548_v3 = vsub.f32 %v1487_v33, %v1545_v0 }
 0xbbc   : > { %1549 = vst [vmem:[%s3212_s11] sm:$0xff] %v1547_v2  ;;  %1550 = vst [vmem:[%s3212_s11 + $0x8] sm:$0xff] %v1548_v3 }
 0xbbd PF: > { %s3406_s29 = sld [smem:[#allocation36_spill]]  ;;  %s1569_s7 = sshll.u32 %s3212_s11, 4  ;;  %s1570_s7 = int_to_ptr.vmem [resolvable:$true] %s1569_s7 }
 0xbbe   : > { %s3407_s2 = sld [smem:[#allocation50_spill]]  ;;  %s1552_s13 = scalar_lea.sflag [#allocation9], %s3174_s21 }
 0xbbf   : > { %s2589_s20 = scalar_lea.vmem %s1570_s7, 256  ;;  %p3408_p2 = scmp.ne.s32.totalorder %s3376_s30, 0 }
 0xbc0   : > { %p2590_p4 = scmp.ne.s32.totalorder %s1570_s7, %s2589_s20  ;;  %s2733_s22 = smov [#allocation25]  }
 0xbc1   : > { %s2593_s26 = sshll.u32 %s2733_s22, 4  ;;  %s2594_s26 = int_to_ptr.vmem [resolvable:$false] %s2593_s26 }
 0xbc2   : > { %p2591_p5 = pnand %p2590_p4, %p3408_p2  ;;  %s2595_s19 = scalar_lea.vmem %s2594_s26, 512 }
 0xbc3   : > { %s1902_s15 = sshll.u32 %s3406_s29, 8  ;;  %p2596_p3 = scmp.lt.s32.totalorder %s1570_s7, %s2594_s26 }
 0xbc4   : > { %s3260_s17 = scalar_lea.hbm %s3407_s2, %s1902_s15  ;;  %p2592_p13 = pneg %p2591_p5 }
 0xbc5   : > { %p2597_p9 = scmp.lt.s32.totalorder %s2595_s19, %s2589_s20 }
 0xbc7   : > { %p2598_p11 = por %p2597_p9, %p2596_p3 }
 0xbc9   : > { %p2599_p12 = pnand %p2598_p11, %p2592_p13 }
 0xbcb   : > { %2602 = shalt.err (!%p2599_p12)
}
 0xbcc   : > { %s2603_s21 = scalar_lea.hbm %s3260_s17, 256  ;;  %s2607_s0 = scalar_lea.hbm %s3407_s2, 512 }
 0xbcd   : > { %p2604_p7 = scmp.ne.s32.totalorder %s3260_s17, %s2603_s21  ;;  %p2608_p10 = scmp.lt.u32.totalorder %s3260_s17, %s3407_s2 }
 0xbce   : > { %p2609_p6 = scmp.lt.u32.totalorder %s2607_s0, %s2603_s21  ;;  %p2611_p4 = scmp.lt.u32.totalorder %s2603_s21, %s3260_s17 }
 0xbcf   : > { %p2605_p8 = pnand %p2604_p7, %p3408_p2 }
 0xbd0   : > { %p2610_p1 = por %p2609_p6, %p2608_p10 }
 0xbd1   : > { %p2606_p0 = pneg %p2605_p8 }
 0xbd2   : > { %p2612_p5 = por %p2611_p4, %p2610_p1 }
 0xbd4   : > { %p2613_p13 = pnand %p2612_p5, %p2606_p0 }
 0xbd6   : > { %2616 = shalt.err (!%p2613_p13)
}
 0xbd7   : > { %2003 = dma.vmem_to_hbm [thread:$0]  (%p3408_p2), %s1570_s7, 256, %s3260_s17, %s1552_s13  }
 0xbd8 PF: > { %s3409_s25 = sld [smem:[#allocation33_spill]]  ;;  %s3410_s5 = sld [smem:[#allocation41_spill]] }
 0xbd9   : > { %p2061_p3 = scmp.ge.s32.totalorder %s2707_s24, 2 }
 0xbde   : > { %s1581_s27 = sand.u32 1, %s3409_s25   ;;  %p3411_p9 = scmp.ne.s32.totalorder %s3410_s5, 0 }
 0xbdf   : > { %s1582_s29 = scalar_lea.sflag [#allocation9], %s1581_s27 }
 0xbe0   : > { %p2041_p11 = pnand %p2061_p3, %p3411_p9 }
 0xbe2   : > { %2674 = dma.done.wait (!%p2041_p11), %s1582_s29, 256  }
 0xbe3   : > { %2676 = vsyncadd (!%p2041_p11), %s1582_s29, 4294967040  ;;  %s34_s24 = sadd.s32 1, %s2707_s24   ;;  %s3412_s15 = sld [smem:[#allocation34_spill]] }
 0xbe4   : > { %p31_p12 = scmp.ge.s32.totalorder %s34_s24, 6   ;;  %s3413_s19 = sld [smem:[#allocation42_spill]] }
 0xbe5   : > { %s3414_s20 = sld [smem:[#allocation37_spill]]  ;;  %s3415_s22 = sld [smem:[#allocation39_spill]] }
 0xbe6   : > { %s3416_s30 = sld [smem:[#allocation40_spill]]  ;;  %s3417_s17 = smov %s2683_s18 }
 0xbe7   : > { %s3419_s21 = smov %s2703_s23  ;;  %33 = sbr.rel (!%p31_p12) target bundleno = 22 (0x16), region = 187 }
 0xbe9   : > { %s3418_s18 = smov %s3412_s15 }
 0xbec   : > { %s3420_s23 = smov %s3416_s30 }
 0xbee   :  { %1587 = vsyncpa [#allocation8], 1 }
 0xbef   :  { %1589 = vsyncpa [#allocation8 + $0x1], 1 }
 0xbf0   :  { %1590 = vsyncpa [#allocation11], 1 }
 0xbf1   :  { %1592 = vsyncpa [#allocation11 + $0x1], 1 }
 0xbf2   :  { %1593 = vsyncpa [#allocation14], 1 }
 0xbf3   :  { %1594 = vsyncpa [#allocation17], 1 }
 0xbf4   :  { %1595 = vsyncpa [#allocation20], 1 }
 0xbf5   :  { %1596 = vsyncpa [#allocation23], 1 }
 0xbf6   :  { %1597 = vsyncpa [#allocation9], 1 }
 0xbf7   :  { %1599 = vsyncpa [#allocation9 + $0x1], 1 }

</bundles_post_ra>
